<compile_context>
chip_gen: v6e
topology: v6e:2x2x1
jax: 0.10.0
libtpu: 0.0.40
codegen_flags: <defaults>
</compile_context>

<pallas_src>
import jax
import jax.numpy as jnp
from jax import lax
from jax.experimental import pallas as pl
from jax.experimental.pallas import tpu as pltpu

# ----- module hyper-parameters (consistent with the hard-coded torch forward) -----
SEQ_LEN = 20        # sequence_length
INPUT_SIZE = 20     # input_size (one-hot amino acid)
HIDDEN = 64         # hidden_size  (2*HIDDEN == 128 matches reshape(-1, 128))
NUM_LAYERS = 1
OUT_CH1 = 20        # conv1: kernel (1,20), stride 1, no bias
OUT_CH2 = 5         # conv2: kernel 2x2, stride 2, bias -> (B,5,2,10) == 100 feats
K2 = 2
IN_FEATURES = 2 * HIDDEN + 100   # 228
FC1_OUT = 64
FC2_OUT = 2
BATCH = 2

# row offsets inside the packed (400, 64) parameter slab
PK_W1 = 0          # 256 rows x 64   : fc1 weight (permuted conv rows, K padded to 256)
PK_W2FC = 256      # 64 rows  x 2    : fc2 weight (transposed)
PK_B1 = 320        # 1 row    x 64   : fc1 bias
PK_B2FC = 321      # 1 row    x 2    : fc2 bias
PK_PSSM = 328      # 20 rows  x 20   : blosum^T (== conv1 weight)
PK_W2BIG = 352     # 40 rows  x 50   : conv2 im2col weight
PK_B2ROW = 392     # 1 row    x 50   : conv2 bias broadcast over j
PK_ROWS = 400


def bilstm_cnn_kernel(xcat_ref, xbsd_ref, qinv_ref, wih_ref, whh_ref, pk_ref,
                      out_ref, gx_ref):
    B, S, _ = xbsd_ref.shape
    H = HIDDEN
    H2, H4, H6 = 2 * H, 4 * H, 6 * H

    # ---- prologue: gate pre-activations for all steps, both directions, bias included ----
    # One (S*B, 2D+1) @ (2D+1, 8H) matmul into VMEM scratch; no per-step where()/+bias.
    gx_ref[...] = jnp.dot(xcat_ref[...], wih_ref[...],
                          preferred_element_type=jnp.float32)          # (S*B, 8H)

    # ---- fused bidirectional LSTM recurrence (the serial critical chain) ----
    # Gate column layout (8H): 4 blocks of 2H = [i | f | o | g]; each block = [fw | bw].
    # TODO(synk): keep whh resident via explicit MXU driving (pltpu.matmul_push_rhs once,
    #             matmul_acc_lhs/matmul_pop per step) to eliminate redundant weight pushes.
    whh = whh_ref[...]                                                  # (2H, 8H) bf16
    h = jnp.zeros((B, H2), jnp.float32)                                 # [h_fw | h_bw]
    c = jnp.zeros((B, H2), jnp.float32)
    for t in range(S):                                                  # S = 20, static unroll
        g = gx_ref[t * B:(t + 1) * B, :] + jnp.dot(
            h.astype(jnp.bfloat16), whh, preferred_element_type=jnp.float32)
        sig = jax.nn.sigmoid(g[:, :H6])          # i, f, o gates (both directions)
        gg = jnp.tanh(g[:, H6:])                 # candidate gate
        c = sig[:, H2:H4] * c + sig[:, :H2] * gg
        h = sig[:, H4:H6] * jnp.tanh(c)
    lstm_out = h                                 # (B, 128) == concat(h_fw, h_bw)
    # TODO(synk): dropout(p=0.2) on final_state -> identity (inference).

    # ---- conv1 + data-dependent avblock pooling (off the serial chain, left simple) ----
    pssm_t = pk_ref[PK_PSSM:PK_PSSM + INPUT_SIZE, 0:INPUT_SIZE]         # (20, 20)
    conv_parts = []
    for b in range(B):
        conv_parts.append(jnp.dot(xbsd_ref[b], pssm_t,
                                  preferred_element_type=jnp.float32)[None])
    conv1 = jnp.concatenate(conv_parts, axis=0)                         # (B, S, 20)

    qi = qinv_ref[:, 0:1].astype(jnp.int32).reshape(B, 1, 1)            # pooling width q
    inv_q = qinv_ref[:, 1:2]                                            # (B, 1) = 1/max(q,1)
    r_idx = lax.broadcasted_iota(jnp.int32, (B, S, OUT_CH1), 2)
    av = []
    for k in range(4):                                                  # 4 static blocks
        m = (r_idx >= k * qi) & (r_idx < (k + 1) * qi)
        av.append(jnp.sum(jnp.where(m, conv1, 0.0), axis=2) * inv_q)    # (B, 20)

    # ---- conv2 (2x2, stride 2) + bias + ReLU as one im2col-style matmul ----
    U = jnp.concatenate([av[0], av[2]], axis=0)      # patch top rows;   row = i*B + b
    V = jnp.concatenate([av[1], av[3]], axis=0)      # patch bottom rows
    UV = jnp.concatenate([U, V], axis=1)             # (2B, 40)
    w2big = pk_ref[PK_W2BIG:PK_W2BIG + 40, 0:50]
    b2row = pk_ref[PK_B2ROW:PK_B2ROW + 1, 0:50]
    c2 = jnp.maximum(
        jnp.dot(UV, w2big, preferred_element_type=jnp.float32) + b2row, 0.0)   # (2B, 50)
    conv_flat = jnp.concatenate([c2[:B], c2[B:]], axis=1)                      # (B, 100)
    # TODO(synk): dropout on conv2 output -> identity (inference).

    # ---- merge (lane-padded to 256) + fc1 + fc2 + softmax(dim=1) ----
    merged = jnp.concatenate(
        [lstm_out, conv_flat, jnp.zeros((B, 256 - H2 - 100), jnp.float32)], axis=1)
    w1 = pk_ref[PK_W1:PK_W1 + 256, :]
    b1 = pk_ref[PK_B1:PK_B1 + 1, :]
    w2fc = pk_ref[PK_W2FC:PK_W2FC + FC1_OUT, 0:FC2_OUT]
    b2fc = pk_ref[PK_B2FC:PK_B2FC + 1, 0:FC2_OUT]
    h1 = jnp.dot(merged, w1, preferred_element_type=jnp.float32) + b1
    h2 = jnp.dot(h1, w2fc, preferred_element_type=jnp.float32) + b2fc
    mx = jnp.max(h2, axis=1, keepdims=True)
    e = jnp.exp(h2 - mx)
    out_ref[...] = e / jnp.sum(e, axis=1, keepdims=True)


def bilstm_cnn_forward(x, kp):
    """x: (B, S, D) float32 one-hot input. Returns (B, FC2_OUT) softmax probs."""
    B, S, D = x.shape
    f32 = jnp.float32

    # per-sample pooling width q = floor(sum(x)/4) and guarded 1/q, packed as one (B, 2)
    tot = jnp.sum(x.astype(jnp.int32), axis=(1, 2))
    q = tot // 4
    qinv = jnp.stack([q.astype(f32), 1.0 / jnp.maximum(q, 1).astype(f32)], axis=1)

    # time-major LSTM input with the reversed copy and a constant-1 (bias) column:
    # row t*B+b = [x[b,t] | x[b,S-1-t] | 1]
    x_tm = jnp.transpose(x, (1, 0, 2)).reshape(S * B, D)
    x_rev = jnp.transpose(x[:, ::-1, :], (1, 0, 2)).reshape(S * B, D)
    x_cat1 = jnp.concatenate([x_tm, x_rev, jnp.ones((S * B, 1), f32)], axis=1)

    vmem = pl.BlockSpec(memory_space=pltpu.MemorySpace.VMEM)
    return pl.pallas_call(
        bilstm_cnn_kernel,
        out_shape=jax.ShapeDtypeStruct((B, FC2_OUT), jnp.float32),
        in_specs=[vmem] * 6,
        out_specs=vmem,
        scratch_shapes=[pltpu.VMEM((S * B, 8 * HIDDEN), jnp.float32)],
    )(x_cat1, x, qinv, kp['wih_cat1'], kp['whh_bf16'], kp['params64'])


# ---------------- deterministic parameter construction ----------------
def init_raw_params(key):
    ks = jax.random.split(key, 16)
    s = 0.1
    rn = lambda k, shape: s * jax.random.normal(k, shape, dtype=jnp.float32)
    H4 = 4 * HIDDEN
    p = {}
    p['wih_fw'] = rn(ks[0], (H4, INPUT_SIZE)); p['whh_fw'] = rn(ks[1], (H4, HIDDEN))
    p['bih_fw'] = rn(ks[2], (H4,));            p['bhh_fw'] = rn(ks[3], (H4,))
    p['wih_bw'] = rn(ks[4], (H4, INPUT_SIZE)); p['whh_bw'] = rn(ks[5], (H4, HIDDEN))
    p['bih_bw'] = rn(ks[6], (H4,));            p['bhh_bw'] = rn(ks[7], (H4,))
    p['blosum'] = rn(ks[8], (20, 20))          # synthetic stand-in for blosum_matrix.pt
    p['w2_conv'] = rn(ks[9], (OUT_CH2, 1, K2, K2)); p['b2_conv'] = rn(ks[10], (OUT_CH2,))
    p['w_fc1'] = rn(ks[11], (FC1_OUT, IN_FEATURES)); p['b_fc1'] = rn(ks[12], (FC1_OUT,))
    p['w_fc2'] = rn(ks[13], (FC2_OUT, FC1_OUT));     p['b_fc2'] = rn(ks[14], (FC2_OUT,))
    return p


def to_kernel_params(p):
    """Repack torch-layout parameters into the fused/aligned layouts the kernel expects."""
    H = HIDDEN
    f32 = jnp.float32

    def reorder_gates(w):
        # torch LSTM gate order [i, f, g, o] (leading axis) -> kernel order [i, f, o, g]
        return jnp.concatenate([w[:H], w[H:2 * H], w[3 * H:4 * H], w[2 * H:3 * H]], axis=0)

    wih_fw = reorder_gates(p['wih_fw']); wih_bw = reorder_gates(p['wih_bw'])     # (4H, D)
    whh_fw = reorder_gates(p['whh_fw']); whh_bw = reorder_gates(p['whh_bw'])     # (4H, H)
    b_fw = reorder_gates(p['bih_fw'] + p['bhh_fw'])                              # (4H,)
    b_bw = reorder_gates(p['bih_bw'] + p['bhh_bw'])

    # Fused column layout: 4 gate blocks of 2H columns, each block = [fw | bw].
    zD = jnp.zeros((INPUT_SIZE, H), f32)
    zH = jnp.zeros((H, H), f32)
    fw_rows, bw_rows, whh_cols, b_cols = [], [], [], []
    for k in range(4):
        sl = slice(k * H, (k + 1) * H)
        fw_rows += [wih_fw[sl].T, zD]          # x[b,t]      -> forward gate columns only
        bw_rows += [zD, wih_bw[sl].T]          # x[b,S-1-t]  -> backward gate columns only
        whh_cols += [jnp.concatenate([whh_fw[sl].T, zH], axis=0),
                     jnp.concatenate([zH, whh_bw[sl].T], axis=0)]
        b_cols += [b_fw[sl], b_bw[sl]]
    b_all = jnp.concatenate(b_cols).reshape(1, 8 * H)
    # (2D+1, 8H): forward x rows | backward x rows | bias row (driven by the ones column)
    wih_cat1 = jnp.concatenate(
        [jnp.concatenate(fw_rows, axis=1), jnp.concatenate(bw_rows, axis=1), b_all], axis=0)
    # block-diagonal hidden->gate weight, stored bf16 (1 MXU pass/step instead of ~3 for f32)
    whh_bf16 = jnp.concatenate(whh_cols, axis=1).astype(jnp.bfloat16)            # (2H, 8H)

    # conv2 (2x2, stride 2) as an im2col weight matrix (40, 50); column = o*10 + j.
    w2 = p['w2_conv']                                          # (5, 1, 2, 2)
    sel0 = (jnp.arange(20)[:, None] == 2 * jnp.arange(10)[None, :]).astype(f32)       # c' == 2j
    sel1 = (jnp.arange(20)[:, None] == 2 * jnp.arange(10)[None, :] + 1).astype(f32)   # c' == 2j+1
    WA = jnp.concatenate([sel0 * w2[o, 0, 0, 0] + sel1 * w2[o, 0, 0, 1]
                          for o in range(OUT_CH2)], axis=1)    # top patch row (di=0)
    WB = jnp.concatenate([sel0 * w2[o, 0, 1, 0] + sel1 * w2[o, 0, 1, 1]
                          for o in range(OUT_CH2)], axis=1)    # bottom patch row (di=1)
    w2_big = jnp.concatenate([WA, WB], axis=0)                 # (40, 50)
    b2_row = jnp.repeat(p['b2_conv'], INPUT_SIZE // 2).reshape(1, OUT_CH2 * (INPUT_SIZE // 2))

    # fc1: permute conv-feature rows from torch order (o*20+i*10+j) to the kernel's
    # conv_flat order (i*50+o*10+j), and zero-pad K from 228 to 256 (lane-aligned).
    w1t = p['w_fc1'].T                                         # (228, 64)
    perm = []
    for idx in range(100):
        i_blk, rest = divmod(idx, 50)
        o, j = divmod(rest, 10)
        perm.append(o * 20 + i_blk * 10 + j)
    w1_conv = w1t[2 * H + jnp.array(perm), :]                  # (100, 64)
    w1_pad = jnp.concatenate(
        [w1t[:2 * H], w1_conv, jnp.zeros((256 - IN_FEATURES, FC1_OUT), f32)], axis=0)  # (256, 64)

    def pad64(a):
        return jnp.pad(a, ((0, 0), (0, 64 - a.shape[1])))

    # One lane-aligned (400, 64) slab for every small / sub-(8,128) constant -> 1 DMA.
    params64 = jnp.concatenate([
        w1_pad,                                            # rows   0:256
        pad64(p['w_fc2'].T),                               # rows 256:320
        p['b_fc1'].reshape(1, FC1_OUT),                    # row  320
        pad64(p['b_fc2'].reshape(1, FC2_OUT)),             # row  321
        jnp.zeros((PK_PSSM - 322, 64), f32),               # filler to 328
        pad64(p['blosum'].T),                              # rows 328:348
        jnp.zeros((PK_W2BIG - 348, 64), f32),              # filler to 352
        pad64(w2_big),                                     # rows 352:392
        pad64(b2_row),                                     # row  392
        jnp.zeros((PK_ROWS - 393, 64), f32),               # filler to 400
    ], axis=0)

    return dict(wih_cat1=wih_cat1, whh_bf16=whh_bf16, params64=params64)


# ---------------- pure-JAX reference (mirrors the torch forward) ----------------
def reference_forward(x, p):
    B, S, D = x.shape
    H = HIDDEN

    def run_dir(xs, wih, whh, bih, bhh):
        h = jnp.zeros((B, H), jnp.float32); c = jnp.zeros((B, H), jnp.float32)
        for t in range(S):
            g = xs[:, t] @ wih.T + bih + h @ whh.T + bhh
            i = jax.nn.sigmoid(g[:, :H]); f = jax.nn.sigmoid(g[:, H:2 * H])
            gg = jnp.tanh(g[:, 2 * H:3 * H]); o = jax.nn.sigmoid(g[:, 3 * H:])
            c = f * c + i * gg; h = o * jnp.tanh(c)
        return h

    h_fw = run_dir(x, p['wih_fw'], p['whh_fw'], p['bih_fw'], p['bhh_fw'])
    h_bw = run_dir(x[:, ::-1], p['wih_bw'], p['whh_bw'], p['bih_bw'], p['bhh_bw'])
    lstm_out = jnp.concatenate([h_fw, h_bw], axis=1)

    conv1 = jnp.einsum('cw,bhw->bch', p['blosum'], x)           # (B,20,S)
    R = conv1.reshape(B, (OUT_CH1 * S) // INPUT_SIZE, INPUT_SIZE)
    tot = jnp.sum(x.astype(jnp.int32), axis=(1, 2))
    q = tot // 4
    avs = []
    for b in range(B):
        qb = int(q[b])
        avs.append(R[b, :4 * qb].reshape(4, qb, INPUT_SIZE).mean(axis=1))
    av = jnp.stack(avs)                                          # (B,4,20)

    w2 = p['w2_conv']; b2 = p['b2_conv']
    out2 = jnp.zeros((B, OUT_CH2, 2, INPUT_SIZE // 2), jnp.float32)
    for o in range(OUT_CH2):
        for i in range(2):
            for j in range(INPUT_SIZE // 2):
                s = b2[o]
                for di in range(K2):
                    for dj in range(K2):
                        s = s + av[:, 2 * i + di, 2 * j + dj] * w2[o, 0, di, dj]
                out2 = out2.at[:, o, i, j].set(s)
    out2 = jnp.maximum(out2, 0.0)
    conv_pssm = out2.reshape(B, 100)
    merged = jnp.concatenate([lstm_out, conv_pssm], axis=1)
    h1 = merged @ p['w_fc1'].T + p['b_fc1']
    h2 = h1 @ p['w_fc2'].T + p['b_fc2']
    return jax.nn.softmax(h2, axis=1)


if __name__ == "__main__":
    key = jax.random.PRNGKey(0)
    kx, kp_key = jax.random.split(key)

    # one-hot sequence input; sample 1 gets 4 zero (padding) rows at the end so the
    # data-dependent avblock path is exercised with different widths per sample.
    idx = jax.random.randint(kx, (BATCH, SEQ_LEN), 0, INPUT_SIZE)
    x = jax.nn.one_hot(idx, INPUT_SIZE, dtype=jnp.float32)
    x = x.at[1, 16:, :].set(0.0)          # per-sample sums -> [20, 16]

    raw = init_raw_params(kp_key)
    kparams = to_kernel_params(raw)

    out = jax.jit(bilstm_cnn_forward)(x, kparams)
    out = jax.block_until_ready(out)

    # reference at full f32 matmul precision so any mismatch is attributable to the
    # kernel's bf16 recurrence operands (review correctness concern).
    with jax.default_matmul_precision("float32"):
        ref = reference_forward(x, raw)
    assert out.shape == (BATCH, FC2_OUT)
    assert bool(jnp.allclose(out, ref, rtol=2e-3, atol=2e-3)), (out, ref)
    print("KERNEL_OK")
</pallas_src>

<mosaic_0001>
module attributes {stable_mosaic.version = 11 : i64} {
  func.func @bilstm_cnn_kernel(%arg0: memref<40x41xf32, #tpu.memory_space<vmem>>, %arg1: memref<2x20x20xf32, #tpu.memory_space<vmem>>, %arg2: memref<2x2xf32, #tpu.memory_space<vmem>>, %arg3: memref<41x512xf32, #tpu.memory_space<vmem>>, %arg4: memref<128x512xbf16, #tpu.memory_space<vmem>>, %arg5: memref<400x64xf32, #tpu.memory_space<vmem>>, %arg6: memref<2x2xf32, #tpu.memory_space<vmem>>, %arg7: memref<40x512xf32, #tpu.memory_space<vmem>>) attributes {dimension_semantics = [], scalar_prefetch = 0 : i64, scratch_operands = 1 : i64, tpu.core_type = #tpu.core_type<tc>} {
    %c0 = arith.constant 0 : index
    %c0_0 = arith.constant 0 : index
    %0 = vector.load %arg0[%c0, %c0_0] : memref<40x41xf32, #tpu.memory_space<vmem>>, vector<40x41xf32>
    %c0_1 = arith.constant 0 : index
    %c0_2 = arith.constant 0 : index
    %1 = vector.load %arg3[%c0_1, %c0_2] : memref<41x512xf32, #tpu.memory_space<vmem>>, vector<41x512xf32>
    %cst = arith.constant dense<0.000000e+00> : vector<40x512xf32>
    %2 = tpu.matmul %0, %1, %cst {dimension_numbers = #tpu.dot_dimension_numbers<[1], [0], [0], [1], [0, 0, 1, 1], [], []>} : vector<40x41xf32>, vector<41x512xf32>, vector<40x512xf32> -> vector<40x512xf32>
    %c0_3 = arith.constant 0 : index
    %c0_4 = arith.constant 0 : index
    %3 = vector.load %arg7[%c0_3, %c0_4] : memref<40x512xf32, #tpu.memory_space<vmem>>, vector<40x512xf32>
    tpu.vector_store %arg7[%c0_3, %c0_4], %2 {strides = array<i32>} : memref<40x512xf32, #tpu.memory_space<vmem>>, vector<40x512xf32>,
    %c0_5 = arith.constant 0 : index
    %c0_6 = arith.constant 0 : index
    %4 = vector.load %arg4[%c0_5, %c0_6] : memref<128x512xbf16, #tpu.memory_space<vmem>>, vector<128x512xbf16>
    %cst_7 = arith.constant 0.000000e+00 : f32
    %5 = vector.broadcast %cst_7 : f32 to vector<2x128xf32>
    %cst_8 = arith.constant 0.000000e+00 : f32
    %6 = vector.broadcast %cst_8 : f32 to vector<2x128xf32>
    %c0_9 = arith.constant 0 : index
    %c0_10 = arith.constant 0 : index
    %7 = vector.load %arg7[%c0_9, %c0_10] : memref<40x512xf32, #tpu.memory_space<vmem>>, vector<2x512xf32>
    %8 = arith.truncf %5 : vector<2x128xf32> to vector<2x128xbf16>
    %cst_11 = arith.constant dense<0.000000e+00> : vector<2x512xf32>
    %9 = tpu.matmul %8, %4, %cst_11 {dimension_numbers = #tpu.dot_dimension_numbers<[1], [0], [0], [1], [0, 0, 1, 1], [], []>} : vector<2x128xbf16>, vector<128x512xbf16>, vector<2x512xf32> -> vector<2x512xf32>
    %10 = arith.addf %7, %9 : vector<2x512xf32>
    %11 = vector.extract_strided_slice %10 {offsets = [0, 0], sizes = [2, 384], strides = [1, 1]} : vector<2x512xf32> to vector<2x384xf32>
    %12 = arith.negf %11 : vector<2x384xf32>
    %13 = math.exp %12 : vector<2x384xf32>
    %cst_12 = arith.constant 1.000000e+00 : f32
    %14 = vector.broadcast %cst_12 : f32 to vector<2x384xf32>
    %15 = arith.addf %14, %13 : vector<2x384xf32>
    %16 = arith.divf %14, %15 : vector<2x384xf32>
    %17 = vector.extract_strided_slice %10 {offsets = [0, 384], sizes = [2, 128], strides = [1, 1]} : vector<2x512xf32> to vector<2x128xf32>
    %18 = math.tanh %17 : vector<2x128xf32>
    %19 = vector.extract_strided_slice %16 {offsets = [0, 128], sizes = [2, 128], strides = [1, 1]} : vector<2x384xf32> to vector<2x128xf32>
    %20 = arith.mulf %19, %6 : vector<2x128xf32>
    %21 = vector.extract_strided_slice %16 {offsets = [0, 0], sizes = [2, 128], strides = [1, 1]} : vector<2x384xf32> to vector<2x128xf32>
    %22 = arith.mulf %21, %18 : vector<2x128xf32>
    %23 = arith.addf %20, %22 : vector<2x128xf32>
    %24 = vector.extract_strided_slice %16 {offsets = [0, 256], sizes = [2, 128], strides = [1, 1]} : vector<2x384xf32> to vector<2x128xf32>
    %25 = math.tanh %23 : vector<2x128xf32>
    %26 = arith.mulf %24, %25 : vector<2x128xf32>
    %c2 = arith.constant 2 : index
    %c0_13 = arith.constant 0 : index
    %27 = vector.load %arg7[%c2, %c0_13] : memref<40x512xf32, #tpu.memory_space<vmem>>, vector<2x512xf32>
    %28 = arith.truncf %26 : vector<2x128xf32> to vector<2x128xbf16>
    %cst_14 = arith.constant dense<0.000000e+00> : vector<2x512xf32>
    %29 = tpu.matmul %28, %4, %cst_14 {dimension_numbers = #tpu.dot_dimension_numbers<[1], [0], [0], [1], [0, 0, 1, 1], [], []>} : vector<2x128xbf16>, vector<128x512xbf16>, vector<2x512xf32> -> vector<2x512xf32>
    %30 = arith.addf %27, %29 : vector<2x512xf32>
    %31 = vector.extract_strided_slice %30 {offsets = [0, 0], sizes = [2, 384], strides = [1, 1]} : vector<2x512xf32> to vector<2x384xf32>
    %32 = arith.negf %31 : vector<2x384xf32>
    %33 = math.exp %32 : vector<2x384xf32>
    %cst_15 = arith.constant 1.000000e+00 : f32
    %34 = vector.broadcast %cst_15 : f32 to vector<2x384xf32>
    %35 = arith.addf %34, %33 : vector<2x384xf32>
    %36 = arith.divf %34, %35 : vector<2x384xf32>
    %37 = vector.extract_strided_slice %30 {offsets = [0, 384], sizes = [2, 128], strides = [1, 1]} : vector<2x512xf32> to vector<2x128xf32>
    %38 = math.tanh %37 : vector<2x128xf32>
    %39 = vector.extract_strided_slice %36 {offsets = [0, 128], sizes = [2, 128], strides = [1, 1]} : vector<2x384xf32> to vector<2x128xf32>
    %40 = arith.mulf %39, %23 : vector<2x128xf32>
    %41 = vector.extract_strided_slice %36 {offsets = [0, 0], sizes = [2, 128], strides = [1, 1]} : vector<2x384xf32> to vector<2x128xf32>
    %42 = arith.mulf %41, %38 : vector<2x128xf32>
    %43 = arith.addf %40, %42 : vector<2x128xf32>
    %44 = vector.extract_strided_slice %36 {offsets = [0, 256], sizes = [2, 128], strides = [1, 1]} : vector<2x384xf32> to vector<2x128xf32>
    %45 = math.tanh %43 : vector<2x128xf32>
    %46 = arith.mulf %44, %45 : vector<2x128xf32>
    %c4 = arith.constant 4 : index
    %c0_16 = arith.constant 0 : index
    %47 = vector.load %arg7[%c4, %c0_16] : memref<40x512xf32, #tpu.memory_space<vmem>>, vector<2x512xf32>
    %48 = arith.truncf %46 : vector<2x128xf32> to vector<2x128xbf16>
    %cst_17 = arith.constant dense<0.000000e+00> : vector<2x512xf32>
    %49 = tpu.matmul %48, %4, %cst_17 {dimension_numbers = #tpu.dot_dimension_numbers<[1], [0], [0], [1], [0, 0, 1, 1], [], []>} : vector<2x128xbf16>, vector<128x512xbf16>, vector<2x512xf32> -> vector<2x512xf32>
    %50 = arith.addf %47, %49 : vector<2x512xf32>
    %51 = vector.extract_strided_slice %50 {offsets = [0, 0], sizes = [2, 384], strides = [1, 1]} : vector<2x512xf32> to vector<2x384xf32>
    %52 = arith.negf %51 : vector<2x384xf32>
    %53 = math.exp %52 : vector<2x384xf32>
    %cst_18 = arith.constant 1.000000e+00 : f32
    %54 = vector.broadcast %cst_18 : f32 to vector<2x384xf32>
    %55 = arith.addf %54, %53 : vector<2x384xf32>
    %56 = arith.divf %54, %55 : vector<2x384xf32>
    %57 = vector.extract_strided_slice %50 {offsets = [0, 384], sizes = [2, 128], strides = [1, 1]} : vector<2x512xf32> to vector<2x128xf32>
    %58 = math.tanh %57 : vector<2x128xf32>
    %59 = vector.extract_strided_slice %56 {offsets = [0, 128], sizes = [2, 128], strides = [1, 1]} : vector<2x384xf32> to vector<2x128xf32>
    %60 = arith.mulf %59, %43 : vector<2x128xf32>
    %61 = vector.extract_strided_slice %56 {offsets = [0, 0], sizes = [2, 128], strides = [1, 1]} : vector<2x384xf32> to vector<2x128xf32>
    %62 = arith.mulf %61, %58 : vector<2x128xf32>
    %63 = arith.addf %60, %62 : vector<2x128xf32>
    %64 = vector.extract_strided_slice %56 {offsets = [0, 256], sizes = [2, 128], strides = [1, 1]} : vector<2x384xf32> to vector<2x128xf32>
    %65 = math.tanh %63 : vector<2x128xf32>
    %66 = arith.mulf %64, %65 : vector<2x128xf32>
    %c6 = arith.constant 6 : index
    %c0_19 = arith.constant 0 : index
    %67 = vector.load %arg7[%c6, %c0_19] : memref<40x512xf32, #tpu.memory_space<vmem>>, vector<2x512xf32>
    %68 = arith.truncf %66 : vector<2x128xf32> to vector<2x128xbf16>
    %cst_20 = arith.constant dense<0.000000e+00> : vector<2x512xf32>
    %69 = tpu.matmul %68, %4, %cst_20 {dimension_numbers = #tpu.dot_dimension_numbers<[1], [0], [0], [1], [0, 0, 1, 1], [], []>} : vector<2x128xbf16>, vector<128x512xbf16>, vector<2x512xf32> -> vector<2x512xf32>
    %70 = arith.addf %67, %69 : vector<2x512xf32>
    %71 = vector.extract_strided_slice %70 {offsets = [0, 0], sizes = [2, 384], strides = [1, 1]} : vector<2x512xf32> to vector<2x384xf32>
    %72 = arith.negf %71 : vector<2x384xf32>
    %73 = math.exp %72 : vector<2x384xf32>
    %cst_21 = arith.constant 1.000000e+00 : f32
    %74 = vector.broadcast %cst_21 : f32 to vector<2x384xf32>
    %75 = arith.addf %74, %73 : vector<2x384xf32>
    %76 = arith.divf %74, %75 : vector<2x384xf32>
    %77 = vector.extract_strided_slice %70 {offsets = [0, 384], sizes = [2, 128], strides = [1, 1]} : vector<2x512xf32> to vector<2x128xf32>
    %78 = math.tanh %77 : vector<2x128xf32>
    %79 = vector.extract_strided_slice %76 {offsets = [0, 128], sizes = [2, 128], strides = [1, 1]} : vector<2x384xf32> to vector<2x128xf32>
    %80 = arith.mulf %79, %63 : vector<2x128xf32>
    %81 = vector.extract_strided_slice %76 {offsets = [0, 0], sizes = [2, 128], strides = [1, 1]} : vector<2x384xf32> to vector<2x128xf32>
    %82 = arith.mulf %81, %78 : vector<2x128xf32>
    %83 = arith.addf %80, %82 : vector<2x128xf32>
    %84 = vector.extract_strided_slice %76 {offsets = [0, 256], sizes = [2, 128], strides = [1, 1]} : vector<2x384xf32> to vector<2x128xf32>
    %85 = math.tanh %83 : vector<2x128xf32>
    %86 = arith.mulf %84, %85 : vector<2x128xf32>
    %c8 = arith.constant 8 : index
    %c0_22 = arith.constant 0 : index
    %87 = vector.load %arg7[%c8, %c0_22] : memref<40x512xf32, #tpu.memory_space<vmem>>, vector<2x512xf32>
    %88 = arith.truncf %86 : vector<2x128xf32> to vector<2x128xbf16>
    %cst_23 = arith.constant dense<0.000000e+00> : vector<2x512xf32>
    %89 = tpu.matmul %88, %4, %cst_23 {dimension_numbers = #tpu.dot_dimension_numbers<[1], [0], [0], [1], [0, 0, 1, 1], [], []>} : vector<2x128xbf16>, vector<128x512xbf16>, vector<2x512xf32> -> vector<2x512xf32>
    %90 = arith.addf %87, %89 : vector<2x512xf32>
    %91 = vector.extract_strided_slice %90 {offsets = [0, 0], sizes = [2, 384], strides = [1, 1]} : vector<2x512xf32> to vector<2x384xf32>
    %92 = arith.negf %91 : vector<2x384xf32>
    %93 = math.exp %92 : vector<2x384xf32>
    %cst_24 = arith.constant 1.000000e+00 : f32
    %94 = vector.broadcast %cst_24 : f32 to vector<2x384xf32>
    %95 = arith.addf %94, %93 : vector<2x384xf32>
    %96 = arith.divf %94, %95 : vector<2x384xf32>
    %97 = vector.extract_strided_slice %90 {offsets = [0, 384], sizes = [2, 128], strides = [1, 1]} : vector<2x512xf32> to vector<2x128xf32>
    %98 = math.tanh %97 : vector<2x128xf32>
    %99 = vector.extract_strided_slice %96 {offsets = [0, 128], sizes = [2, 128], strides = [1, 1]} : vector<2x384xf32> to vector<2x128xf32>
    %100 = arith.mulf %99, %83 : vector<2x128xf32>
    %101 = vector.extract_strided_slice %96 {offsets = [0, 0], sizes = [2, 128], strides = [1, 1]} : vector<2x384xf32> to vector<2x128xf32>
    %102 = arith.mulf %101, %98 : vector<2x128xf32>
    %103 = arith.addf %100, %102 : vector<2x128xf32>
    %104 = vector.extract_strided_slice %96 {offsets = [0, 256], sizes = [2, 128], strides = [1, 1]} : vector<2x384xf32> to vector<2x128xf32>
    %105 = math.tanh %103 : vector<2x128xf32>
    %106 = arith.mulf %104, %105 : vector<2x128xf32>
    %c10 = arith.constant 10 : index
    %c0_25 = arith.constant 0 : index
    %107 = vector.load %arg7[%c10, %c0_25] : memref<40x512xf32, #tpu.memory_space<vmem>>, vector<2x512xf32>
    %108 = arith.truncf %106 : vector<2x128xf32> to vector<2x128xbf16>
    %cst_26 = arith.constant dense<0.000000e+00> : vector<2x512xf32>
    %109 = tpu.matmul %108, %4, %cst_26 {dimension_numbers = #tpu.dot_dimension_numbers<[1], [0], [0], [1], [0, 0, 1, 1], [], []>} : vector<2x128xbf16>, vector<128x512xbf16>, vector<2x512xf32> -> vector<2x512xf32>
    %110 = arith.addf %107, %109 : vector<2x512xf32>
    %111 = vector.extract_strided_slice %110 {offsets = [0, 0], sizes = [2, 384], strides = [1, 1]} : vector<2x512xf32> to vector<2x384xf32>
    %112 = arith.negf %111 : vector<2x384xf32>
    %113 = math.exp %112 : vector<2x384xf32>
    %cst_27 = arith.constant 1.000000e+00 : f32
    %114 = vector.broadcast %cst_27 : f32 to vector<2x384xf32>
    %115 = arith.addf %114, %113 : vector<2x384xf32>
    %116 = arith.divf %114, %115 : vector<2x384xf32>
    %117 = vector.extract_strided_slice %110 {offsets = [0, 384], sizes = [2, 128], strides = [1, 1]} : vector<2x512xf32> to vector<2x128xf32>
    %118 = math.tanh %117 : vector<2x128xf32>
    %119 = vector.extract_strided_slice %116 {offsets = [0, 128], sizes = [2, 128], strides = [1, 1]} : vector<2x384xf32> to vector<2x128xf32>
    %120 = arith.mulf %119, %103 : vector<2x128xf32>
    %121 = vector.extract_strided_slice %116 {offsets = [0, 0], sizes = [2, 128], strides = [1, 1]} : vector<2x384xf32> to vector<2x128xf32>
    %122 = arith.mulf %121, %118 : vector<2x128xf32>
    %123 = arith.addf %120, %122 : vector<2x128xf32>
    %124 = vector.extract_strided_slice %116 {offsets = [0, 256], sizes = [2, 128], strides = [1, 1]} : vector<2x384xf32> to vector<2x128xf32>
    %125 = math.tanh %123 : vector<2x128xf32>
    %126 = arith.mulf %124, %125 : vector<2x128xf32>
    %c12 = arith.constant 12 : index
    %c0_28 = arith.constant 0 : index
    %127 = vector.load %arg7[%c12, %c0_28] : memref<40x512xf32, #tpu.memory_space<vmem>>, vector<2x512xf32>
    %128 = arith.truncf %126 : vector<2x128xf32> to vector<2x128xbf16>
    %cst_29 = arith.constant dense<0.000000e+00> : vector<2x512xf32>
    %129 = tpu.matmul %128, %4, %cst_29 {dimension_numbers = #tpu.dot_dimension_numbers<[1], [0], [0], [1], [0, 0, 1, 1], [], []>} : vector<2x128xbf16>, vector<128x512xbf16>, vector<2x512xf32> -> vector<2x512xf32>
    %130 = arith.addf %127, %129 : vector<2x512xf32>
    %131 = vector.extract_strided_slice %130 {offsets = [0, 0], sizes = [2, 384], strides = [1, 1]} : vector<2x512xf32> to vector<2x384xf32>
    %132 = arith.negf %131 : vector<2x384xf32>
    %133 = math.exp %132 : vector<2x384xf32>
    %cst_30 = arith.constant 1.000000e+00 : f32
    %134 = vector.broadcast %cst_30 : f32 to vector<2x384xf32>
    %135 = arith.addf %134, %133 : vector<2x384xf32>
    %136 = arith.divf %134, %135 : vector<2x384xf32>
    %137 = vector.extract_strided_slice %130 {offsets = [0, 384], sizes = [2, 128], strides = [1, 1]} : vector<2x512xf32> to vector<2x128xf32>
    %138 = math.tanh %137 : vector<2x128xf32>
    %139 = vector.extract_strided_slice %136 {offsets = [0, 128], sizes = [2, 128], strides = [1, 1]} : vector<2x384xf32> to vector<2x128xf32>
    %140 = arith.mulf %139, %123 : vector<2x128xf32>
    %141 = vector.extract_strided_slice %136 {offsets = [0, 0], sizes = [2, 128], strides = [1, 1]} : vector<2x384xf32> to vector<2x128xf32>
    %142 = arith.mulf %141, %138 : vector<2x128xf32>
    %143 = arith.addf %140, %142 : vector<2x128xf32>
    %144 = vector.extract_strided_slice %136 {offsets = [0, 256], sizes = [2, 128], strides = [1, 1]} : vector<2x384xf32> to vector<2x128xf32>
    %145 = math.tanh %143 : vector<2x128xf32>
    %146 = arith.mulf %144, %145 : vector<2x128xf32>
    %c14 = arith.constant 14 : index
    %c0_31 = arith.constant 0 : index
    %147 = vector.load %arg7[%c14, %c0_31] : memref<40x512xf32, #tpu.memory_space<vmem>>, vector<2x512xf32>
    %148 = arith.truncf %146 : vector<2x128xf32> to vector<2x128xbf16>
    %cst_32 = arith.constant dense<0.000000e+00> : vector<2x512xf32>
    %149 = tpu.matmul %148, %4, %cst_32 {dimension_numbers = #tpu.dot_dimension_numbers<[1], [0], [0], [1], [0, 0, 1, 1], [], []>} : vector<2x128xbf16>, vector<128x512xbf16>, vector<2x512xf32> -> vector<2x512xf32>
    %150 = arith.addf %147, %149 : vector<2x512xf32>
    %151 = vector.extract_strided_slice %150 {offsets = [0, 0], sizes = [2, 384], strides = [1, 1]} : vector<2x512xf32> to vector<2x384xf32>
    %152 = arith.negf %151 : vector<2x384xf32>
    %153 = math.exp %152 : vector<2x384xf32>
    %cst_33 = arith.constant 1.000000e+00 : f32
    %154 = vector.broadcast %cst_33 : f32 to vector<2x384xf32>
    %155 = arith.addf %154, %153 : vector<2x384xf32>
    %156 = arith.divf %154, %155 : vector<2x384xf32>
    %157 = vector.extract_strided_slice %150 {offsets = [0, 384], sizes = [2, 128], strides = [1, 1]} : vector<2x512xf32> to vector<2x128xf32>
    %158 = math.tanh %157 : vector<2x128xf32>
    %159 = vector.extract_strided_slice %156 {offsets = [0, 128], sizes = [2, 128], strides = [1, 1]} : vector<2x384xf32> to vector<2x128xf32>
    %160 = arith.mulf %159, %143 : vector<2x128xf32>
    %161 = vector.extract_strided_slice %156 {offsets = [0, 0], sizes = [2, 128], strides = [1, 1]} : vector<2x384xf32> to vector<2x128xf32>
    %162 = arith.mulf %161, %158 : vector<2x128xf32>
    %163 = arith.addf %160, %162 : vector<2x128xf32>
    %164 = vector.extract_strided_slice %156 {offsets = [0, 256], sizes = [2, 128], strides = [1, 1]} : vector<2x384xf32> to vector<2x128xf32>
    %165 = math.tanh %163 : vector<2x128xf32>
    %166 = arith.mulf %164, %165 : vector<2x128xf32>
    %c16 = arith.constant 16 : index
    %c0_34 = arith.constant 0 : index
    %167 = vector.load %arg7[%c16, %c0_34] : memref<40x512xf32, #tpu.memory_space<vmem>>, vector<2x512xf32>
    %168 = arith.truncf %166 : vector<2x128xf32> to vector<2x128xbf16>
    %cst_35 = arith.constant dense<0.000000e+00> : vector<2x512xf32>
    %169 = tpu.matmul %168, %4, %cst_35 {dimension_numbers = #tpu.dot_dimension_numbers<[1], [0], [0], [1], [0, 0, 1, 1], [], []>} : vector<2x128xbf16>, vector<128x512xbf16>, vector<2x512xf32> -> vector<2x512xf32>
    %170 = arith.addf %167, %169 : vector<2x512xf32>
    %171 = vector.extract_strided_slice %170 {offsets = [0, 0], sizes = [2, 384], strides = [1, 1]} : vector<2x512xf32> to vector<2x384xf32>
    %172 = arith.negf %171 : vector<2x384xf32>
    %173 = math.exp %172 : vector<2x384xf32>
    %cst_36 = arith.constant 1.000000e+00 : f32
    %174 = vector.broadcast %cst_36 : f32 to vector<2x384xf32>
    %175 = arith.addf %174, %173 : vector<2x384xf32>
    %176 = arith.divf %174, %175 : vector<2x384xf32>
    %177 = vector.extract_strided_slice %170 {offsets = [0, 384], sizes = [2, 128], strides = [1, 1]} : vector<2x512xf32> to vector<2x128xf32>
    %178 = math.tanh %177 : vector<2x128xf32>
    %179 = vector.extract_strided_slice %176 {offsets = [0, 128], sizes = [2, 128], strides = [1, 1]} : vector<2x384xf32> to vector<2x128xf32>
    %180 = arith.mulf %179, %163 : vector<2x128xf32>
    %181 = vector.extract_strided_slice %176 {offsets = [0, 0], sizes = [2, 128], strides = [1, 1]} : vector<2x384xf32> to vector<2x128xf32>
    %182 = arith.mulf %181, %178 : vector<2x128xf32>
    %183 = arith.addf %180, %182 : vector<2x128xf32>
    %184 = vector.extract_strided_slice %176 {offsets = [0, 256], sizes = [2, 128], strides = [1, 1]} : vector<2x384xf32> to vector<2x128xf32>
    %185 = math.tanh %183 : vector<2x128xf32>
    %186 = arith.mulf %184, %185 : vector<2x128xf32>
    %c18 = arith.constant 18 : index
    %c0_37 = arith.constant 0 : index
    %187 = vector.load %arg7[%c18, %c0_37] : memref<40x512xf32, #tpu.memory_space<vmem>>, vector<2x512xf32>
    %188 = arith.truncf %186 : vector<2x128xf32> to vector<2x128xbf16>
    %cst_38 = arith.constant dense<0.000000e+00> : vector<2x512xf32>
    %189 = tpu.matmul %188, %4, %cst_38 {dimension_numbers = #tpu.dot_dimension_numbers<[1], [0], [0], [1], [0, 0, 1, 1], [], []>} : vector<2x128xbf16>, vector<128x512xbf16>, vector<2x512xf32> -> vector<2x512xf32>
    %190 = arith.addf %187, %189 : vector<2x512xf32>
    %191 = vector.extract_strided_slice %190 {offsets = [0, 0], sizes = [2, 384], strides = [1, 1]} : vector<2x512xf32> to vector<2x384xf32>
    %192 = arith.negf %191 : vector<2x384xf32>
    %193 = math.exp %192 : vector<2x384xf32>
    %cst_39 = arith.constant 1.000000e+00 : f32
    %194 = vector.broadcast %cst_39 : f32 to vector<2x384xf32>
    %195 = arith.addf %194, %193 : vector<2x384xf32>
    %196 = arith.divf %194, %195 : vector<2x384xf32>
    %197 = vector.extract_strided_slice %190 {offsets = [0, 384], sizes = [2, 128], strides = [1, 1]} : vector<2x512xf32> to vector<2x128xf32>
    %198 = math.tanh %197 : vector<2x128xf32>
    %199 = vector.extract_strided_slice %196 {offsets = [0, 128], sizes = [2, 128], strides = [1, 1]} : vector<2x384xf32> to vector<2x128xf32>
    %200 = arith.mulf %199, %183 : vector<2x128xf32>
    %201 = vector.extract_strided_slice %196 {offsets = [0, 0], sizes = [2, 128], strides = [1, 1]} : vector<2x384xf32> to vector<2x128xf32>
    %202 = arith.mulf %201, %198 : vector<2x128xf32>
    %203 = arith.addf %200, %202 : vector<2x128xf32>
    %204 = vector.extract_strided_slice %196 {offsets = [0, 256], sizes = [2, 128], strides = [1, 1]} : vector<2x384xf32> to vector<2x128xf32>
    %205 = math.tanh %203 : vector<2x128xf32>
    %206 = arith.mulf %204, %205 : vector<2x128xf32>
    %c20 = arith.constant 20 : index
    %c0_40 = arith.constant 0 : index
    %207 = vector.load %arg7[%c20, %c0_40] : memref<40x512xf32, #tpu.memory_space<vmem>>, vector<2x512xf32>
    %208 = arith.truncf %206 : vector<2x128xf32> to vector<2x128xbf16>
    %cst_41 = arith.constant dense<0.000000e+00> : vector<2x512xf32>
    %209 = tpu.matmul %208, %4, %cst_41 {dimension_numbers = #tpu.dot_dimension_numbers<[1], [0], [0], [1], [0, 0, 1, 1], [], []>} : vector<2x128xbf16>, vector<128x512xbf16>, vector<2x512xf32> -> vector<2x512xf32>
    %210 = arith.addf %207, %209 : vector<2x512xf32>
    %211 = vector.extract_strided_slice %210 {offsets = [0, 0], sizes = [2, 384], strides = [1, 1]} : vector<2x512xf32> to vector<2x384xf32>
    %212 = arith.negf %211 : vector<2x384xf32>
    %213 = math.exp %212 : vector<2x384xf32>
    %cst_42 = arith.constant 1.000000e+00 : f32
    %214 = vector.broadcast %cst_42 : f32 to vector<2x384xf32>
    %215 = arith.addf %214, %213 : vector<2x384xf32>
    %216 = arith.divf %214, %215 : vector<2x384xf32>
    %217 = vector.extract_strided_slice %210 {offsets = [0, 384], sizes = [2, 128], strides = [1, 1]} : vector<2x512xf32> to vector<2x128xf32>
    %218 = math.tanh %217 : vector<2x128xf32>
    %219 = vector.extract_strided_slice %216 {offsets = [0, 128], sizes = [2, 128], strides = [1, 1]} : vector<2x384xf32> to vector<2x128xf32>
    %220 = arith.mulf %219, %203 : vector<2x128xf32>
    %221 = vector.extract_strided_slice %216 {offsets = [0, 0], sizes = [2, 128], strides = [1, 1]} : vector<2x384xf32> to vector<2x128xf32>
    %222 = arith.mulf %221, %218 : vector<2x128xf32>
    %223 = arith.addf %220, %222 : vector<2x128xf32>
    %224 = vector.extract_strided_slice %216 {offsets = [0, 256], sizes = [2, 128], strides = [1, 1]} : vector<2x384xf32> to vector<2x128xf32>
    %225 = math.tanh %223 : vector<2x128xf32>
    %226 = arith.mulf %224, %225 : vector<2x128xf32>
    %c22 = arith.constant 22 : index
    %c0_43 = arith.constant 0 : index
    %227 = vector.load %arg7[%c22, %c0_43] : memref<40x512xf32, #tpu.memory_space<vmem>>, vector<2x512xf32>
    %228 = arith.truncf %226 : vector<2x128xf32> to vector<2x128xbf16>
    %cst_44 = arith.constant dense<0.000000e+00> : vector<2x512xf32>
    %229 = tpu.matmul %228, %4, %cst_44 {dimension_numbers = #tpu.dot_dimension_numbers<[1], [0], [0], [1], [0, 0, 1, 1], [], []>} : vector<2x128xbf16>, vector<128x512xbf16>, vector<2x512xf32> -> vector<2x512xf32>
    %230 = arith.addf %227, %229 : vector<2x512xf32>
    %231 = vector.extract_strided_slice %230 {offsets = [0, 0], sizes = [2, 384], strides = [1, 1]} : vector<2x512xf32> to vector<2x384xf32>
    %232 = arith.negf %231 : vector<2x384xf32>
    %233 = math.exp %232 : vector<2x384xf32>
    %cst_45 = arith.constant 1.000000e+00 : f32
    %234 = vector.broadcast %cst_45 : f32 to vector<2x384xf32>
    %235 = arith.addf %234, %233 : vector<2x384xf32>
    %236 = arith.divf %234, %235 : vector<2x384xf32>
    %237 = vector.extract_strided_slice %230 {offsets = [0, 384], sizes = [2, 128], strides = [1, 1]} : vector<2x512xf32> to vector<2x128xf32>
    %238 = math.tanh %237 : vector<2x128xf32>
    %239 = vector.extract_strided_slice %236 {offsets = [0, 128], sizes = [2, 128], strides = [1, 1]} : vector<2x384xf32> to vector<2x128xf32>
    %240 = arith.mulf %239, %223 : vector<2x128xf32>
    %241 = vector.extract_strided_slice %236 {offsets = [0, 0], sizes = [2, 128], strides = [1, 1]} : vector<2x384xf32> to vector<2x128xf32>
    %242 = arith.mulf %241, %238 : vector<2x128xf32>
    %243 = arith.addf %240, %242 : vector<2x128xf32>
    %244 = vector.extract_strided_slice %236 {offsets = [0, 256], sizes = [2, 128], strides = [1, 1]} : vector<2x384xf32> to vector<2x128xf32>
    %245 = math.tanh %243 : vector<2x128xf32>
    %246 = arith.mulf %244, %245 : vector<2x128xf32>
    %c24 = arith.constant 24 : index
    %c0_46 = arith.constant 0 : index
    %247 = vector.load %arg7[%c24, %c0_46] : memref<40x512xf32, #tpu.memory_space<vmem>>, vector<2x512xf32>
    %248 = arith.truncf %246 : vector<2x128xf32> to vector<2x128xbf16>
    %cst_47 = arith.constant dense<0.000000e+00> : vector<2x512xf32>
    %249 = tpu.matmul %248, %4, %cst_47 {dimension_numbers = #tpu.dot_dimension_numbers<[1], [0], [0], [1], [0, 0, 1, 1], [], []>} : vector<2x128xbf16>, vector<128x512xbf16>, vector<2x512xf32> -> vector<2x512xf32>
    %250 = arith.addf %247, %249 : vector<2x512xf32>
    %251 = vector.extract_strided_slice %250 {offsets = [0, 0], sizes = [2, 384], strides = [1, 1]} : vector<2x512xf32> to vector<2x384xf32>
    %252 = arith.negf %251 : vector<2x384xf32>
    %253 = math.exp %252 : vector<2x384xf32>
    %cst_48 = arith.constant 1.000000e+00 : f32
    %254 = vector.broadcast %cst_48 : f32 to vector<2x384xf32>
    %255 = arith.addf %254, %253 : vector<2x384xf32>
    %256 = arith.divf %254, %255 : vector<2x384xf32>
    %257 = vector.extract_strided_slice %250 {offsets = [0, 384], sizes = [2, 128], strides = [1, 1]} : vector<2x512xf32> to vector<2x128xf32>
    %258 = math.tanh %257 : vector<2x128xf32>
    %259 = vector.extract_strided_slice %256 {offsets = [0, 128], sizes = [2, 128], strides = [1, 1]} : vector<2x384xf32> to vector<2x128xf32>
    %260 = arith.mulf %259, %243 : vector<2x128xf32>
    %261 = vector.extract_strided_slice %256 {offsets = [0, 0], sizes = [2, 128], strides = [1, 1]} : vector<2x384xf32> to vector<2x128xf32>
    %262 = arith.mulf %261, %258 : vector<2x128xf32>
    %263 = arith.addf %260, %262 : vector<2x128xf32>
    %264 = vector.extract_strided_slice %256 {offsets = [0, 256], sizes = [2, 128], strides = [1, 1]} : vector<2x384xf32> to vector<2x128xf32>
    %265 = math.tanh %263 : vector<2x128xf32>
    %266 = arith.mulf %264, %265 : vector<2x128xf32>
    %c26 = arith.constant 26 : index
    %c0_49 = arith.constant 0 : index
    %267 = vector.load %arg7[%c26, %c0_49] : memref<40x512xf32, #tpu.memory_space<vmem>>, vector<2x512xf32>
    %268 = arith.truncf %266 : vector<2x128xf32> to vector<2x128xbf16>
    %cst_50 = arith.constant dense<0.000000e+00> : vector<2x512xf32>
    %269 = tpu.matmul %268, %4, %cst_50 {dimension_numbers = #tpu.dot_dimension_numbers<[1], [0], [0], [1], [0, 0, 1, 1], [], []>} : vector<2x128xbf16>, vector<128x512xbf16>, vector<2x512xf32> -> vector<2x512xf32>
    %270 = arith.addf %267, %269 : vector<2x512xf32>
    %271 = vector.extract_strided_slice %270 {offsets = [0, 0], sizes = [2, 384], strides = [1, 1]} : vector<2x512xf32> to vector<2x384xf32>
    %272 = arith.negf %271 : vector<2x384xf32>
    %273 = math.exp %272 : vector<2x384xf32>
    %cst_51 = arith.constant 1.000000e+00 : f32
    %274 = vector.broadcast %cst_51 : f32 to vector<2x384xf32>
    %275 = arith.addf %274, %273 : vector<2x384xf32>
    %276 = arith.divf %274, %275 : vector<2x384xf32>
    %277 = vector.extract_strided_slice %270 {offsets = [0, 384], sizes = [2, 128], strides = [1, 1]} : vector<2x512xf32> to vector<2x128xf32>
    %278 = math.tanh %277 : vector<2x128xf32>
    %279 = vector.extract_strided_slice %276 {offsets = [0, 128], sizes = [2, 128], strides = [1, 1]} : vector<2x384xf32> to vector<2x128xf32>
    %280 = arith.mulf %279, %263 : vector<2x128xf32>
    %281 = vector.extract_strided_slice %276 {offsets = [0, 0], sizes = [2, 128], strides = [1, 1]} : vector<2x384xf32> to vector<2x128xf32>
    %282 = arith.mulf %281, %278 : vector<2x128xf32>
    %283 = arith.addf %280, %282 : vector<2x128xf32>
    %284 = vector.extract_strided_slice %276 {offsets = [0, 256], sizes = [2, 128], strides = [1, 1]} : vector<2x384xf32> to vector<2x128xf32>
    %285 = math.tanh %283 : vector<2x128xf32>
    %286 = arith.mulf %284, %285 : vector<2x128xf32>
    %c28 = arith.constant 28 : index
    %c0_52 = arith.constant 0 : index
    %287 = vector.load %arg7[%c28, %c0_52] : memref<40x512xf32, #tpu.memory_space<vmem>>, vector<2x512xf32>
    %288 = arith.truncf %286 : vector<2x128xf32> to vector<2x128xbf16>
    %cst_53 = arith.constant dense<0.000000e+00> : vector<2x512xf32>
    %289 = tpu.matmul %288, %4, %cst_53 {dimension_numbers = #tpu.dot_dimension_numbers<[1], [0], [0], [1], [0, 0, 1, 1], [], []>} : vector<2x128xbf16>, vector<128x512xbf16>, vector<2x512xf32> -> vector<2x512xf32>
    %290 = arith.addf %287, %289 : vector<2x512xf32>
    %291 = vector.extract_strided_slice %290 {offsets = [0, 0], sizes = [2, 384], strides = [1, 1]} : vector<2x512xf32> to vector<2x384xf32>
    %292 = arith.negf %291 : vector<2x384xf32>
    %293 = math.exp %292 : vector<2x384xf32>
    %cst_54 = arith.constant 1.000000e+00 : f32
    %294 = vector.broadcast %cst_54 : f32 to vector<2x384xf32>
    %295 = arith.addf %294, %293 : vector<2x384xf32>
    %296 = arith.divf %294, %295 : vector<2x384xf32>
    %297 = vector.extract_strided_slice %290 {offsets = [0, 384], sizes = [2, 128], strides = [1, 1]} : vector<2x512xf32> to vector<2x128xf32>
    %298 = math.tanh %297 : vector<2x128xf32>
    %299 = vector.extract_strided_slice %296 {offsets = [0, 128], sizes = [2, 128], strides = [1, 1]} : vector<2x384xf32> to vector<2x128xf32>
    %300 = arith.mulf %299, %283 : vector<2x128xf32>
    %301 = vector.extract_strided_slice %296 {offsets = [0, 0], sizes = [2, 128], strides = [1, 1]} : vector<2x384xf32> to vector<2x128xf32>
    %302 = arith.mulf %301, %298 : vector<2x128xf32>
    %303 = arith.addf %300, %302 : vector<2x128xf32>
    %304 = vector.extract_strided_slice %296 {offsets = [0, 256], sizes = [2, 128], strides = [1, 1]} : vector<2x384xf32> to vector<2x128xf32>
    %305 = math.tanh %303 : vector<2x128xf32>
    %306 = arith.mulf %304, %305 : vector<2x128xf32>
    %c30 = arith.constant 30 : index
    %c0_55 = arith.constant 0 : index
    %307 = vector.load %arg7[%c30, %c0_55] : memref<40x512xf32, #tpu.memory_space<vmem>>, vector<2x512xf32>
    %308 = arith.truncf %306 : vector<2x128xf32> to vector<2x128xbf16>
    %cst_56 = arith.constant dense<0.000000e+00> : vector<2x512xf32>
    %309 = tpu.matmul %308, %4, %cst_56 {dimension_numbers = #tpu.dot_dimension_numbers<[1], [0], [0], [1], [0, 0, 1, 1], [], []>} : vector<2x128xbf16>, vector<128x512xbf16>, vector<2x512xf32> -> vector<2x512xf32>
    %310 = arith.addf %307, %309 : vector<2x512xf32>
    %311 = vector.extract_strided_slice %310 {offsets = [0, 0], sizes = [2, 384], strides = [1, 1]} : vector<2x512xf32> to vector<2x384xf32>
    %312 = arith.negf %311 : vector<2x384xf32>
    %313 = math.exp %312 : vector<2x384xf32>
    %cst_57 = arith.constant 1.000000e+00 : f32
    %314 = vector.broadcast %cst_57 : f32 to vector<2x384xf32>
    %315 = arith.addf %314, %313 : vector<2x384xf32>
    %316 = arith.divf %314, %315 : vector<2x384xf32>
    %317 = vector.extract_strided_slice %310 {offsets = [0, 384], sizes = [2, 128], strides = [1, 1]} : vector<2x512xf32> to vector<2x128xf32>
    %318 = math.tanh %317 : vector<2x128xf32>
    %319 = vector.extract_strided_slice %316 {offsets = [0, 128], sizes = [2, 128], strides = [1, 1]} : vector<2x384xf32> to vector<2x128xf32>
    %320 = arith.mulf %319, %303 : vector<2x128xf32>
    %321 = vector.extract_strided_slice %316 {offsets = [0, 0], sizes = [2, 128], strides = [1, 1]} : vector<2x384xf32> to vector<2x128xf32>
    %322 = arith.mulf %321, %318 : vector<2x128xf32>
    %323 = arith.addf %320, %322 : vector<2x128xf32>
    %324 = vector.extract_strided_slice %316 {offsets = [0, 256], sizes = [2, 128], strides = [1, 1]} : vector<2x384xf32> to vector<2x128xf32>
    %325 = math.tanh %323 : vector<2x128xf32>
    %326 = arith.mulf %324, %325 : vector<2x128xf32>
    %c32 = arith.constant 32 : index
    %c0_58 = arith.constant 0 : index
    %327 = vector.load %arg7[%c32, %c0_58] : memref<40x512xf32, #tpu.memory_space<vmem>>, vector<2x512xf32>
    %328 = arith.truncf %326 : vector<2x128xf32> to vector<2x128xbf16>
    %cst_59 = arith.constant dense<0.000000e+00> : vector<2x512xf32>
    %329 = tpu.matmul %328, %4, %cst_59 {dimension_numbers = #tpu.dot_dimension_numbers<[1], [0], [0], [1], [0, 0, 1, 1], [], []>} : vector<2x128xbf16>, vector<128x512xbf16>, vector<2x512xf32> -> vector<2x512xf32>
    %330 = arith.addf %327, %329 : vector<2x512xf32>
    %331 = vector.extract_strided_slice %330 {offsets = [0, 0], sizes = [2, 384], strides = [1, 1]} : vector<2x512xf32> to vector<2x384xf32>
    %332 = arith.negf %331 : vector<2x384xf32>
    %333 = math.exp %332 : vector<2x384xf32>
    %cst_60 = arith.constant 1.000000e+00 : f32
    %334 = vector.broadcast %cst_60 : f32 to vector<2x384xf32>
    %335 = arith.addf %334, %333 : vector<2x384xf32>
    %336 = arith.divf %334, %335 : vector<2x384xf32>
    %337 = vector.extract_strided_slice %330 {offsets = [0, 384], sizes = [2, 128], strides = [1, 1]} : vector<2x512xf32> to vector<2x128xf32>
    %338 = math.tanh %337 : vector<2x128xf32>
    %339 = vector.extract_strided_slice %336 {offsets = [0, 128], sizes = [2, 128], strides = [1, 1]} : vector<2x384xf32> to vector<2x128xf32>
    %340 = arith.mulf %339, %323 : vector<2x128xf32>
    %341 = vector.extract_strided_slice %336 {offsets = [0, 0], sizes = [2, 128], strides = [1, 1]} : vector<2x384xf32> to vector<2x128xf32>
    %342 = arith.mulf %341, %338 : vector<2x128xf32>
    %343 = arith.addf %340, %342 : vector<2x128xf32>
    %344 = vector.extract_strided_slice %336 {offsets = [0, 256], sizes = [2, 128], strides = [1, 1]} : vector<2x384xf32> to vector<2x128xf32>
    %345 = math.tanh %343 : vector<2x128xf32>
    %346 = arith.mulf %344, %345 : vector<2x128xf32>
    %c34 = arith.constant 34 : index
    %c0_61 = arith.constant 0 : index
    %347 = vector.load %arg7[%c34, %c0_61] : memref<40x512xf32, #tpu.memory_space<vmem>>, vector<2x512xf32>
    %348 = arith.truncf %346 : vector<2x128xf32> to vector<2x128xbf16>
    %cst_62 = arith.constant dense<0.000000e+00> : vector<2x512xf32>
    %349 = tpu.matmul %348, %4, %cst_62 {dimension_numbers = #tpu.dot_dimension_numbers<[1], [0], [0], [1], [0, 0, 1, 1], [], []>} : vector<2x128xbf16>, vector<128x512xbf16>, vector<2x512xf32> -> vector<2x512xf32>
    %350 = arith.addf %347, %349 : vector<2x512xf32>
    %351 = vector.extract_strided_slice %350 {offsets = [0, 0], sizes = [2, 384], strides = [1, 1]} : vector<2x512xf32> to vector<2x384xf32>
    %352 = arith.negf %351 : vector<2x384xf32>
    %353 = math.exp %352 : vector<2x384xf32>
    %cst_63 = arith.constant 1.000000e+00 : f32
    %354 = vector.broadcast %cst_63 : f32 to vector<2x384xf32>
    %355 = arith.addf %354, %353 : vector<2x384xf32>
    %356 = arith.divf %354, %355 : vector<2x384xf32>
    %357 = vector.extract_strided_slice %350 {offsets = [0, 384], sizes = [2, 128], strides = [1, 1]} : vector<2x512xf32> to vector<2x128xf32>
    %358 = math.tanh %357 : vector<2x128xf32>
    %359 = vector.extract_strided_slice %356 {offsets = [0, 128], sizes = [2, 128], strides = [1, 1]} : vector<2x384xf32> to vector<2x128xf32>
    %360 = arith.mulf %359, %343 : vector<2x128xf32>
    %361 = vector.extract_strided_slice %356 {offsets = [0, 0], sizes = [2, 128], strides = [1, 1]} : vector<2x384xf32> to vector<2x128xf32>
    %362 = arith.mulf %361, %358 : vector<2x128xf32>
    %363 = arith.addf %360, %362 : vector<2x128xf32>
    %364 = vector.extract_strided_slice %356 {offsets = [0, 256], sizes = [2, 128], strides = [1, 1]} : vector<2x384xf32> to vector<2x128xf32>
    %365 = math.tanh %363 : vector<2x128xf32>
    %366 = arith.mulf %364, %365 : vector<2x128xf32>
    %c36 = arith.constant 36 : index
    %c0_64 = arith.constant 0 : index
    %367 = vector.load %arg7[%c36, %c0_64] : memref<40x512xf32, #tpu.memory_space<vmem>>, vector<2x512xf32>
    %368 = arith.truncf %366 : vector<2x128xf32> to vector<2x128xbf16>
    %cst_65 = arith.constant dense<0.000000e+00> : vector<2x512xf32>
    %369 = tpu.matmul %368, %4, %cst_65 {dimension_numbers = #tpu.dot_dimension_numbers<[1], [0], [0], [1], [0, 0, 1, 1], [], []>} : vector<2x128xbf16>, vector<128x512xbf16>, vector<2x512xf32> -> vector<2x512xf32>
    %370 = arith.addf %367, %369 : vector<2x512xf32>
    %371 = vector.extract_strided_slice %370 {offsets = [0, 0], sizes = [2, 384], strides = [1, 1]} : vector<2x512xf32> to vector<2x384xf32>
    %372 = arith.negf %371 : vector<2x384xf32>
    %373 = math.exp %372 : vector<2x384xf32>
    %cst_66 = arith.constant 1.000000e+00 : f32
    %374 = vector.broadcast %cst_66 : f32 to vector<2x384xf32>
    %375 = arith.addf %374, %373 : vector<2x384xf32>
    %376 = arith.divf %374, %375 : vector<2x384xf32>
    %377 = vector.extract_strided_slice %370 {offsets = [0, 384], sizes = [2, 128], strides = [1, 1]} : vector<2x512xf32> to vector<2x128xf32>
    %378 = math.tanh %377 : vector<2x128xf32>
    %379 = vector.extract_strided_slice %376 {offsets = [0, 128], sizes = [2, 128], strides = [1, 1]} : vector<2x384xf32> to vector<2x128xf32>
    %380 = arith.mulf %379, %363 : vector<2x128xf32>
    %381 = vector.extract_strided_slice %376 {offsets = [0, 0], sizes = [2, 128], strides = [1, 1]} : vector<2x384xf32> to vector<2x128xf32>
    %382 = arith.mulf %381, %378 : vector<2x128xf32>
    %383 = arith.addf %380, %382 : vector<2x128xf32>
    %384 = vector.extract_strided_slice %376 {offsets = [0, 256], sizes = [2, 128], strides = [1, 1]} : vector<2x384xf32> to vector<2x128xf32>
    %385 = math.tanh %383 : vector<2x128xf32>
    %386 = arith.mulf %384, %385 : vector<2x128xf32>
    %c38 = arith.constant 38 : index
    %c0_67 = arith.constant 0 : index
    %387 = vector.load %arg7[%c38, %c0_67] : memref<40x512xf32, #tpu.memory_space<vmem>>, vector<2x512xf32>
    %388 = arith.truncf %386 : vector<2x128xf32> to vector<2x128xbf16>
    %cst_68 = arith.constant dense<0.000000e+00> : vector<2x512xf32>
    %389 = tpu.matmul %388, %4, %cst_68 {dimension_numbers = #tpu.dot_dimension_numbers<[1], [0], [0], [1], [0, 0, 1, 1], [], []>} : vector<2x128xbf16>, vector<128x512xbf16>, vector<2x512xf32> -> vector<2x512xf32>
    %390 = arith.addf %387, %389 : vector<2x512xf32>
    %391 = vector.extract_strided_slice %390 {offsets = [0, 0], sizes = [2, 384], strides = [1, 1]} : vector<2x512xf32> to vector<2x384xf32>
    %392 = arith.negf %391 : vector<2x384xf32>
    %393 = math.exp %392 : vector<2x384xf32>
    %cst_69 = arith.constant 1.000000e+00 : f32
    %394 = vector.broadcast %cst_69 : f32 to vector<2x384xf32>
    %395 = arith.addf %394, %393 : vector<2x384xf32>
    %396 = arith.divf %394, %395 : vector<2x384xf32>
    %397 = vector.extract_strided_slice %390 {offsets = [0, 384], sizes = [2, 128], strides = [1, 1]} : vector<2x512xf32> to vector<2x128xf32>
    %398 = math.tanh %397 : vector<2x128xf32>
    %399 = vector.extract_strided_slice %396 {offsets = [0, 128], sizes = [2, 128], strides = [1, 1]} : vector<2x384xf32> to vector<2x128xf32>
    %400 = arith.mulf %399, %383 : vector<2x128xf32>
    %401 = vector.extract_strided_slice %396 {offsets = [0, 0], sizes = [2, 128], strides = [1, 1]} : vector<2x384xf32> to vector<2x128xf32>
    %402 = arith.mulf %401, %398 : vector<2x128xf32>
    %403 = arith.addf %400, %402 : vector<2x128xf32>
    %404 = vector.extract_strided_slice %396 {offsets = [0, 256], sizes = [2, 128], strides = [1, 1]} : vector<2x384xf32> to vector<2x128xf32>
    %405 = math.tanh %403 : vector<2x128xf32>
    %406 = arith.mulf %404, %405 : vector<2x128xf32>
    %c328 = arith.constant 328 : index
    %c0_70 = arith.constant 0 : index
    %407 = vector.load %arg5[%c328, %c0_70] : memref<400x64xf32, #tpu.memory_space<vmem>>, vector<20x20xf32>
    %c0_71 = arith.constant 0 : index
    %c0_72 = arith.constant 0 : index
    %c0_73 = arith.constant 0 : index
    %408 = vector.load %arg1[%c0_71, %c0_72, %c0_73] : memref<2x20x20xf32, #tpu.memory_space<vmem>>, vector<1x20x20xf32>
    %409 = vector.shape_cast %408 : vector<1x20x20xf32> to vector<20x20xf32>
    %cst_74 = arith.constant dense<0.000000e+00> : vector<20x20xf32>
    %410 = tpu.matmul %409, %407, %cst_74 {dimension_numbers = #tpu.dot_dimension_numbers<[1], [0], [0], [1], [0, 0, 1, 1], [], []>} : vector<20x20xf32>, vector<20x20xf32>, vector<20x20xf32> -> vector<20x20xf32>
    %411 = vector.shape_cast %410 : vector<20x20xf32> to vector<1x20x20xf32>
    %c1 = arith.constant 1 : index
    %c0_75 = arith.constant 0 : index
    %c0_76 = arith.constant 0 : index
    %412 = vector.load %arg1[%c1, %c0_75, %c0_76] : memref<2x20x20xf32, #tpu.memory_space<vmem>>, vector<1x20x20xf32>
    %413 = vector.shape_cast %412 : vector<1x20x20xf32> to vector<20x20xf32>
    %cst_77 = arith.constant dense<0.000000e+00> : vector<20x20xf32>
    %414 = tpu.matmul %413, %407, %cst_77 {dimension_numbers = #tpu.dot_dimension_numbers<[1], [0], [0], [1], [0, 0, 1, 1], [], []>} : vector<20x20xf32>, vector<20x20xf32>, vector<20x20xf32> -> vector<20x20xf32>
    %415 = vector.shape_cast %414 : vector<20x20xf32> to vector<1x20x20xf32>
    %416 = tpu.concatenate %411, %415 in 0 : vector<1x20x20xf32>, vector<1x20x20xf32> -> vector<2x20x20xf32>
    %c0_78 = arith.constant 0 : index
    %c0_79 = arith.constant 0 : index
    %417 = vector.load %arg2[%c0_78, %c0_79] : memref<2x2xf32, #tpu.memory_space<vmem>>, vector<2x1xf32>
    %418 = arith.fptosi %417 : vector<2x1xf32> to vector<2x1xi32>
    %419 = vector.shape_cast %418 : vector<2x1xi32> to vector<2x1x1xi32>
    %c0_80 = arith.constant 0 : index
    %c1_81 = arith.constant 1 : index
    %420 = vector.load %arg2[%c0_80, %c1_81] : memref<2x2xf32, #tpu.memory_space<vmem>>, vector<2x1xf32>
    %421 = tpu.iota {dimensions = array<i32: 2>} : vector<2x20x20xi32>
    %c0_i32 = arith.constant 0 : i32
    %422 = vector.broadcast %c0_i32 : i32 to vector<2x1x1xi32>
    %423 = arith.muli %422, %419 : vector<2x1x1xi32>
    %424 = vector.broadcast %423 : vector<2x1x1xi32> to vector<2x20x20xi32>
    %425 = arith.cmpi sge, %421, %424 : vector<2x20x20xi32>
    %c1_i32 = arith.constant 1 : i32
    %426 = vector.broadcast %c1_i32 : i32 to vector<2x1x1xi32>
    %427 = arith.muli %426, %419 : vector<2x1x1xi32>
    %428 = vector.broadcast %427 : vector<2x1x1xi32> to vector<2x20x20xi32>
    %429 = arith.cmpi slt, %421, %428 : vector<2x20x20xi32>
    %430 = arith.andi %425, %429 : vector<2x20x20xi1>
    %cst_82 = arith.constant 0.000000e+00 : f32
    %431 = vector.broadcast %cst_82 : f32 to vector<2x20x20xf32>
    %432 = arith.select %430, %416, %431 : vector<2x20x20xi1>, vector<2x20x20xf32>
    %cst_83 = arith.constant dense<0.000000e+00> : vector<2x20xf32>
    %433 = vector.multi_reduction <add>, %432, %cst_83 [2] : vector<2x20x20xf32> to vector<2x20xf32>
    %434 = vector.broadcast %420 : vector<2x1xf32> to vector<2x20xf32>
    %435 = arith.mulf %433, %434 : vector<2x20xf32>
    %c1_i32_84 = arith.constant 1 : i32
    %436 = vector.broadcast %c1_i32_84 : i32 to vector<2x1x1xi32>
    %437 = arith.muli %436, %419 : vector<2x1x1xi32>
    %438 = vector.broadcast %437 : vector<2x1x1xi32> to vector<2x20x20xi32>
    %439 = arith.cmpi sge, %421, %438 : vector<2x20x20xi32>
    %c2_i32 = arith.constant 2 : i32
    %440 = vector.broadcast %c2_i32 : i32 to vector<2x1x1xi32>
    %441 = arith.muli %440, %419 : vector<2x1x1xi32>
    %442 = vector.broadcast %441 : vector<2x1x1xi32> to vector<2x20x20xi32>
    %443 = arith.cmpi slt, %421, %442 : vector<2x20x20xi32>
    %444 = arith.andi %439, %443 : vector<2x20x20xi1>
    %cst_85 = arith.constant 0.000000e+00 : f32
    %445 = vector.broadcast %cst_85 : f32 to vector<2x20x20xf32>
    %446 = arith.select %444, %416, %445 : vector<2x20x20xi1>, vector<2x20x20xf32>
    %cst_86 = arith.constant dense<0.000000e+00> : vector<2x20xf32>
    %447 = vector.multi_reduction <add>, %446, %cst_86 [2] : vector<2x20x20xf32> to vector<2x20xf32>
    %448 = vector.broadcast %420 : vector<2x1xf32> to vector<2x20xf32>
    %449 = arith.mulf %447, %448 : vector<2x20xf32>
    %c2_i32_87 = arith.constant 2 : i32
    %450 = vector.broadcast %c2_i32_87 : i32 to vector<2x1x1xi32>
    %451 = arith.muli %450, %419 : vector<2x1x1xi32>
    %452 = vector.broadcast %451 : vector<2x1x1xi32> to vector<2x20x20xi32>
    %453 = arith.cmpi sge, %421, %452 : vector<2x20x20xi32>
    %c3_i32 = arith.constant 3 : i32
    %454 = vector.broadcast %c3_i32 : i32 to vector<2x1x1xi32>
    %455 = arith.muli %454, %419 : vector<2x1x1xi32>
    %456 = vector.broadcast %455 : vector<2x1x1xi32> to vector<2x20x20xi32>
    %457 = arith.cmpi slt, %421, %456 : vector<2x20x20xi32>
    %458 = arith.andi %453, %457 : vector<2x20x20xi1>
    %cst_88 = arith.constant 0.000000e+00 : f32
    %459 = vector.broadcast %cst_88 : f32 to vector<2x20x20xf32>
    %460 = arith.select %458, %416, %459 : vector<2x20x20xi1>, vector<2x20x20xf32>
    %cst_89 = arith.constant dense<0.000000e+00> : vector<2x20xf32>
    %461 = vector.multi_reduction <add>, %460, %cst_89 [2] : vector<2x20x20xf32> to vector<2x20xf32>
    %462 = vector.broadcast %420 : vector<2x1xf32> to vector<2x20xf32>
    %463 = arith.mulf %461, %462 : vector<2x20xf32>
    %c3_i32_90 = arith.constant 3 : i32
    %464 = vector.broadcast %c3_i32_90 : i32 to vector<2x1x1xi32>
    %465 = arith.muli %464, %419 : vector<2x1x1xi32>
    %466 = vector.broadcast %465 : vector<2x1x1xi32> to vector<2x20x20xi32>
    %467 = arith.cmpi sge, %421, %466 : vector<2x20x20xi32>
    %c4_i32 = arith.constant 4 : i32
    %468 = vector.broadcast %c4_i32 : i32 to vector<2x1x1xi32>
    %469 = arith.muli %468, %419 : vector<2x1x1xi32>
    %470 = vector.broadcast %469 : vector<2x1x1xi32> to vector<2x20x20xi32>
    %471 = arith.cmpi slt, %421, %470 : vector<2x20x20xi32>
    %472 = arith.andi %467, %471 : vector<2x20x20xi1>
    %cst_91 = arith.constant 0.000000e+00 : f32
    %473 = vector.broadcast %cst_91 : f32 to vector<2x20x20xf32>
    %474 = arith.select %472, %416, %473 : vector<2x20x20xi1>, vector<2x20x20xf32>
    %cst_92 = arith.constant dense<0.000000e+00> : vector<2x20xf32>
    %475 = vector.multi_reduction <add>, %474, %cst_92 [2] : vector<2x20x20xf32> to vector<2x20xf32>
    %476 = vector.broadcast %420 : vector<2x1xf32> to vector<2x20xf32>
    %477 = arith.mulf %475, %476 : vector<2x20xf32>
    %478 = tpu.concatenate %435, %463 in 0 : vector<2x20xf32>, vector<2x20xf32> -> vector<4x20xf32>
    %479 = tpu.concatenate %449, %477 in 0 : vector<2x20xf32>, vector<2x20xf32> -> vector<4x20xf32>
    %480 = tpu.concatenate %478, %479 in 1 : vector<4x20xf32>, vector<4x20xf32> -> vector<4x40xf32>
    %c352 = arith.constant 352 : index
    %c0_93 = arith.constant 0 : index
    %481 = vector.load %arg5[%c352, %c0_93] : memref<400x64xf32, #tpu.memory_space<vmem>>, vector<40x50xf32>
    %c392 = arith.constant 392 : index
    %c0_94 = arith.constant 0 : index
    %482 = vector.load %arg5[%c392, %c0_94] : memref<400x64xf32, #tpu.memory_space<vmem>>, vector<1x50xf32>
    %cst_95 = arith.constant dense<0.000000e+00> : vector<4x50xf32>
    %483 = tpu.matmul %480, %481, %cst_95 {dimension_numbers = #tpu.dot_dimension_numbers<[1], [0], [0], [1], [0, 0, 1, 1], [], []>} : vector<4x40xf32>, vector<40x50xf32>, vector<4x50xf32> -> vector<4x50xf32>
    %484 = vector.broadcast %482 : vector<1x50xf32> to vector<4x50xf32>
    %485 = arith.addf %483, %484 : vector<4x50xf32>
    %cst_96 = arith.constant 0.000000e+00 : f32
    %486 = vector.broadcast %cst_96 : f32 to vector<4x50xf32>
    %487 = arith.maximumf %485, %486 : vector<4x50xf32>
    %488 = vector.extract_strided_slice %487 {offsets = [0, 0], sizes = [2, 50], strides = [1, 1]} : vector<4x50xf32> to vector<2x50xf32>
    %489 = vector.extract_strided_slice %487 {offsets = [2, 0], sizes = [2, 50], strides = [1, 1]} : vector<4x50xf32> to vector<2x50xf32>
    %490 = tpu.concatenate %488, %489 in 1 : vector<2x50xf32>, vector<2x50xf32> -> vector<2x100xf32>
    %cst_97 = arith.constant 0.000000e+00 : f32
    %491 = vector.broadcast %cst_97 : f32 to vector<2x28xf32>
    %492 = tpu.concatenate %406, %490, %491 in 1 : vector<2x128xf32>, vector<2x100xf32>, vector<2x28xf32> -> vector<2x256xf32>
    %c0_98 = arith.constant 0 : index
    %c0_99 = arith.constant 0 : index
    %493 = vector.load %arg5[%c0_98, %c0_99] : memref<400x64xf32, #tpu.memory_space<vmem>>, vector<256x64xf32>
    %c320 = arith.constant 320 : index
    %c0_100 = arith.constant 0 : index
    %494 = vector.load %arg5[%c320, %c0_100] : memref<400x64xf32, #tpu.memory_space<vmem>>, vector<1x64xf32>
    %c256 = arith.constant 256 : index
    %c0_101 = arith.constant 0 : index
    %495 = vector.load %arg5[%c256, %c0_101] : memref<400x64xf32, #tpu.memory_space<vmem>>, vector<64x2xf32>
    %c321 = arith.constant 321 : index
    %c0_102 = arith.constant 0 : index
    %496 = vector.load %arg5[%c321, %c0_102] : memref<400x64xf32, #tpu.memory_space<vmem>>, vector<1x2xf32>
    %cst_103 = arith.constant dense<0.000000e+00> : vector<2x64xf32>
    %497 = tpu.matmul %492, %493, %cst_103 {dimension_numbers = #tpu.dot_dimension_numbers<[1], [0], [0], [1], [0, 0, 1, 1], [], []>} : vector<2x256xf32>, vector<256x64xf32>, vector<2x64xf32> -> vector<2x64xf32>
    %498 = vector.broadcast %494 : vector<1x64xf32> to vector<2x64xf32>
    %499 = arith.addf %497, %498 : vector<2x64xf32>
    %cst_104 = arith.constant dense<0.000000e+00> : vector<2x2xf32>
    %500 = tpu.matmul %499, %495, %cst_104 {dimension_numbers = #tpu.dot_dimension_numbers<[1], [0], [0], [1], [0, 0, 1, 1], [], []>} : vector<2x64xf32>, vector<64x2xf32>, vector<2x2xf32> -> vector<2x2xf32>
    %501 = vector.broadcast %496 : vector<1x2xf32> to vector<2x2xf32>
    %502 = arith.addf %500, %501 : vector<2x2xf32>
    %cst_105 = arith.constant dense<0xFF800000> : vector<2xf32>
    %503 = vector.multi_reduction <maximumf>, %502, %cst_105 [1] : vector<2x2xf32> to vector<2xf32>
    %504 = vector.shape_cast %503 : vector<2xf32> to vector<2x1xf32>
    %505 = vector.broadcast %504 : vector<2x1xf32> to vector<2x2xf32>
    %506 = arith.subf %502, %505 : vector<2x2xf32>
    %507 = math.exp %506 : vector<2x2xf32>
    %cst_106 = arith.constant dense<0.000000e+00> : vector<2xf32>
    %508 = vector.multi_reduction <add>, %507, %cst_106 [1] : vector<2x2xf32> to vector<2xf32>
    %509 = vector.shape_cast %508 : vector<2xf32> to vector<2x1xf32>
    %510 = vector.broadcast %509 : vector<2x1xf32> to vector<2x2xf32>
    %511 = arith.divf %507, %510 : vector<2x2xf32>
    %c0_107 = arith.constant 0 : index
    %c0_108 = arith.constant 0 : index
    %512 = vector.load %arg6[%c0_107, %c0_108] : memref<2x2xf32, #tpu.memory_space<vmem>>, vector<2x2xf32>
    tpu.vector_store %arg6[%c0_107, %c0_108], %511 {strides = array<i32>} : memref<2x2xf32, #tpu.memory_space<vmem>>, vector<2x2xf32>,
    return
  }
}

</mosaic_0001>

<bundles_post_ra>
// kernel: bilstm_cnn_forward.1
= control target key start
LH: loop header
LB: loop body
LE: loop exit
PB: predicated region body
PF: predicated region fallthrough
CT: control target
= control target key end

     0   :  { %vm70_vm0 = vcmask 1040384   ;;  %vm54_vm1 = vcmask 334848   ;;  %v4774_v28 = vmov 0.0   ;;  %v4775_v38 = vmov 0   ;;  %s6638_s0 = inlined_call_operand.vmem [shape: f32[40,41], index: 0, kind: input, shape index: {}]   ;;  %s6639_s1 = inlined_call_operand.vmem [shape: f32[2,20,20], index: 1, kind: input, shape index: {}]   ;;  %s6640_s2 = inlined_call_operand.vmem [shape: f32[2,2], index: 2, kind: input, shape index: {}]   ;;  %s6641_s3 = inlined_call_operand.vmem [shape: f32[41,512], index: 3, kind: input, shape index: {}]   ;;  %s6642_s4 = inlined_call_operand.vmem [shape: bf16[128,512], index: 4, kind: input, shape index: {}]   ;;  %s6643_s5 = inlined_call_operand.vmem [shape: f32[400,64], index: 5, kind: input, shape index: {}]   ;;  %s6644_s6 = inlined_call_operand.hbm [shape: f32[2,2], index: 6, kind: output, shape index: {}]  }
   0x1   :  { %v51_v0 = vld [vmem:[%s6641_s3 + $0xa8] sm:$0x1]  ;;  %v53_v1 = vld [vmem:[%s6641_s3 + $0xb8] sm:$0x1]  ;;  %v50_v3 = vld [vmem:[%s6641_s3 + $0xa0] sm:$0x1]  ;;  %147 = vmatprep.mubr.f32.mxu0 %v4774_v28  ;;  %242 = vmatprep.mubr.f32.mxu1 %v4774_v28 }
   0x2   :  { %v47_v2 = vld [vmem:[%s6641_s3 + $0x88] sm:$0xff]  ;;  %4056 = vmatprep.subr.msk.mxu0 %vm70_vm0, %v51_v0  ;;  %4063 = vmatprep.subr.msk.mxu1 %vm70_vm0, %v53_v1  ;;  %v52_v4 = vld [vmem:[%s6641_s3 + $0xb0] sm:$0x1]  ;;  %v49_v5 = vld [vmem:[%s6641_s3 + $0x98] sm:$0xff] }
   0x3   :  { %4057 = vmatpush1.msk.msra.mxu0 %vm70_vm0, %v50_v3  ;;  %4064 = vmatpush1.msk.msra.mxu1 %vm70_vm0, %v52_v4  ;;  %v46_v6 = vld [vmem:[%s6641_s3 + $0x80] sm:$0xff]  ;;  %v48_v7 = vld [vmem:[%s6641_s3 + $0x90] sm:$0xff]  ;;  %v43_v8 = vld [vmem:[%s6641_s3 + $0x68] sm:$0xff] }
   0x4   :  { %105 = vmatprep.subr.mxu0 %v47_v2  ;;  %200 = vmatprep.subr.mxu1 %v49_v5  ;;  %v45_v9 = vld [vmem:[%s6641_s3 + $0x78] sm:$0xff]  ;;  %v42_v10 = vld [vmem:[%s6641_s3 + $0x60] sm:$0xff]  ;;  %v44_v11 = vld [vmem:[%s6641_s3 + $0x70] sm:$0xff] }
   0x5   :  { %106 = vmatpush1.msra.mxu0 %v46_v6  ;;  %201 = vmatpush1.msra.mxu1 %v48_v7  ;;  %v39_v12 = vld [vmem:[%s6641_s3 + $0x48] sm:$0xff]  ;;  %v41_v13 = vld [vmem:[%s6641_s3 + $0x58] sm:$0xff]  ;;  %v38_v14 = vld [vmem:[%s6641_s3 + $0x40] sm:$0xff] }
   0x6   :  { %107 = vmatprep.subr.mxu0 %v43_v8  ;;  %202 = vmatprep.subr.mxu1 %v45_v9  ;;  %v40_v15 = vld [vmem:[%s6641_s3 + $0x50] sm:$0xff]  ;;  %v35_v16 = vld [vmem:[%s6641_s3 + $0x28] sm:$0xff]  ;;  %v37_v17 = vld [vmem:[%s6641_s3 + $0x38] sm:$0xff] }
   0x7   :  { %108 = vmatpush1.msra.mxu0 %v42_v10  ;;  %203 = vmatpush1.msra.mxu1 %v44_v11  ;;  %v34_v18 = vld [vmem:[%s6641_s3 + $0x20] sm:$0xff]  ;;  %v36_v19 = vld [vmem:[%s6641_s3 + $0x30] sm:$0xff]  ;;  %v31_v20 = vld [vmem:[%s6641_s3 + $0x8] sm:$0xff] }
   0x8   :  { %109 = vmatprep.subr.mxu0 %v39_v12  ;;  %204 = vmatprep.subr.mxu1 %v41_v13  ;;  %v33_v21 = vld [vmem:[%s6641_s3 + $0x18] sm:$0xff]  ;;  %v30_v22 = vld [vmem:[%s6641_s3] sm:$0xff]  ;;  %v32_v23 = vld [vmem:[%s6641_s3 + $0x10] sm:$0xff] }
   0x9   :  { %110 = vmatpush1.msra.mxu0 %v38_v14  ;;  %205 = vmatpush1.msra.mxu1 %v40_v15  ;;  %v25_v24 = vld [vmem:[%s6638_s0] sm:$0xff]  ;;  %v4900_v26 = vld [vmem:[%s6642_s4 + $0xec] ss:$16 sps:$4 sm:$0xff]   ;;  %v4911_v29 = vld [vmem:[%s6642_s4 + $0xe8] ss:$16 sps:$4 sm:$0xff]  }
   0xa   :  { %111 = vmatprep.subr.mxu0 %v35_v16  ;;  %206 = vmatprep.subr.mxu1 %v37_v17  ;;  %v4895_v25 = vld [vmem:[%s6642_s4 + $0xe4] ss:$16 sps:$4 sm:$0xff]   ;;  %v4905_v27 = vld [vmem:[%s6642_s4 + $0xe0] ss:$16 sps:$4 sm:$0xff]   ;;  %v4922_v31 = vld [vmem:[%s6642_s4 + $0xcc] ss:$16 sps:$4 sm:$0xff]  }
   0xb   :  { %112 = vmatpush1.msra.mxu0 %v34_v18  ;;  %207 = vmatpush1.msra.mxu1 %v36_v19  ;;  %v4917_v30 = vld [vmem:[%s6642_s4 + $0xc4] ss:$16 sps:$4 sm:$0xff]   ;;  %v4931_v32 = vld [vmem:[%s6642_s4 + $0xc0] ss:$16 sps:$4 sm:$0xff]   ;;  %v4936_v33 = vld [vmem:[%s6642_s4 + $0xc8] ss:$16 sps:$4 sm:$0xff]  }
   0xc   :  { %113 = vmatprep.subr.mxu0 %v31_v20  ;;  %208 = vmatprep.subr.mxu1 %v33_v21  ;;  %v4943_v34 = vld [vmem:[%s6642_s4 + $0xa4] ss:$16 sps:$4 sm:$0xff]   ;;  %v4950_v35 = vld [vmem:[%s6642_s4 + $0xac] ss:$16 sps:$4 sm:$0xff]   ;;  %v4955_v36 = vld [vmem:[%s6642_s4 + $0xa0] ss:$16 sps:$4 sm:$0xff]  }
   0xd   :  { %114 = vmatpush1.msra.mxu0 %v30_v22  ;;  %209 = vmatpush1.msra.mxu1 %v32_v23  ;;  %v26_v37 = vld [vmem:[%s6638_s0 + $0x8] sm:$0xff]  ;;  %v4976_v40 = vld [vmem:[%s6642_s4 + $0x84] ss:$16 sps:$4 sm:$0xff]   ;;  %v4995_v43 = vld [vmem:[%s6642_s4 + $0x80] ss:$16 sps:$4 sm:$0xff]  }
   0xe   :  { %4058 = vmatmul.mubr.msk.f32.vlgmr.msra.gmra.mxu0 %vm54_vm1, %v25_v24  ;;  %489 = vmatprep.subr.bf16.mxu0 %v4895_v25  ;;  %v4969_v39 = vld [vmem:[%s6642_s4 + $0xa8] ss:$16 sps:$4 sm:$0xff]   ;;  %v4981_v41 = vld [vmem:[%s6642_s4 + $0x8c] ss:$16 sps:$4 sm:$0xff]   ;;  %v27_v42 = vld [vmem:[%s6638_s0 + $0x10] sm:$0xff] }
   0xf   :  { %530 = vmatprep.subr.bf16.mxu1 %v4900_v26  ;;  %4065 = vmatmul.mubr.msk.f32.vlgmr.msra.gmra.mxu1 %vm54_vm1, %v25_v24  ;;  %v5000_v44 = vld [vmem:[%s6642_s4 + $0x88] ss:$16 sps:$4 sm:$0xff]   ;;  %v5005_v45 = vld [vmem:[%s6642_s4 + $0x64] ss:$16 sps:$4 sm:$0xff]   ;;  %v5012_v46 = vld [vmem:[%s6642_s4 + $0x6c] ss:$16 sps:$4 sm:$0xff]  }
  0x10   :  { %490 = vmatpush1.bf16.msra.mxu0 %v4905_v27  ;;  %531 = vmatpush1.bf16.msra.mxu1 %v4911_v29  ;;  %v5019_v47 = vld [vmem:[%s6642_s4 + $0x60] ss:$16 sps:$4 sm:$0xff]   ;;  %v5024_v48 = vld [vmem:[%s6642_s4 + $0x68] ss:$16 sps:$4 sm:$0xff]   ;;  %v5036_v50 = vld [vmem:[%s6642_s4 + $0x44] ss:$16 sps:$4 sm:$0xff]  }
  0x11   :  { %491 = vmatprep.subr.bf16.mxu0 %v4917_v30  ;;  %532 = vmatprep.subr.bf16.mxu1 %v4922_v31  ;;  %v28_v49 = vld [vmem:[%s6638_s0 + $0x18] sm:$0xff]  ;;  %v29_v52 = vld [vmem:[%s6638_s0 + $0x20] sm:$0xff] }
  0x12   :  { %153 = vmatprep.mubr.f32.mxu0 %v4774_v28  ;;  %248 = vmatprep.mubr.f32.mxu1 %v4774_v28  ;;  %v5043_v51 = vld [vmem:[%s6642_s4 + $0x4c] ss:$16 sps:$4 sm:$0xff]  }
  0x13   :  { %4312 = vset.pattern.permute.xlu0 %v4775_v38  ;;  %4313 = vset.pattern.permute.xlu1 %v4775_v38 }
  0x14   :  { %492 = vmatpush1.bf16.msra.mxu0 %v4931_v32  ;;  %533 = vmatpush1.bf16.msra.mxu1 %v4936_v33 }
  0x15   :  { %493 = vmatprep.subr.bf16.mxu0 %v4943_v34  ;;  %534 = vmatprep.subr.bf16.mxu1 %v4950_v35 }
  0x16   :  { %4059 = vmatmul.mubr.msk.f32.gmra.mxu0 %vm54_vm1, %v26_v37  ;;  %4066 = vmatmul.mubr.msk.f32.gmra.mxu1 %vm54_vm1, %v26_v37 }
  0x17   :  { %159 = vmatprep.mubr.f32.mxu0 %v4774_v28  ;;  %254 = vmatprep.mubr.f32.mxu1 %v4774_v28 }
  0x18   :  { %494 = vmatpush1.bf16.msra.mxu0 %v4955_v36  ;;  %535 = vmatpush1.bf16.msra.mxu1 %v4969_v39 }
  0x19   :  { %495 = vmatprep.subr.bf16.mxu0 %v4976_v40  ;;  %536 = vmatprep.subr.bf16.mxu1 %v4981_v41 }
  0x1a   :  { %4060 = vmatmul.mubr.msk.f32.gmra.mxu0 %vm54_vm1, %v27_v42  ;;  %4067 = vmatmul.mubr.msk.f32.gmra.mxu1 %vm54_vm1, %v27_v42 }
  0x1b   :  { %165 = vmatprep.mubr.f32.mxu0 %v4774_v28  ;;  %260 = vmatprep.mubr.f32.mxu1 %v4774_v28 }
  0x1c   :  { %496 = vmatpush1.bf16.msra.mxu0 %v4995_v43  ;;  %537 = vmatpush1.bf16.msra.mxu1 %v5000_v44 }
  0x1d   :  { %497 = vmatprep.subr.bf16.mxu0 %v5005_v45  ;;  %538 = vmatprep.subr.bf16.mxu1 %v5012_v46 }
  0x1e   :  { %4061 = vmatmul.mubr.msk.f32.gmra.mxu0 %vm54_vm1, %v28_v49  ;;  %4068 = vmatmul.mubr.msk.f32.gmra.mxu1 %vm54_vm1, %v28_v49 }
  0x1f   :  { %171 = vmatprep.mubr.f32.mxu0 %v4774_v28  ;;  %266 = vmatprep.mubr.f32.mxu1 %v4774_v28 }
  0x20   :  { %11 = vsyncpa [#allocation4], 0  ;;  %498 = vmatpush1.bf16.msra.mxu0 %v5019_v47  ;;  %539 = vmatpush1.bf16.msra.mxu1 %v5024_v48  ;;  %v5057_v53 = vld [vmem:[%s6642_s4 + $0x40] ss:$16 sps:$4 sm:$0xff]   ;;  %v5062_v54 = vld [vmem:[%s6642_s4 + $0x48] ss:$16 sps:$4 sm:$0xff]  }
  0x21   :  { %499 = vmatprep.subr.bf16.mxu0 %v5036_v50  ;;  %540 = vmatprep.subr.bf16.mxu1 %v5043_v51  ;;  %v5069_v55 = vld [vmem:[%s6642_s4 + $0x24] ss:$16 sps:$4 sm:$0xff]   ;;  %v5074_v56 = vld [vmem:[%s6642_s4 + $0x2c] ss:$16 sps:$4 sm:$0xff]   ;;  %v5085_v57 = vld [vmem:[%s6642_s4 + $0x20] ss:$16 sps:$4 sm:$0xff]  }
  0x22   :  { %4062 = vmatmul.mubr.msk.f32.gmra.mxu0 %vm54_vm1, %v29_v52  ;;  %4069 = vmatmul.mubr.msk.f32.gmra.mxu1 %vm54_vm1, %v29_v52  ;;  %v5090_v58 = vld [vmem:[%s6642_s4 + $0x28] ss:$16 sps:$4 sm:$0xff]   ;;  %v5097_v59 = vld [vmem:[%s6642_s4 + $0x4] ss:$16 sps:$4 sm:$0xff]   ;;  %v5102_v60 = vld [vmem:[%s6642_s4 + $0xc] ss:$16 sps:$4 sm:$0xff]  }
  0x23   :  { %521 = vmatprep.mubr.bf16.mxu0 %v4775_v38  ;;  %562 = vmatprep.mubr.bf16.mxu1 %v4775_v38  ;;  %v5109_v61 = vld [vmem:[%s6642_s4] ss:$16 sps:$4 sm:$0xff]   ;;  %v5114_v62 = vld [vmem:[%s6642_s4 + $0x8] ss:$16 sps:$4 sm:$0xff]   ;;  %vm3079_vm2 = vcmask 1043456   ;;  %vm4777_vm3 = vmmov 0  }
  0x24   :  { %500 = vmatpush1.bf16.msra.mxu0 %v5057_v53  ;;  %541 = vmatpush1.bf16.msra.mxu1 %v5062_v54  ;;  %vm3069_vm4 = vcmask 162816   ;;  %vm3313_vm1 = vcmask 158720   ;;  %s4779_s17 = smov 20   ;;  %s4780_s7 = smov 50  }
  0x25   :  { %501 = vmatprep.subr.bf16.mxu0 %v5069_v55  ;;  %542 = vmatprep.subr.bf16.mxu1 %v5074_v56 }
  0x28   :  { %502 = vmatpush1.bf16.msra.mxu0 %v5085_v57  ;;  %543 = vmatpush1.bf16.msra.mxu1 %v5090_v58 }
  0x29   :  { %503 = vmatprep.subr.bf16.mxu0 %v5097_v59  ;;  %544 = vmatprep.subr.bf16.mxu1 %v5102_v60 }
  0x2c   :  { %504 = vmatpush1.bf16.msra.mxu0 %v5109_v61  ;;  %545 = vmatpush1.bf16.msra.mxu1 %v5114_v62 }
  0x2d   :  { %604 = vmatprep.subr.bf16.mxu0 %v4895_v25  ;;  %645 = vmatprep.subr.bf16.mxu1 %v4900_v26 }
  0x2f   :  { %522 = vmatmul.mubr.bf16.vlgmr.msra.gmra.mxu0 %v4775_v38  ;;  %563 = vmatmul.mubr.bf16.vlgmr.msra.gmra.mxu1 %v4775_v38 }
  0x30   :  { %605 = vmatpush1.bf16.msra.mxu0 %v4905_v27  ;;  %646 = vmatpush1.bf16.msra.mxu1 %v4911_v29 }
  0x31   :  { %606 = vmatprep.subr.bf16.mxu0 %v4917_v30  ;;  %647 = vmatprep.subr.bf16.mxu1 %v4922_v31 }
  0x32   :  { %636 = vmatprep.mubr.bf16.mxu0 %v4775_v38  ;;  %677 = vmatprep.mubr.bf16.mxu1 %v4775_v38 }
  0x34   :  { %607 = vmatpush1.bf16.msra.mxu0 %v4931_v32  ;;  %648 = vmatpush1.bf16.msra.mxu1 %v4936_v33 }
  0x35   :  { %608 = vmatprep.subr.bf16.mxu0 %v4943_v34  ;;  %649 = vmatprep.subr.bf16.mxu1 %v4950_v35 }
  0x38   :  { %609 = vmatpush1.bf16.msra.mxu0 %v4955_v36  ;;  %650 = vmatpush1.bf16.msra.mxu1 %v4969_v39 }
  0x39   :  { %610 = vmatprep.subr.bf16.mxu0 %v4976_v40  ;;  %651 = vmatprep.subr.bf16.mxu1 %v4981_v41 }
  0x3c   :  { %611 = vmatpush1.bf16.msra.mxu0 %v4995_v43  ;;  %652 = vmatpush1.bf16.msra.mxu1 %v5000_v44 }
  0x3d   :  { %612 = vmatprep.subr.bf16.mxu0 %v5005_v45  ;;  %653 = vmatprep.subr.bf16.mxu1 %v5012_v46 }
  0x40   :  { %613 = vmatpush1.bf16.msra.mxu0 %v5019_v47  ;;  %654 = vmatpush1.bf16.msra.mxu1 %v5024_v48 }
  0x41   :  { %614 = vmatprep.subr.bf16.mxu0 %v5036_v50  ;;  %655 = vmatprep.subr.bf16.mxu1 %v5043_v51 }
  0x44   :  { %615 = vmatpush1.bf16.msra.mxu0 %v5057_v53  ;;  %656 = vmatpush1.bf16.msra.mxu1 %v5062_v54 }
  0x45   :  { %616 = vmatprep.subr.bf16.mxu0 %v5069_v55  ;;  %657 = vmatprep.subr.bf16.mxu1 %v5074_v56 }
  0x48   :  { %617 = vmatpush1.bf16.msra.mxu0 %v5085_v57  ;;  %658 = vmatpush1.bf16.msra.mxu1 %v5090_v58 }
  0x49   :  { %618 = vmatprep.subr.bf16.mxu0 %v5097_v59  ;;  %659 = vmatprep.subr.bf16.mxu1 %v5102_v60 }
  0x4c   :  { %619 = vmatpush1.bf16.msra.mxu0 %v5109_v61  ;;  %660 = vmatpush1.bf16.msra.mxu1 %v5114_v62 }
  0x4d   :  { %737 = vmatprep.subr.bf16.mxu0 %v4895_v25  ;;  %778 = vmatprep.subr.bf16.mxu1 %v4900_v26 }
  0xce   :  { %v149_v63 = vpop.f32.mrf.mxu0 }
  0xcf   :  { %273 = vst [vmem:[#allocation2] sm:$0xff] %v149_v63  ;;  %v244_v1 = vpop.f32.mrf.mxu1 }
  0xd0   :  { %v151_v0 = vpop.f32.mrf.mxu0  ;;  %275 = vst [vmem:[#allocation2 + $0x50] sm:$0xff] %v244_v1 }
  0xd1   :  { %274 = vst [vmem:[#allocation2 + $0x38] sm:$0xff] %v151_v0  ;;  %v246_v2 = vpop.f32.mrf.mxu1 }
  0xd2   :  { %276 = vst [vmem:[#allocation2 + $0x18] sm:$0xff] %v246_v2 }
  0xd6   :  { %v155_v3 = vpop.f32.mrf.mxu0  ;;  %v250_v4 = vpop.f32.mrf.mxu1  ;;  %v325_v19 = vld [vmem:[#allocation2] sm:$0x3] }
  0xd7   :  { %277 = vst [vmem:[#allocation2 + $0x30] sm:$0xff] %v155_v3  ;;  %279 = vst [vmem:[#allocation2 + $0x78] sm:$0xff] %v250_v4  ;;  %v327_v3 = vld [vmem:[#allocation2 + $0x50] sm:$0x3] }
  0xd8   :  { %v157_v5 = vpop.f32.mrf.mxu0  ;;  %v252_v6 = vpop.f32.mrf.mxu1  ;;  %v326_v23 = vld [vmem:[#allocation2 + $0x38] sm:$0x3] }
  0xd9   :  { %278 = vst [vmem:[#allocation2 + $0x68] sm:$0xff] %v157_v5  ;;  %280 = vst [vmem:[#allocation2 + $0x80] sm:$0xff] %v252_v6  ;;  %v328_v6 = vld [vmem:[#allocation2 + $0x18] sm:$0x3] }
  0xda   :  { %v161_v7 = vpop.f32.mrf.mxu0  ;;  %v256_v8 = vpop.f32.mrf.mxu1 }
  0xdb   :  { %281 = vst [vmem:[#allocation2 + $0x8] sm:$0xff] %v161_v7  ;;  %283 = vst [vmem:[#allocation2 + $0x28] sm:$0xff] %v256_v8 }
  0xdc   :  { %v163_v9 = vpop.f32.mrf.mxu0  ;;  %v258_v10 = vpop.f32.mrf.mxu1 }
  0xdd   :  { %282 = vst [vmem:[#allocation2 + $0x88] sm:$0xff] %v163_v9  ;;  %284 = vst [vmem:[#allocation2 + $0x40] sm:$0xff] %v258_v10 }
  0xde   :  { %v167_v11 = vpop.f32.mrf.mxu0  ;;  %v262_v12 = vpop.f32.mrf.mxu1 }
  0xdf   :  { %285 = vst [vmem:[#allocation2 + $0x58] sm:$0xff] %v167_v11  ;;  %287 = vst [vmem:[#allocation2 + $0x98] sm:$0xff] %v262_v12 }
  0xe0   :  { %v169_v13 = vpop.f32.mrf.mxu0  ;;  %v264_v14 = vpop.f32.mrf.mxu1 }
  0xe1   :  { %286 = vst [vmem:[#allocation2 + $0x10] sm:$0xff] %v169_v13  ;;  %288 = vst [vmem:[#allocation2 + $0x60] sm:$0xff] %v264_v14 }
  0xe2   :  { %v173_v15 = vpop.f32.mrf.mxu0  ;;  %v268_v16 = vpop.f32.mrf.mxu1 }
  0xe3   :  { %289 = vst [vmem:[#allocation2 + $0x20] sm:$0xff] %v173_v15  ;;  %291 = vst [vmem:[#allocation2 + $0x70] sm:$0xff] %v268_v16 }
  0xe4   :  { %v175_v17 = vpop.f32.mrf.mxu0  ;;  %v270_v18 = vpop.f32.mrf.mxu1 }
  0xe5   :  { %290 = vst [vmem:[#allocation2 + $0x48] sm:$0xff] %v175_v17  ;;  %292 = vst [vmem:[#allocation2 + $0x90] sm:$0xff] %v270_v18 }
  0xef   :  { %v523_v20 = vpop.f32.mrf.mxu0  ;;  %v564_v21 = vpop.f32.mrf.mxu1 }
  0xf0   :  { %v571_v22 = vadd.f32 %v523_v20, %v325_v19  ;;  %v573_v4 = vadd.f32 %v564_v21, %v327_v3 }
  0xf1   :  { %v525_v24 = vpop.f32.mrf.mxu0  ;;  %v566_v37 = vpop.f32.mrf.mxu1 }
  0xf2   :  { %v4102_v42 = vmul.f32 -1.442695, %v571_v22  ;;  %v572_v49 = vadd.f32 %v525_v24, %v326_v23  ;;  %v4104_v5 = vmul.f32 -1.442695, %v573_v4  ;;  %v574_v8 = vadd.f32 %v566_v37, %v328_v6 }
  0xf3   :  { %v527_v52 = vpop.f32.mrf.mxu0  ;;  %v568_v63 = vpop.f32.mrf.mxu1 }
  0xf4   :  { %4364 = vpow2.f32 %v4102_v42  ;;  %v4103_v0 = vmul.f32 -1.442695, %v572_v49  ;;  %v599_v49 = vld [vmem:[#allocation2] sm:$0xc] }
  0xf5   :  { %v528_v1 = vpop.f32.mrf.mxu0  ;;  %v569_v2 = vpop.f32.mrf.mxu1 }
  0xf6   :  { %4366 = vpow2.f32 %v4103_v0  ;;  %v600_v2 = vld [vmem:[#allocation2 + $0x38] sm:$0xc] }
  0xf7   :  { %4368 = vpow2.f32 %v4104_v5 }
 0x101   :  { %v4365_v7 = vpop.eup %4364 }
 0x102   :  { %v584_v9 = vadd.f32 1.0, %v4365_v7 }
 0x103   :  { %v4367_v10 = vpop.eup %4366 }
 0x104   :  { %4370 = vrcp.f32 %v584_v9  ;;  %v585_v11 = vadd.f32 1.0, %v4367_v10  ;;  %v4369_v12 = vpop.eup %4368 }
 0x105   :  { %4372 = vtanh.f32 %v574_v8  ;;  %v586_v16 = vadd.f32 1.0, %v4369_v12 }
 0x106   :  { %4374 = vrcp.f32 %v585_v11  ;;  %v601_v11 = vld [vmem:[#allocation2 + $0x50] sm:$0xc] }
 0x107   :  { %4376 = vrcp.f32 %v586_v16 }
 0x111   :  { %v4371_v13 = vpop.eup %4370 }
 0x112   :  { %v4373_v14 = vpop.eup %4372 }
 0x113   :  { %v4375_v15 = vpop.eup %4374  ;;  %v595_v18 = vmul.f32 %v4373_v14, %v4371_v13 }
 0x114   :  { %v594_v17 = vmul.f32 0.0, %v4375_v15  ;;  %v4377_v20 = vpop.eup %4376  ;;  %v602_v15 = vld [vmem:[#allocation2 + $0x18] sm:$0xc] }
 0x116   :  { %v5158_v19 = vadd.f32 %v595_v18, %v594_v17 }
 0x118   :  { %4378 = vtanh.f32 %v5158_v19 }
 0x125   :  { %v4379_v21 = vpop.eup %4378 }
 0x126   :  { %v598_v22 = vmul.f32 %v4379_v21, %v4377_v20 }
 0x128   :  { %v603_v23 = vpack.c.bf16 %v598_v22, %v598_v22 }
 0x12a   :  { %637 = vmatmul.mubr.bf16.vlgmr.msra.gmra.mxu0 %v603_v23  ;;  %678 = vmatmul.mubr.bf16.vlgmr.msra.gmra.mxu1 %v603_v23 }
 0x12b   :  { %738 = vmatpush1.bf16.msra.mxu0 %v4905_v27  ;;  %779 = vmatpush1.bf16.msra.mxu1 %v4911_v29 }
 0x12c   :  { %739 = vmatprep.subr.bf16.mxu0 %v4917_v30  ;;  %780 = vmatprep.subr.bf16.mxu1 %v4922_v31 }
 0x12d   :  { %769 = vmatprep.mubr.bf16.mxu0 %v4775_v38  ;;  %810 = vmatprep.mubr.bf16.mxu1 %v4775_v38 }
 0x12f   :  { %740 = vmatpush1.bf16.msra.mxu0 %v4931_v32  ;;  %781 = vmatpush1.bf16.msra.mxu1 %v4936_v33 }
 0x130   :  { %741 = vmatprep.subr.bf16.mxu0 %v4943_v34  ;;  %782 = vmatprep.subr.bf16.mxu1 %v4950_v35 }
 0x133   :  { %742 = vmatpush1.bf16.msra.mxu0 %v4955_v36  ;;  %783 = vmatpush1.bf16.msra.mxu1 %v4969_v39 }
 0x134   :  { %743 = vmatprep.subr.bf16.mxu0 %v4976_v40  ;;  %784 = vmatprep.subr.bf16.mxu1 %v4981_v41 }
 0x137   :  { %744 = vmatpush1.bf16.msra.mxu0 %v4995_v43  ;;  %785 = vmatpush1.bf16.msra.mxu1 %v5000_v44 }
 0x138   :  { %745 = vmatprep.subr.bf16.mxu0 %v5005_v45  ;;  %786 = vmatprep.subr.bf16.mxu1 %v5012_v46 }
 0x13b   :  { %746 = vmatpush1.bf16.msra.mxu0 %v5019_v47  ;;  %787 = vmatpush1.bf16.msra.mxu1 %v5024_v48 }
 0x13c   :  { %747 = vmatprep.subr.bf16.mxu0 %v5036_v50  ;;  %788 = vmatprep.subr.bf16.mxu1 %v5043_v51 }
 0x13f   :  { %748 = vmatpush1.bf16.msra.mxu0 %v5057_v53  ;;  %789 = vmatpush1.bf16.msra.mxu1 %v5062_v54 }
 0x140   :  { %749 = vmatprep.subr.bf16.mxu0 %v5069_v55  ;;  %790 = vmatprep.subr.bf16.mxu1 %v5074_v56 }
 0x143   :  { %750 = vmatpush1.bf16.msra.mxu0 %v5085_v57  ;;  %791 = vmatpush1.bf16.msra.mxu1 %v5090_v58 }
 0x144   :  { %751 = vmatprep.subr.bf16.mxu0 %v5097_v59  ;;  %792 = vmatprep.subr.bf16.mxu1 %v5102_v60 }
 0x147   :  { %752 = vmatpush1.bf16.msra.mxu0 %v5109_v61  ;;  %793 = vmatpush1.bf16.msra.mxu1 %v5114_v62 }
 0x148   :  { %870 = vmatprep.subr.bf16.mxu0 %v4895_v25  ;;  %911 = vmatprep.subr.bf16.mxu1 %v4900_v26 }
 0x1ea   :  { %v638_v24 = vpop.f32.mrf.mxu0  ;;  %v679_v37 = vpop.f32.mrf.mxu1 }
 0x1eb   :  { %v690_v42 = vrot.slane %v638_v24, 6  ;;  %v692_v10 = vrot.slane %v679_v37, 6 }
 0x1ec   :  { %v640_v52 = vpop.f32.mrf.mxu0  ;;  %v681_v63 = vpop.f32.mrf.mxu1 }
 0x1ed   :  { %v698_v0 = vadd.f32 %v690_v42, %v599_v49  ;;  %v691_v1 = vrot.slane %v640_v52, 6  ;;  %v700_v12 = vadd.f32 %v692_v10, %v601_v11  ;;  %v693_v13 = vrot.slane %v681_v63, 6 }
 0x1ee   :  { %v642_v3 = vpop.f32.mrf.mxu0  ;;  %v683_v4 = vpop.f32.mrf.mxu1  ;;  %v722_v42 = vrot.slane %v5158_v19, 6 }
 0x1ef   :  { %v4105_v5 = vmul.f32 -1.442695, %v698_v0  ;;  %v699_v6 = vadd.f32 %v691_v1, %v600_v2  ;;  %v4107_v14 = vmul.f32 -1.442695, %v700_v12  ;;  %v701_v17 = vadd.f32 %v693_v13, %v602_v15  ;;  %v730_v13 = vld [vmem:[#allocation2 + $0x38] sm:$0x30] }
 0x1f0   :  { %v643_v7 = vpop.f32.mrf.mxu0  ;;  %v684_v8 = vpop.f32.mrf.mxu1 }
 0x1f1   :  { %4380 = vpow2.f32 %v4105_v5  ;;  %v4106_v9 = vmul.f32 -1.442695, %v699_v6  ;;  %v729_v8 = vld [vmem:[#allocation2] sm:$0x30] }
 0x1f3   :  { %4382 = vpow2.f32 %v4106_v9 }
 0x1f4   :  { %4384 = vpow2.f32 %v4107_v14 }
 0x1fe   :  { %v4381_v16 = vpop.eup %4380 }
 0x1ff   :  { %v711_v18 = vadd.f32 1.0, %v4381_v16 }
 0x200   :  { %v4383_v20 = vpop.eup %4382 }
 0x201   :  { %4386 = vrcp.f32 %v711_v18  ;;  %v712_v21 = vadd.f32 1.0, %v4383_v20  ;;  %v4385_v22 = vpop.eup %4384 }
 0x202   :  { %4388 = vtanh.f32 %v701_v17  ;;  %v713_v49 = vadd.f32 1.0, %v4385_v22 }
 0x203   :  { %4390 = vrcp.f32 %v712_v21 }
 0x204   :  { %4392 = vrcp.f32 %v713_v49  ;;  %v732_v49 = vld [vmem:[#allocation2 + $0x18] sm:$0x30] }
 0x20e   :  { %v4387_v23 = vpop.eup %4386 }
 0x20f   :  { %v4389_v24 = vpop.eup %4388 }
 0x210   :  { %v4391_v37 = vpop.eup %4390  ;;  %v725_v63 = vmul.f32 %v4389_v24, %v4387_v23  ;;  %v731_v23 = vld [vmem:[#allocation2 + $0x50] sm:$0x30] }
 0x211   :  { %v724_v52 = vmul.f32 %v4391_v37, %v722_v42  ;;  %v4393_v1 = vpop.eup %4392 }
 0x213   :  { %v5196_v0 = vadd.f32 %v725_v63, %v724_v52 }
 0x215   :  { %4394 = vtanh.f32 %v5196_v0 }
 0x222   :  { %v4395_v2 = vpop.eup %4394 }
 0x223   :  { %v728_v3 = vmul.f32 %v4395_v2, %v4393_v1 }
 0x225   :  { %v733_v4 = vpack.c.bf16 %v728_v3, %v728_v3 }
 0x227   :  { %v735_v5 = vrot.slane %v733_v4, 1 }
 0x229   :  { %770 = vmatmul.mubr.bf16.vlgmr.msra.gmra.mxu0 %v735_v5  ;;  %811 = vmatmul.mubr.bf16.vlgmr.msra.gmra.mxu1 %v735_v5 }
 0x22a   :  { %871 = vmatpush1.bf16.msra.mxu0 %v4905_v27  ;;  %912 = vmatpush1.bf16.msra.mxu1 %v4911_v29 }
 0x22b   :  { %872 = vmatprep.subr.bf16.mxu0 %v4917_v30  ;;  %913 = vmatprep.subr.bf16.mxu1 %v4922_v31 }
 0x22c   :  { %902 = vmatprep.mubr.bf16.mxu0 %v4775_v38  ;;  %943 = vmatprep.mubr.bf16.mxu1 %v4775_v38 }
 0x22e   :  { %873 = vmatpush1.bf16.msra.mxu0 %v4931_v32  ;;  %914 = vmatpush1.bf16.msra.mxu1 %v4936_v33 }
 0x22f   :  { %874 = vmatprep.subr.bf16.mxu0 %v4943_v34  ;;  %915 = vmatprep.subr.bf16.mxu1 %v4950_v35 }
 0x232   :  { %875 = vmatpush1.bf16.msra.mxu0 %v4955_v36  ;;  %916 = vmatpush1.bf16.msra.mxu1 %v4969_v39 }
 0x233   :  { %876 = vmatprep.subr.bf16.mxu0 %v4976_v40  ;;  %917 = vmatprep.subr.bf16.mxu1 %v4981_v41 }
 0x236   :  { %877 = vmatpush1.bf16.msra.mxu0 %v4995_v43  ;;  %918 = vmatpush1.bf16.msra.mxu1 %v5000_v44 }
 0x237   :  { %878 = vmatprep.subr.bf16.mxu0 %v5005_v45  ;;  %919 = vmatprep.subr.bf16.mxu1 %v5012_v46 }
 0x23a   :  { %879 = vmatpush1.bf16.msra.mxu0 %v5019_v47  ;;  %920 = vmatpush1.bf16.msra.mxu1 %v5024_v48 }
 0x23b   :  { %880 = vmatprep.subr.bf16.mxu0 %v5036_v50  ;;  %921 = vmatprep.subr.bf16.mxu1 %v5043_v51 }
 0x23e   :  { %881 = vmatpush1.bf16.msra.mxu0 %v5057_v53  ;;  %922 = vmatpush1.bf16.msra.mxu1 %v5062_v54 }
 0x23f   :  { %882 = vmatprep.subr.bf16.mxu0 %v5069_v55  ;;  %923 = vmatprep.subr.bf16.mxu1 %v5074_v56 }
 0x242   :  { %883 = vmatpush1.bf16.msra.mxu0 %v5085_v57  ;;  %924 = vmatpush1.bf16.msra.mxu1 %v5090_v58 }
 0x243   :  { %884 = vmatprep.subr.bf16.mxu0 %v5097_v59  ;;  %925 = vmatprep.subr.bf16.mxu1 %v5102_v60 }
 0x246   :  { %885 = vmatpush1.bf16.msra.mxu0 %v5109_v61  ;;  %926 = vmatpush1.bf16.msra.mxu1 %v5114_v62 }
 0x247   :  { %1003 = vmatprep.subr.bf16.mxu0 %v4895_v25  ;;  %1044 = vmatprep.subr.bf16.mxu1 %v4900_v26 }
 0x2e9   :  { %v771_v19 = vpop.f32.mrf.mxu0  ;;  %v812_v6 = vpop.f32.mrf.mxu1 }
 0x2ea   :  { %v823_v7 = vrot.slane %v771_v19, 4  ;;  %v825_v22 = vrot.slane %v812_v6, 4 }
 0x2eb   :  { %v773_v9 = vpop.f32.mrf.mxu0  ;;  %v814_v10 = vpop.f32.mrf.mxu1 }
 0x2ec   :  { %v831_v11 = vadd.f32 %v823_v7, %v729_v8  ;;  %v824_v12 = vrot.slane %v773_v9, 4  ;;  %v833_v24 = vadd.f32 %v825_v22, %v731_v23  ;;  %v826_v42 = vrot.slane %v814_v10, 4 }
 0x2ed   :  { %v775_v14 = vpop.f32.mrf.mxu0  ;;  %v816_v15 = vpop.f32.mrf.mxu1  ;;  %v855_v7 = vrot.slane %v5196_v0, 6 }
 0x2ee   :  { %v4108_v16 = vmul.f32 -1.442695, %v831_v11  ;;  %v832_v17 = vadd.f32 %v824_v12, %v730_v13  ;;  %v4110_v37 = vmul.f32 -1.442695, %v833_v24  ;;  %v834_v63 = vadd.f32 %v826_v42, %v732_v49  ;;  %v863_v42 = vld [vmem:[#allocation2 + $0x38] sm:$0xc0] }
 0x2ef   :  { %v776_v18 = vpop.f32.mrf.mxu0  ;;  %v817_v20 = vpop.f32.mrf.mxu1 }
 0x2f0   :  { %4396 = vpow2.f32 %v4108_v16  ;;  %v4109_v21 = vmul.f32 -1.442695, %v832_v17  ;;  %v862_v20 = vld [vmem:[#allocation2] sm:$0xc0] }
 0x2f2   :  { %4398 = vpow2.f32 %v4109_v21 }
 0x2f3   :  { %4400 = vpow2.f32 %v4110_v37 }
 0x2fd   :  { %v4397_v52 = vpop.eup %4396 }
 0x2fe   :  { %v844_v1 = vadd.f32 1.0, %v4397_v52 }
 0x2ff   :  { %v4399_v2 = vpop.eup %4398 }
 0x300   :  { %4402 = vrcp.f32 %v844_v1  ;;  %v845_v3 = vadd.f32 1.0, %v4399_v2  ;;  %v4401_v4 = vpop.eup %4400 }
 0x301   :  { %4404 = vtanh.f32 %v834_v63  ;;  %v846_v8 = vadd.f32 1.0, %v4401_v4 }
 0x302   :  { %4406 = vrcp.f32 %v845_v3 }
 0x303   :  { %4408 = vrcp.f32 %v846_v8 }
 0x30d   :  { %v4403_v5 = vpop.eup %4402 }
 0x30e   :  { %v4405_v19 = vpop.eup %4404 }
 0x30f   :  { %v4407_v6 = vpop.eup %4406  ;;  %v858_v10 = vmul.f32 %v4405_v19, %v4403_v5 }
 0x310   :  { %v857_v9 = vmul.f32 %v4407_v6, %v855_v7  ;;  %v4409_v12 = vpop.eup %4408  ;;  %v865_v7 = vld [vmem:[#allocation2 + $0x18] sm:$0xc0] }
 0x312   :  { %v5234_v11 = vadd.f32 %v858_v10, %v857_v9 }
 0x314   :  { %4410 = vtanh.f32 %v5234_v11 }
 0x321   :  { %v4411_v13 = vpop.eup %4410 }
 0x322   :  { %v861_v14 = vmul.f32 %v4411_v13, %v4409_v12 }
 0x324   :  { %v866_v15 = vpack.c.bf16 %v861_v14, %v861_v14 }
 0x326   :  { %v868_v16 = vrot.slane %v866_v15, 2 }
 0x328   :  { %903 = vmatmul.mubr.bf16.vlgmr.msra.gmra.mxu0 %v868_v16  ;;  %944 = vmatmul.mubr.bf16.vlgmr.msra.gmra.mxu1 %v868_v16  ;;  %v988_v16 = vrot.slane %v5234_v11, 6 }
 0x329   :  { %1004 = vmatpush1.bf16.msra.mxu0 %v4905_v27  ;;  %1045 = vmatpush1.bf16.msra.mxu1 %v4911_v29 }
 0x32a   :  { %1005 = vmatprep.subr.bf16.mxu0 %v4917_v30  ;;  %1046 = vmatprep.subr.bf16.mxu1 %v4922_v31 }
 0x32b   :  { %1035 = vmatprep.mubr.bf16.mxu0 %v4775_v38  ;;  %1076 = vmatprep.mubr.bf16.mxu1 %v4775_v38 }
 0x32d   :  { %1006 = vmatpush1.bf16.msra.mxu0 %v4931_v32  ;;  %1047 = vmatpush1.bf16.msra.mxu1 %v4936_v33 }
 0x32e   :  { %1007 = vmatprep.subr.bf16.mxu0 %v4943_v34  ;;  %1048 = vmatprep.subr.bf16.mxu1 %v4950_v35 }
 0x331   :  { %1008 = vmatpush1.bf16.msra.mxu0 %v4955_v36  ;;  %1049 = vmatpush1.bf16.msra.mxu1 %v4969_v39 }
 0x332   :  { %1009 = vmatprep.subr.bf16.mxu0 %v4976_v40  ;;  %1050 = vmatprep.subr.bf16.mxu1 %v4981_v41 }
 0x335   :  { %1010 = vmatpush1.bf16.msra.mxu0 %v4995_v43  ;;  %1051 = vmatpush1.bf16.msra.mxu1 %v5000_v44 }
 0x336   :  { %1011 = vmatprep.subr.bf16.mxu0 %v5005_v45  ;;  %1052 = vmatprep.subr.bf16.mxu1 %v5012_v46 }
 0x339   :  { %1012 = vmatpush1.bf16.msra.mxu0 %v5019_v47  ;;  %1053 = vmatpush1.bf16.msra.mxu1 %v5024_v48 }
 0x33a   :  { %1013 = vmatprep.subr.bf16.mxu0 %v5036_v50  ;;  %1054 = vmatprep.subr.bf16.mxu1 %v5043_v51 }
 0x33d   :  { %1014 = vmatpush1.bf16.msra.mxu0 %v5057_v53  ;;  %1055 = vmatpush1.bf16.msra.mxu1 %v5062_v54 }
 0x33e   :  { %1015 = vmatprep.subr.bf16.mxu0 %v5069_v55  ;;  %1056 = vmatprep.subr.bf16.mxu1 %v5074_v56 }
 0x341   :  { %1016 = vmatpush1.bf16.msra.mxu0 %v5085_v57  ;;  %1057 = vmatpush1.bf16.msra.mxu1 %v5090_v58 }
 0x342   :  { %1017 = vmatprep.subr.bf16.mxu0 %v5097_v59  ;;  %1058 = vmatprep.subr.bf16.mxu1 %v5102_v60 }
 0x345   :  { %1018 = vmatpush1.bf16.msra.mxu0 %v5109_v61  ;;  %1059 = vmatpush1.bf16.msra.mxu1 %v5114_v62 }
 0x346   :  { %1121 = vmatprep.subr.bf16.mxu0 %v4895_v25  ;;  %1162 = vmatprep.subr.bf16.mxu1 %v4900_v26  ;;  %v864_v26 = vld [vmem:[#allocation2 + $0x50] sm:$0xc0] }
 0x3e8   :  { %v904_v0 = vpop.f32.mrf.mxu0  ;;  %v945_v17 = vpop.f32.mrf.mxu1 }
 0x3e9   :  { %v956_v18 = vrot.slane %v904_v0, 2  ;;  %v958_v25 = vrot.slane %v945_v17, 2 }
 0x3ea   :  { %v906_v21 = vpop.f32.mrf.mxu0  ;;  %v947_v22 = vpop.f32.mrf.mxu1 }
 0x3eb   :  { %v964_v23 = vadd.f32 %v956_v18, %v862_v20  ;;  %v957_v24 = vrot.slane %v906_v21, 2  ;;  %v966_v4 = vadd.f32 %v958_v25, %v864_v26  ;;  %v959_v5 = vrot.slane %v947_v22, 2 }
 0x3ec   :  { %v908_v37 = vpop.f32.mrf.mxu0  ;;  %v949_v49 = vpop.f32.mrf.mxu1 }
 0x3ed   :  { %v4111_v52 = vmul.f32 -1.442695, %v964_v23  ;;  %v965_v63 = vadd.f32 %v957_v24, %v863_v42  ;;  %v4113_v19 = vmul.f32 -1.442695, %v966_v4  ;;  %v967_v8 = vadd.f32 %v959_v5, %v865_v7 }
 0x3ee   :  { %v909_v1 = vpop.f32.mrf.mxu0  ;;  %v950_v2 = vpop.f32.mrf.mxu1 }
 0x3ef   :  { %4412 = vpow2.f32 %v4111_v52  ;;  %v4112_v3 = vmul.f32 -1.442695, %v965_v63 }
 0x3f1   :  { %4414 = vpow2.f32 %v4112_v3 }
 0x3f2   :  { %4416 = vpow2.f32 %v4113_v19 }
 0x3fc   :  { %v4413_v6 = vpop.eup %4412 }
 0x3fd   :  { %v977_v9 = vadd.f32 1.0, %v4413_v6 }
 0x3fe   :  { %v4415_v10 = vpop.eup %4414 }
 0x3ff   :  { %4418 = vrcp.f32 %v977_v9  ;;  %v978_v12 = vadd.f32 1.0, %v4415_v10  ;;  %v4417_v13 = vpop.eup %4416 }
 0x400   :  { %4420 = vtanh.f32 %v967_v8  ;;  %v979_v17 = vadd.f32 1.0, %v4417_v13  ;;  %v5326_v13 = vld [vmem:[%s6642_s4 + $0xe0] ss:$16 sps:$4 sm:$0xff]  }
 0x401   :  { %4422 = vrcp.f32 %v978_v12 }
 0x402   :  { %4424 = vrcp.f32 %v979_v17  ;;  %v5358_v17 = vld [vmem:[%s6642_s4 + $0xc8] ss:$16 sps:$4 sm:$0xff]  }
 0x40c   :  { %v4419_v14 = vpop.eup %4418 }
 0x40d   :  { %v4421_v15 = vpop.eup %4420 }
 0x40e   :  { %v4423_v0 = vpop.eup %4422  ;;  %v991_v20 = vmul.f32 %v4421_v15, %v4419_v14  ;;  %v5332_v14 = vld [vmem:[%s6642_s4 + $0xe8] ss:$16 sps:$4 sm:$0xff]   ;;  %v5338_v15 = vld [vmem:[%s6642_s4 + $0xc4] ss:$16 sps:$4 sm:$0xff]  }
 0x40f   :  { %v990_v18 = vmul.f32 %v4423_v0, %v988_v16  ;;  %v4425_v22 = vpop.eup %4424  ;;  %v5344_v16 = vld [vmem:[%s6642_s4 + $0xcc] ss:$16 sps:$4 sm:$0xff]   ;;  %v5352_v0 = vld [vmem:[%s6642_s4 + $0xc0] ss:$16 sps:$4 sm:$0xff]  }
 0x411   :  { %v5272_v21 = vadd.f32 %v991_v20, %v990_v18  ;;  %v5364_v18 = vld [vmem:[%s6642_s4 + $0xa4] ss:$16 sps:$4 sm:$0xff]   ;;  %v5370_v20 = vld [vmem:[%s6642_s4 + $0xac] ss:$16 sps:$4 sm:$0xff]  }
 0x413   :  { %4426 = vtanh.f32 %v5272_v21  ;;  %v1109_v26 = vrot.slane %v5272_v21, 6  ;;  %v5376_v21 = vld [vmem:[%s6642_s4 + $0xa0] ss:$16 sps:$4 sm:$0xff]  }
 0x420   :  { %v4427_v23 = vpop.eup %4426 }
 0x421   :  { %v994_v24 = vmul.f32 %v4427_v23, %v4425_v22  ;;  %v5382_v22 = vld [vmem:[%s6642_s4 + $0xa8] ss:$16 sps:$4 sm:$0xff]   ;;  %v5388_v23 = vld [vmem:[%s6642_s4 + $0x84] ss:$16 sps:$4 sm:$0xff]  }
 0x423   :  { %v999_v42 = vpack.c.bf16 %v994_v24, %v994_v24  ;;  %v5394_v24 = vld [vmem:[%s6642_s4 + $0x8c] ss:$16 sps:$4 sm:$0xff]  }
 0x425   :  { %v1001_v37 = vrot.slane %v999_v42, 3  ;;  %v5400_v42 = vld [vmem:[%s6642_s4 + $0x80] ss:$16 sps:$4 sm:$0xff]  }
 0x427   :  { %1036 = vmatmul.mubr.bf16.vlgmr.msra.gmra.mxu0 %v1001_v37  ;;  %1077 = vmatmul.mubr.bf16.vlgmr.msra.gmra.mxu1 %v1001_v37  ;;  %v5406_v37 = vld [vmem:[%s6642_s4 + $0x88] ss:$16 sps:$4 sm:$0xff]  }
 0x428   :  { %1122 = vmatpush1.bf16.msra.mxu0 %v4905_v27  ;;  %1163 = vmatpush1.bf16.msra.mxu1 %v4911_v29  ;;  %v5310_v27 = vld [vmem:[%s6642_s4 + $0xe4] ss:$16 sps:$4 sm:$0xff]   ;;  %v5316_v29 = vld [vmem:[%s6642_s4 + $0xec] ss:$16 sps:$4 sm:$0xff]  }
 0x429   :  { %1123 = vmatprep.subr.bf16.mxu0 %v4917_v30  ;;  %1164 = vmatprep.subr.bf16.mxu1 %v4922_v31  ;;  %v995_v30 = vld [vmem:[#allocation2 + $0x30] sm:$0x3] }
 0x42a   :  { %1153 = vmatprep.mubr.bf16.mxu0 %v4775_v38  ;;  %1194 = vmatprep.mubr.bf16.mxu1 %v4775_v38 }
 0x42c   :  { %1124 = vmatpush1.bf16.msra.mxu0 %v4931_v32  ;;  %1165 = vmatpush1.bf16.msra.mxu1 %v4936_v33 }
 0x42d   :  { %1125 = vmatprep.subr.bf16.mxu0 %v4943_v34  ;;  %1166 = vmatprep.subr.bf16.mxu1 %v4950_v35  ;;  %v996_v34 = vld [vmem:[#allocation2 + $0x68] sm:$0x3] }
 0x430   :  { %1126 = vmatpush1.bf16.msra.mxu0 %v4955_v36  ;;  %1167 = vmatpush1.bf16.msra.mxu1 %v4969_v39 }
 0x431   :  { %1127 = vmatprep.subr.bf16.mxu0 %v4976_v40  ;;  %1168 = vmatprep.subr.bf16.mxu1 %v4981_v41 }
 0x434   :  { %1128 = vmatpush1.bf16.msra.mxu0 %v4995_v43  ;;  %1169 = vmatpush1.bf16.msra.mxu1 %v5000_v44 }
 0x435   :  { %1129 = vmatprep.subr.bf16.mxu0 %v5005_v45  ;;  %1170 = vmatprep.subr.bf16.mxu1 %v5012_v46 }
 0x438   :  { %1130 = vmatpush1.bf16.msra.mxu0 %v5019_v47  ;;  %1171 = vmatpush1.bf16.msra.mxu1 %v5024_v48  ;;  %v997_v47 = vld [vmem:[#allocation2 + $0x78] sm:$0x3] }
 0x439   :  { %1131 = vmatprep.subr.bf16.mxu0 %v5036_v50  ;;  %1172 = vmatprep.subr.bf16.mxu1 %v5043_v51  ;;  %v998_v51 = vld [vmem:[#allocation2 + $0x80] sm:$0x3] }
 0x43c   :  { %1132 = vmatpush1.bf16.msra.mxu0 %v5057_v53  ;;  %1173 = vmatpush1.bf16.msra.mxu1 %v5062_v54 }
 0x43d   :  { %1133 = vmatprep.subr.bf16.mxu0 %v5069_v55  ;;  %1174 = vmatprep.subr.bf16.mxu1 %v5074_v56 }
 0x440   :  { %1134 = vmatpush1.bf16.msra.mxu0 %v5085_v57  ;;  %1175 = vmatpush1.bf16.msra.mxu1 %v5090_v58 }
 0x441   :  { %1135 = vmatprep.subr.bf16.mxu0 %v5097_v59  ;;  %1176 = vmatprep.subr.bf16.mxu1 %v5102_v60 }
 0x444   :  { %1136 = vmatpush1.bf16.msra.mxu0 %v5109_v61  ;;  %1177 = vmatpush1.bf16.msra.mxu1 %v5114_v62 }
 0x445   :  { %1254 = vmatprep.subr.bf16.mxu0 %v5310_v27  ;;  %1295 = vmatprep.subr.bf16.mxu1 %v5316_v29 }
 0x4e7   :  { %v1037_v31 = vpop.f32.mrf.mxu0  ;;  %v1078_v32 = vpop.f32.mrf.mxu1 }
 0x4e8   :  { %v1085_v33 = vadd.f32 %v1037_v31, %v995_v30  ;;  %v1087_v48 = vadd.f32 %v1078_v32, %v997_v47  ;;  %v5412_v30 = vld [vmem:[%s6642_s4 + $0x64] ss:$16 sps:$4 sm:$0xff]   ;;  %v5418_v31 = vld [vmem:[%s6642_s4 + $0x6c] ss:$16 sps:$4 sm:$0xff]   ;;  %v5424_v32 = vld [vmem:[%s6642_s4 + $0x60] ss:$16 sps:$4 sm:$0xff]  }
 0x4e9   :  { %v1039_v35 = vpop.f32.mrf.mxu0  ;;  %v1080_v36 = vpop.f32.mrf.mxu1 }
 0x4ea   :  { %v4114_v39 = vmul.f32 -1.442695, %v1085_v33  ;;  %v1086_v40 = vadd.f32 %v1039_v35, %v996_v34  ;;  %v4116_v50 = vmul.f32 -1.442695, %v1087_v48  ;;  %v1088_v49 = vadd.f32 %v1080_v36, %v998_v51  ;;  %v5430_v33 = vld [vmem:[%s6642_s4 + $0x68] ss:$16 sps:$4 sm:$0xff]  }
 0x4eb   :  { %v1041_v41 = vpop.f32.mrf.mxu0  ;;  %v1082_v43 = vpop.f32.mrf.mxu1  ;;  %v5436_v34 = vld [vmem:[%s6642_s4 + $0x44] ss:$16 sps:$4 sm:$0xff]   ;;  %v5442_v35 = vld [vmem:[%s6642_s4 + $0x4c] ss:$16 sps:$4 sm:$0xff]   ;;  %v1119_v51 = vld [vmem:[#allocation2 + $0x80] sm:$0xc] }
 0x4ec   :  { %4428 = vpow2.f32 %v4114_v39  ;;  %v4115_v44 = vmul.f32 -1.442695, %v1086_v40  ;;  %v1117_v40 = vld [vmem:[#allocation2 + $0x68] sm:$0xc] }
 0x4ed   :  { %v1042_v45 = vpop.f32.mrf.mxu0  ;;  %v1083_v46 = vpop.f32.mrf.mxu1 }
 0x4ee   :  { %4430 = vpow2.f32 %v4115_v44  ;;  %v1118_v46 = vld [vmem:[#allocation2 + $0x78] sm:$0xc] }
 0x4ef   :  { %4432 = vpow2.f32 %v4116_v50 }
 0x4f9   :  { %v4429_v11 = vpop.eup %4428 }
 0x4fa   :  { %v1098_v52 = vadd.f32 1.0, %v4429_v11 }
 0x4fb   :  { %v4431_v63 = vpop.eup %4430 }
 0x4fc   :  { %4434 = vrcp.f32 %v1098_v52  ;;  %v1099_v1 = vadd.f32 1.0, %v4431_v63  ;;  %v4433_v2 = vpop.eup %4432 }
 0x4fd   :  { %4436 = vtanh.f32 %v1088_v49  ;;  %v1100_v5 = vadd.f32 1.0, %v4433_v2 }
 0x4fe   :  { %4438 = vrcp.f32 %v1099_v1 }
 0x4ff   :  { %4440 = vrcp.f32 %v1100_v5 }
 0x509   :  { %v4435_v3 = vpop.eup %4434 }
 0x50a   :  { %v4437_v25 = vpop.eup %4436 }
 0x50b   :  { %v4439_v4 = vpop.eup %4438  ;;  %v1112_v7 = vmul.f32 %v4437_v25, %v4435_v3 }
 0x50c   :  { %v1111_v19 = vmul.f32 %v4439_v4, %v1109_v26  ;;  %v4441_v8 = vpop.eup %4440 }
 0x50e   :  { %v5320_v6 = vadd.f32 %v1112_v7, %v1111_v19 }
 0x510   :  { %4442 = vtanh.f32 %v5320_v6  ;;  %v1239_v26 = vrot.slane %v5320_v6, 6  ;;  %v5486_v6 = vld [vmem:[%s6642_s4 + $0x40] ss:$16 sps:$4 sm:$0xff]  }
 0x51d   :  { %v4443_v9 = vpop.eup %4442 }
 0x51e   :  { %v1115_v10 = vmul.f32 %v4443_v9, %v4441_v8 }
 0x520   :  { %v1120_v12 = vpack.c.bf16 %v1115_v10, %v1115_v10 }
 0x522   :  { %1154 = vmatmul.mubr.bf16.vlgmr.msra.gmra.mxu0 %v1120_v12  ;;  %1195 = vmatmul.mubr.bf16.vlgmr.msra.gmra.mxu1 %v1120_v12 }
 0x523   :  { %1255 = vmatpush1.bf16.msra.mxu0 %v5326_v13  ;;  %1296 = vmatpush1.bf16.msra.mxu1 %v5332_v14 }
 0x524   :  { %1256 = vmatprep.subr.bf16.mxu0 %v5338_v15  ;;  %1297 = vmatprep.subr.bf16.mxu1 %v5344_v16 }
 0x525   :  { %1286 = vmatprep.mubr.bf16.mxu0 %v4775_v38  ;;  %1327 = vmatprep.mubr.bf16.mxu1 %v4775_v38 }
 0x527   :  { %1257 = vmatpush1.bf16.msra.mxu0 %v5352_v0  ;;  %1298 = vmatpush1.bf16.msra.mxu1 %v5358_v17 }
 0x528   :  { %1258 = vmatprep.subr.bf16.mxu0 %v5364_v18  ;;  %1299 = vmatprep.subr.bf16.mxu1 %v5370_v20 }
 0x52b   :  { %1259 = vmatpush1.bf16.msra.mxu0 %v5376_v21  ;;  %1300 = vmatpush1.bf16.msra.mxu1 %v5382_v22 }
 0x52c   :  { %1260 = vmatprep.subr.bf16.mxu0 %v5388_v23  ;;  %1301 = vmatprep.subr.bf16.mxu1 %v5394_v24 }
 0x52f   :  { %1261 = vmatpush1.bf16.msra.mxu0 %v5400_v42  ;;  %1302 = vmatpush1.bf16.msra.mxu1 %v5406_v37 }
 0x530   :  { %1262 = vmatprep.subr.bf16.mxu0 %v5412_v30  ;;  %1303 = vmatprep.subr.bf16.mxu1 %v5418_v31 }
 0x533   :  { %1263 = vmatpush1.bf16.msra.mxu0 %v5424_v32  ;;  %1304 = vmatpush1.bf16.msra.mxu1 %v5430_v33 }
 0x534   :  { %1264 = vmatprep.subr.bf16.mxu0 %v5436_v34  ;;  %1305 = vmatprep.subr.bf16.mxu1 %v5442_v35 }
 0x537   :  { %1265 = vmatpush1.bf16.msra.mxu0 %v5057_v53  ;;  %1306 = vmatpush1.bf16.msra.mxu1 %v5062_v54 }
 0x538   :  { %1266 = vmatprep.subr.bf16.mxu0 %v5069_v55  ;;  %1307 = vmatprep.subr.bf16.mxu1 %v5074_v56  ;;  %v1116_v56 = vld [vmem:[#allocation2 + $0x30] sm:$0xc] }
 0x53b   :  { %1267 = vmatpush1.bf16.msra.mxu0 %v5085_v57  ;;  %1308 = vmatpush1.bf16.msra.mxu1 %v5090_v58 }
 0x53c   :  { %1268 = vmatprep.subr.bf16.mxu0 %v5097_v59  ;;  %1309 = vmatprep.subr.bf16.mxu1 %v5102_v60 }
 0x53f   :  { %1269 = vmatpush1.bf16.msra.mxu0 %v5109_v61  ;;  %1310 = vmatpush1.bf16.msra.mxu1 %v5114_v62 }
 0x540   :  { %1387 = vmatprep.subr.bf16.mxu0 %v5310_v27  ;;  %1428 = vmatprep.subr.bf16.mxu1 %v5316_v29 }
 0x5e2   :  { %v1155_v53 = vpop.f32.mrf.mxu0  ;;  %v1196_v54 = vpop.f32.mrf.mxu1 }
 0x5e3   :  { %v1207_v55 = vrot.slane %v1155_v53, 6  ;;  %v1209_v45 = vrot.slane %v1196_v54, 6 }
 0x5e4   :  { %v1157_v36 = vpop.f32.mrf.mxu0  ;;  %v1198_v57 = vpop.f32.mrf.mxu1 }
 0x5e5   :  { %v1215_v39 = vadd.f32 %v1207_v55, %v1116_v56  ;;  %v1208_v58 = vrot.slane %v1157_v36, 6  ;;  %v1217_v47 = vadd.f32 %v1209_v45, %v1118_v46  ;;  %v1210_v48 = vrot.slane %v1198_v57, 6  ;;  %v5492_v55 = vld [vmem:[%s6642_s4 + $0x48] ss:$16 sps:$4 sm:$0xff]   ;;  %v5498_v56 = vld [vmem:[%s6642_s4 + $0x24] ss:$16 sps:$4 sm:$0xff]  }
 0x5e6   :  { %v1159_v59 = vpop.f32.mrf.mxu0  ;;  %v1200_v41 = vpop.f32.mrf.mxu1  ;;  %v5504_v36 = vld [vmem:[%s6642_s4 + $0x2c] ss:$16 sps:$4 sm:$0xff]   ;;  %v5510_v57 = vld [vmem:[%s6642_s4 + $0x20] ss:$16 sps:$4 sm:$0xff]  }
 0x5e7   :  { %v4117_v60 = vmul.f32 -1.442695, %v1215_v39  ;;  %v1216_v43 = vadd.f32 %v1208_v58, %v1117_v40  ;;  %v4119_v50 = vmul.f32 -1.442695, %v1217_v47  ;;  %v1218_v49 = vadd.f32 %v1210_v48, %v1119_v51  ;;  %v5516_v39 = vld [vmem:[%s6642_s4 + $0x28] ss:$16 sps:$4 sm:$0xff]  }
 0x5e8   :  { %v1160_v61 = vpop.f32.mrf.mxu0  ;;  %v1201_v44 = vpop.f32.mrf.mxu1  ;;  %v5522_v58 = vld [vmem:[%s6642_s4 + $0x4] ss:$16 sps:$4 sm:$0xff]   ;;  %v5528_v40 = vld [vmem:[%s6642_s4 + $0xc] ss:$16 sps:$4 sm:$0xff]   ;;  %v5534_v59 = vld [vmem:[%s6642_s4] ss:$16 sps:$4 sm:$0xff]  }
 0x5e9   :  { %4444 = vpow2.f32 %v4117_v60  ;;  %v4118_v62 = vmul.f32 -1.442695, %v1216_v43  ;;  %v5540_v41 = vld [vmem:[%s6642_s4 + $0x8] ss:$16 sps:$4 sm:$0xff]   ;;  %v1246_v44 = vld [vmem:[#allocation2 + $0x30] sm:$0x30] }
 0x5ea   :  { %v1247_v48 = vld [vmem:[#allocation2 + $0x68] sm:$0x30] }
 0x5eb   :  { %4446 = vpow2.f32 %v4118_v62 }
 0x5ec   :  { %4448 = vpow2.f32 %v4119_v50 }
 0x5f6   :  { %v4445_v11 = vpop.eup %4444 }
 0x5f7   :  { %v1228_v52 = vadd.f32 1.0, %v4445_v11 }
 0x5f8   :  { %v4447_v63 = vpop.eup %4446 }
 0x5f9   :  { %4450 = vrcp.f32 %v1228_v52  ;;  %v1229_v1 = vadd.f32 1.0, %v4447_v63  ;;  %v4449_v2 = vpop.eup %4448 }
 0x5fa   :  { %4452 = vtanh.f32 %v1218_v49  ;;  %v1230_v5 = vadd.f32 1.0, %v4449_v2 }
 0x5fb   :  { %4454 = vrcp.f32 %v1229_v1 }
 0x5fc   :  { %4456 = vrcp.f32 %v1230_v5  ;;  %v1249_v5 = vld [vmem:[#allocation2 + $0x80] sm:$0x30] }
 0x606   :  { %v4451_v3 = vpop.eup %4450 }
 0x607   :  { %v4453_v25 = vpop.eup %4452 }
 0x608   :  { %v4455_v4 = vpop.eup %4454  ;;  %v1242_v7 = vmul.f32 %v4453_v25, %v4451_v3  ;;  %v1248_v3 = vld [vmem:[#allocation2 + $0x78] sm:$0x30] }
 0x609   :  { %v1241_v19 = vmul.f32 %v4455_v4, %v1239_v26  ;;  %v4457_v9 = vpop.eup %4456 }
 0x60b   :  { %v5458_v8 = vadd.f32 %v1242_v7, %v1241_v19 }
 0x60d   :  { %4458 = vtanh.f32 %v5458_v8 }
 0x61a   :  { %v4459_v10 = vpop.eup %4458 }
 0x61b   :  { %v1245_v12 = vmul.f32 %v4459_v10, %v4457_v9 }
 0x61d   :  { %v1250_v53 = vpack.c.bf16 %v1245_v12, %v1245_v12 }
 0x61f   :  { %v1252_v54 = vrot.slane %v1250_v53, 1 }
 0x621   :  { %1287 = vmatmul.mubr.bf16.vlgmr.msra.gmra.mxu0 %v1252_v54  ;;  %1328 = vmatmul.mubr.bf16.vlgmr.msra.gmra.mxu1 %v1252_v54 }
 0x622   :  { %1388 = vmatpush1.bf16.msra.mxu0 %v5326_v13  ;;  %1429 = vmatpush1.bf16.msra.mxu1 %v5332_v14 }
 0x623   :  { %1389 = vmatprep.subr.bf16.mxu0 %v5338_v15  ;;  %1430 = vmatprep.subr.bf16.mxu1 %v5344_v16 }
 0x624   :  { %1419 = vmatprep.mubr.bf16.mxu0 %v4775_v38  ;;  %1460 = vmatprep.mubr.bf16.mxu1 %v4775_v38 }
 0x626   :  { %1390 = vmatpush1.bf16.msra.mxu0 %v5352_v0  ;;  %1431 = vmatpush1.bf16.msra.mxu1 %v5358_v17 }
 0x627   :  { %1391 = vmatprep.subr.bf16.mxu0 %v5364_v18  ;;  %1432 = vmatprep.subr.bf16.mxu1 %v5370_v20 }
 0x62a   :  { %1392 = vmatpush1.bf16.msra.mxu0 %v5376_v21  ;;  %1433 = vmatpush1.bf16.msra.mxu1 %v5382_v22 }
 0x62b   :  { %1393 = vmatprep.subr.bf16.mxu0 %v5388_v23  ;;  %1434 = vmatprep.subr.bf16.mxu1 %v5394_v24 }
 0x62e   :  { %1394 = vmatpush1.bf16.msra.mxu0 %v5400_v42  ;;  %1435 = vmatpush1.bf16.msra.mxu1 %v5406_v37 }
 0x62f   :  { %1395 = vmatprep.subr.bf16.mxu0 %v5412_v30  ;;  %1436 = vmatprep.subr.bf16.mxu1 %v5418_v31 }
 0x632   :  { %1396 = vmatpush1.bf16.msra.mxu0 %v5424_v32  ;;  %1437 = vmatpush1.bf16.msra.mxu1 %v5430_v33 }
 0x633   :  { %1397 = vmatprep.subr.bf16.mxu0 %v5436_v34  ;;  %1438 = vmatprep.subr.bf16.mxu1 %v5442_v35 }
 0x636   :  { %1398 = vmatpush1.bf16.msra.mxu0 %v5486_v6  ;;  %1439 = vmatpush1.bf16.msra.mxu1 %v5492_v55 }
 0x637   :  { %1399 = vmatprep.subr.bf16.mxu0 %v5498_v56  ;;  %1440 = vmatprep.subr.bf16.mxu1 %v5504_v36 }
 0x63a   :  { %1400 = vmatpush1.bf16.msra.mxu0 %v5510_v57  ;;  %1441 = vmatpush1.bf16.msra.mxu1 %v5516_v39 }
 0x63b   :  { %1401 = vmatprep.subr.bf16.mxu0 %v5522_v58  ;;  %1442 = vmatprep.subr.bf16.mxu1 %v5528_v40 }
 0x63e   :  { %1402 = vmatpush1.bf16.msra.mxu0 %v5534_v59  ;;  %1443 = vmatpush1.bf16.msra.mxu1 %v5540_v41 }
 0x63f   :  { %1520 = vmatprep.subr.bf16.mxu0 %v5310_v27  ;;  %1561 = vmatprep.subr.bf16.mxu1 %v5316_v29 }
 0x6e1   :  { %v1288_v60 = vpop.f32.mrf.mxu0  ;;  %v1329_v43 = vpop.f32.mrf.mxu1 }
 0x6e2   :  { %v1340_v61 = vrot.slane %v1288_v60, 4  ;;  %v1342_v2 = vrot.slane %v1329_v43, 4 }
 0x6e3   :  { %v1290_v62 = vpop.f32.mrf.mxu0  ;;  %v1331_v45 = vpop.f32.mrf.mxu1 }
 0x6e4   :  { %v1348_v46 = vadd.f32 %v1340_v61, %v1246_v44  ;;  %v1341_v47 = vrot.slane %v1290_v62, 4  ;;  %v1350_v25 = vadd.f32 %v1342_v2, %v1248_v3  ;;  %v1343_v26 = vrot.slane %v1331_v45, 4 }
 0x6e5   :  { %v1292_v50 = vpop.f32.mrf.mxu0  ;;  %v1333_v51 = vpop.f32.mrf.mxu1  ;;  %v1372_v61 = vrot.slane %v5458_v8, 6 }
 0x6e6   :  { %v4120_v11 = vmul.f32 -1.442695, %v1348_v46  ;;  %v1349_v49 = vadd.f32 %v1341_v47, %v1247_v48  ;;  %v4122_v4 = vmul.f32 -1.442695, %v1350_v25  ;;  %v1351_v7 = vadd.f32 %v1343_v26, %v1249_v5  ;;  %v1380_v26 = vld [vmem:[#allocation2 + $0x68] sm:$0xc0] }
 0x6e7   :  { %v1293_v52 = vpop.f32.mrf.mxu0  ;;  %v1334_v63 = vpop.f32.mrf.mxu1 }
 0x6e8   :  { %4460 = vpow2.f32 %v4120_v11  ;;  %v4121_v1 = vmul.f32 -1.442695, %v1349_v49  ;;  %v1379_v63 = vld [vmem:[#allocation2 + $0x30] sm:$0xc0] }
 0x6ea   :  { %4462 = vpow2.f32 %v4121_v1 }
 0x6eb   :  { %4464 = vpow2.f32 %v4122_v4 }
 0x6f5   :  { %v4461_v19 = vpop.eup %4460 }
 0x6f6   :  { %v1361_v9 = vadd.f32 1.0, %v4461_v19 }
 0x6f7   :  { %v4463_v10 = vpop.eup %4462 }
 0x6f8   :  { %4466 = vrcp.f32 %v1361_v9  ;;  %v1362_v12 = vadd.f32 1.0, %v4463_v10  ;;  %v4465_v53 = vpop.eup %4464 }
 0x6f9   :  { %4468 = vtanh.f32 %v1351_v7  ;;  %v1363_v44 = vadd.f32 1.0, %v4465_v53 }
 0x6fa   :  { %4470 = vrcp.f32 %v1362_v12 }
 0x6fb   :  { %4472 = vrcp.f32 %v1363_v44  ;;  %v1382_v44 = vld [vmem:[#allocation2 + $0x80] sm:$0xc0] }
 0x705   :  { %v4467_v54 = vpop.eup %4466 }
 0x706   :  { %v4469_v60 = vpop.eup %4468 }
 0x707   :  { %v4471_v43 = vpop.eup %4470  ;;  %v1375_v45 = vmul.f32 %v4469_v60, %v4467_v54  ;;  %v1381_v54 = vld [vmem:[#allocation2 + $0x78] sm:$0xc0] }
 0x708   :  { %v1374_v62 = vmul.f32 %v4471_v43, %v1372_v61  ;;  %v4473_v47 = vpop.eup %4472 }
 0x70a   :  { %v5546_v46 = vadd.f32 %v1375_v45, %v1374_v62 }
 0x70c   :  { %4474 = vtanh.f32 %v5546_v46 }
 0x719   :  { %v4475_v48 = vpop.eup %4474 }
 0x71a   :  { %v1378_v50 = vmul.f32 %v4475_v48, %v4473_v47 }
 0x71c   :  { %v1383_v51 = vpack.c.bf16 %v1378_v50, %v1378_v50 }
 0x71e   :  { %v1385_v11 = vrot.slane %v1383_v51, 2 }
 0x720   :  { %1420 = vmatmul.mubr.bf16.vlgmr.msra.gmra.mxu0 %v1385_v11  ;;  %1461 = vmatmul.mubr.bf16.vlgmr.msra.gmra.mxu1 %v1385_v11 }
 0x721   :  { %1521 = vmatpush1.bf16.msra.mxu0 %v5326_v13  ;;  %1562 = vmatpush1.bf16.msra.mxu1 %v5332_v14 }
 0x722   :  { %1522 = vmatprep.subr.bf16.mxu0 %v5338_v15  ;;  %1563 = vmatprep.subr.bf16.mxu1 %v5344_v16 }
 0x723   :  { %1552 = vmatprep.mubr.bf16.mxu0 %v4775_v38  ;;  %1593 = vmatprep.mubr.bf16.mxu1 %v4775_v38 }
 0x725   :  { %1523 = vmatpush1.bf16.msra.mxu0 %v5352_v0  ;;  %1564 = vmatpush1.bf16.msra.mxu1 %v5358_v17 }
 0x726   :  { %1524 = vmatprep.subr.bf16.mxu0 %v5364_v18  ;;  %1565 = vmatprep.subr.bf16.mxu1 %v5370_v20 }
 0x729   :  { %1525 = vmatpush1.bf16.msra.mxu0 %v5376_v21  ;;  %1566 = vmatpush1.bf16.msra.mxu1 %v5382_v22 }
 0x72a   :  { %1526 = vmatprep.subr.bf16.mxu0 %v5388_v23  ;;  %1567 = vmatprep.subr.bf16.mxu1 %v5394_v24 }
 0x72d   :  { %1527 = vmatpush1.bf16.msra.mxu0 %v5400_v42  ;;  %1568 = vmatpush1.bf16.msra.mxu1 %v5406_v37 }
 0x72e   :  { %1528 = vmatprep.subr.bf16.mxu0 %v5412_v30  ;;  %1569 = vmatprep.subr.bf16.mxu1 %v5418_v31 }
 0x731   :  { %1529 = vmatpush1.bf16.msra.mxu0 %v5424_v32  ;;  %1570 = vmatpush1.bf16.msra.mxu1 %v5430_v33 }
 0x732   :  { %1530 = vmatprep.subr.bf16.mxu0 %v5436_v34  ;;  %1571 = vmatprep.subr.bf16.mxu1 %v5442_v35 }
 0x735   :  { %1531 = vmatpush1.bf16.msra.mxu0 %v5486_v6  ;;  %1572 = vmatpush1.bf16.msra.mxu1 %v5492_v55 }
 0x736   :  { %1532 = vmatprep.subr.bf16.mxu0 %v5498_v56  ;;  %1573 = vmatprep.subr.bf16.mxu1 %v5504_v36 }
 0x739   :  { %1533 = vmatpush1.bf16.msra.mxu0 %v5510_v57  ;;  %1574 = vmatpush1.bf16.msra.mxu1 %v5516_v39 }
 0x73a   :  { %1534 = vmatprep.subr.bf16.mxu0 %v5522_v58  ;;  %1575 = vmatprep.subr.bf16.mxu1 %v5528_v40 }
 0x73d   :  { %1535 = vmatpush1.bf16.msra.mxu0 %v5534_v59  ;;  %1576 = vmatpush1.bf16.msra.mxu1 %v5540_v41 }
 0x73e   :  { %1638 = vmatprep.subr.bf16.mxu0 %v5310_v27  ;;  %1679 = vmatprep.subr.bf16.mxu1 %v5316_v29 }
 0x7e0   :  { %v1421_v8 = vpop.f32.mrf.mxu0  ;;  %v1462_v49 = vpop.f32.mrf.mxu1 }
 0x7e1   :  { %v1473_v52 = vrot.slane %v1421_v8, 2  ;;  %v1475_v53 = vrot.slane %v1462_v49, 2 }
 0x7e2   :  { %v1423_v1 = vpop.f32.mrf.mxu0  ;;  %v1464_v2 = vpop.f32.mrf.mxu1 }
 0x7e3   :  { %v1481_v3 = vadd.f32 %v1473_v52, %v1379_v63  ;;  %v1474_v25 = vrot.slane %v1423_v1, 2  ;;  %v1483_v60 = vadd.f32 %v1475_v53, %v1381_v54  ;;  %v1476_v61 = vrot.slane %v1464_v2, 2 }
 0x7e4   :  { %v1425_v4 = vpop.f32.mrf.mxu0  ;;  %v1466_v5 = vpop.f32.mrf.mxu1  ;;  %v1505_v52 = vrot.slane %v5546_v46, 6  ;;  %v1512_v46 = vld [vmem:[#allocation2 + $0x8] sm:$0x3] }
 0x7e5   :  { %v4123_v19 = vmul.f32 -1.442695, %v1481_v3  ;;  %v1482_v7 = vadd.f32 %v1474_v25, %v1380_v26  ;;  %v4125_v43 = vmul.f32 -1.442695, %v1483_v60  ;;  %v1484_v45 = vadd.f32 %v1476_v61, %v1382_v44 }
 0x7e6   :  { %v1426_v9 = vpop.f32.mrf.mxu0  ;;  %v1467_v10 = vpop.f32.mrf.mxu1 }
 0x7e7   :  { %4476 = vpow2.f32 %v4123_v19  ;;  %v4124_v12 = vmul.f32 -1.442695, %v1482_v7 }
 0x7e9   :  { %4478 = vpow2.f32 %v4124_v12  ;;  %v1513_v12 = vld [vmem:[#allocation2 + $0x88] sm:$0x3] }
 0x7ea   :  { %4480 = vpow2.f32 %v4125_v43 }
 0x7f4   :  { %v4477_v62 = vpop.eup %4476 }
 0x7f5   :  { %v1494_v47 = vadd.f32 1.0, %v4477_v62 }
 0x7f6   :  { %v4479_v48 = vpop.eup %4478 }
 0x7f7   :  { %4482 = vrcp.f32 %v1494_v47  ;;  %v1495_v50 = vadd.f32 1.0, %v4479_v48  ;;  %v4481_v51 = vpop.eup %4480  ;;  %v1514_v48 = vld [vmem:[#allocation2 + $0x28] sm:$0x3] }
 0x7f8   :  { %4484 = vtanh.f32 %v1484_v45  ;;  %v1496_v63 = vadd.f32 1.0, %v4481_v51 }
 0x7f9   :  { %4486 = vrcp.f32 %v1495_v50 }
 0x7fa   :  { %4488 = vrcp.f32 %v1496_v63 }
 0x804   :  { %v4483_v11 = vpop.eup %4482 }
 0x805   :  { %v4485_v8 = vpop.eup %4484 }
 0x806   :  { %v4487_v49 = vpop.eup %4486  ;;  %v1508_v2 = vmul.f32 %v4485_v8, %v4483_v11  ;;  %v1515_v11 = vld [vmem:[#allocation2 + $0x40] sm:$0x3] }
 0x807   :  { %v1507_v1 = vmul.f32 %v4487_v49, %v1505_v52  ;;  %v4489_v25 = vpop.eup %4488 }
 0x809   :  { %v5584_v3 = vadd.f32 %v1508_v2, %v1507_v1 }
 0x80b   :  { %4490 = vtanh.f32 %v5584_v3 }
 0x818   :  { %v4491_v26 = vpop.eup %4490 }
 0x819   :  { %v1511_v4 = vmul.f32 %v4491_v26, %v4489_v25 }
 0x81b   :  { %v1516_v5 = vpack.c.bf16 %v1511_v4, %v1511_v4  ;;  %v1626_v4 = vrot.slane %v5584_v3, 6 }
 0x81d   :  { %v1518_v19 = vrot.slane %v1516_v5, 3 }
 0x81f   :  { %1553 = vmatmul.mubr.bf16.vlgmr.msra.gmra.mxu0 %v1518_v19  ;;  %1594 = vmatmul.mubr.bf16.vlgmr.msra.gmra.mxu1 %v1518_v19 }
 0x820   :  { %1639 = vmatpush1.bf16.msra.mxu0 %v5326_v13  ;;  %1680 = vmatpush1.bf16.msra.mxu1 %v5332_v14 }
 0x821   :  { %1640 = vmatprep.subr.bf16.mxu0 %v5338_v15  ;;  %1681 = vmatprep.subr.bf16.mxu1 %v5344_v16 }
 0x822   :  { %1670 = vmatprep.mubr.bf16.mxu0 %v4775_v38  ;;  %1711 = vmatprep.mubr.bf16.mxu1 %v4775_v38 }
 0x824   :  { %1641 = vmatpush1.bf16.msra.mxu0 %v5352_v0  ;;  %1682 = vmatpush1.bf16.msra.mxu1 %v5358_v17 }
 0x825   :  { %1642 = vmatprep.subr.bf16.mxu0 %v5364_v18  ;;  %1683 = vmatprep.subr.bf16.mxu1 %v5370_v20 }
 0x828   :  { %1643 = vmatpush1.bf16.msra.mxu0 %v5376_v21  ;;  %1684 = vmatpush1.bf16.msra.mxu1 %v5382_v22 }
 0x829   :  { %1644 = vmatprep.subr.bf16.mxu0 %v5388_v23  ;;  %1685 = vmatprep.subr.bf16.mxu1 %v5394_v24 }
 0x82c   :  { %1645 = vmatpush1.bf16.msra.mxu0 %v5400_v42  ;;  %1686 = vmatpush1.bf16.msra.mxu1 %v5406_v37 }
 0x82d   :  { %1646 = vmatprep.subr.bf16.mxu0 %v5412_v30  ;;  %1687 = vmatprep.subr.bf16.mxu1 %v5418_v31 }
 0x830   :  { %1647 = vmatpush1.bf16.msra.mxu0 %v5424_v32  ;;  %1688 = vmatpush1.bf16.msra.mxu1 %v5430_v33 }
 0x831   :  { %1648 = vmatprep.subr.bf16.mxu0 %v5436_v34  ;;  %1689 = vmatprep.subr.bf16.mxu1 %v5442_v35 }
 0x834   :  { %1649 = vmatpush1.bf16.msra.mxu0 %v5486_v6  ;;  %1690 = vmatpush1.bf16.msra.mxu1 %v5492_v55 }
 0x835   :  { %1650 = vmatprep.subr.bf16.mxu0 %v5498_v56  ;;  %1691 = vmatprep.subr.bf16.mxu1 %v5504_v36 }
 0x838   :  { %1651 = vmatpush1.bf16.msra.mxu0 %v5510_v57  ;;  %1692 = vmatpush1.bf16.msra.mxu1 %v5516_v39 }
 0x839   :  { %1652 = vmatprep.subr.bf16.mxu0 %v5522_v58  ;;  %1693 = vmatprep.subr.bf16.mxu1 %v5528_v40 }
 0x83c   :  { %1653 = vmatpush1.bf16.msra.mxu0 %v5534_v59  ;;  %1694 = vmatpush1.bf16.msra.mxu1 %v5540_v41 }
 0x83d   :  { %1771 = vmatprep.subr.bf16.mxu0 %v5310_v27  ;;  %1812 = vmatprep.subr.bf16.mxu1 %v5316_v29 }
 0x8df   :  { %v1554_v7 = vpop.f32.mrf.mxu0  ;;  %v1595_v9 = vpop.f32.mrf.mxu1 }
 0x8e0   :  { %v1602_v10 = vadd.f32 %v1554_v7, %v1512_v46  ;;  %v1604_v50 = vadd.f32 %v1595_v9, %v1514_v48  ;;  %v1634_v48 = vld [vmem:[#allocation2 + $0x88] sm:$0xc] }
 0x8e1   :  { %v1556_v53 = vpop.f32.mrf.mxu0  ;;  %v1597_v54 = vpop.f32.mrf.mxu1 }
 0x8e2   :  { %v4126_v60 = vmul.f32 -1.442695, %v1602_v10  ;;  %v1603_v61 = vadd.f32 %v1556_v53, %v1513_v12  ;;  %v4128_v51 = vmul.f32 -1.442695, %v1604_v50  ;;  %v1605_v52 = vadd.f32 %v1597_v54, %v1515_v11 }
 0x8e3   :  { %v1558_v43 = vpop.f32.mrf.mxu0  ;;  %v1599_v44 = vpop.f32.mrf.mxu1 }
 0x8e4   :  { %4492 = vpow2.f32 %v4126_v60  ;;  %v4127_v62 = vmul.f32 -1.442695, %v1603_v61  ;;  %v1633_v43 = vld [vmem:[#allocation2 + $0x8] sm:$0xc] }
 0x8e5   :  { %v1559_v45 = vpop.f32.mrf.mxu0  ;;  %v1600_v47 = vpop.f32.mrf.mxu1 }
 0x8e6   :  { %4494 = vpow2.f32 %v4127_v62 }
 0x8e7   :  { %4496 = vpow2.f32 %v4128_v51 }
 0x8f1   :  { %v4493_v8 = vpop.eup %4492 }
 0x8f2   :  { %v1615_v49 = vadd.f32 1.0, %v4493_v8 }
 0x8f3   :  { %v4495_v63 = vpop.eup %4494 }
 0x8f4   :  { %4498 = vrcp.f32 %v1615_v49  ;;  %v1616_v1 = vadd.f32 1.0, %v4495_v63  ;;  %v4497_v2 = vpop.eup %4496 }
 0x8f5   :  { %4500 = vtanh.f32 %v1605_v52  ;;  %v1617_v19 = vadd.f32 1.0, %v4497_v2  ;;  %v1635_v2 = vld [vmem:[#allocation2 + $0x28] sm:$0xc] }
 0x8f6   :  { %4502 = vrcp.f32 %v1616_v1 }
 0x8f7   :  { %4504 = vrcp.f32 %v1617_v19 }
 0x901   :  { %v4499_v25 = vpop.eup %4498 }
 0x902   :  { %v4501_v26 = vpop.eup %4500 }
 0x903   :  { %v4503_v5 = vpop.eup %4502  ;;  %v1629_v7 = vmul.f32 %v4501_v26, %v4499_v25 }
 0x904   :  { %v1628_v46 = vmul.f32 %v4503_v5, %v1626_v4  ;;  %v4505_v10 = vpop.eup %4504  ;;  %v1636_v5 = vld [vmem:[#allocation2 + $0x40] sm:$0xc] }
 0x906   :  { %v5622_v9 = vadd.f32 %v1629_v7, %v1628_v46 }
 0x908   :  { %4506 = vtanh.f32 %v5622_v9 }
 0x915   :  { %v4507_v12 = vpop.eup %4506 }
 0x916   :  { %v1632_v53 = vmul.f32 %v4507_v12, %v4505_v10 }
 0x918   :  { %v1637_v54 = vpack.c.bf16 %v1632_v53, %v1632_v53 }
 0x91a   :  { %1671 = vmatmul.mubr.bf16.vlgmr.msra.gmra.mxu0 %v1637_v54  ;;  %1712 = vmatmul.mubr.bf16.vlgmr.msra.gmra.mxu1 %v1637_v54 }
 0x91b   :  { %1772 = vmatpush1.bf16.msra.mxu0 %v5326_v13  ;;  %1813 = vmatpush1.bf16.msra.mxu1 %v5332_v14 }
 0x91c   :  { %1773 = vmatprep.subr.bf16.mxu0 %v5338_v15  ;;  %1814 = vmatprep.subr.bf16.mxu1 %v5344_v16 }
 0x91d   :  { %1803 = vmatprep.mubr.bf16.mxu0 %v4775_v38  ;;  %1844 = vmatprep.mubr.bf16.mxu1 %v4775_v38 }
 0x91f   :  { %1774 = vmatpush1.bf16.msra.mxu0 %v5352_v0  ;;  %1815 = vmatpush1.bf16.msra.mxu1 %v5358_v17 }
 0x920   :  { %1775 = vmatprep.subr.bf16.mxu0 %v5364_v18  ;;  %1816 = vmatprep.subr.bf16.mxu1 %v5370_v20 }
 0x923   :  { %1776 = vmatpush1.bf16.msra.mxu0 %v5376_v21  ;;  %1817 = vmatpush1.bf16.msra.mxu1 %v5382_v22 }
 0x924   :  { %1777 = vmatprep.subr.bf16.mxu0 %v5388_v23  ;;  %1818 = vmatprep.subr.bf16.mxu1 %v5394_v24 }
 0x927   :  { %1778 = vmatpush1.bf16.msra.mxu0 %v5400_v42  ;;  %1819 = vmatpush1.bf16.msra.mxu1 %v5406_v37 }
 0x928   :  { %1779 = vmatprep.subr.bf16.mxu0 %v5412_v30  ;;  %1820 = vmatprep.subr.bf16.mxu1 %v5418_v31 }
 0x92b   :  { %1780 = vmatpush1.bf16.msra.mxu0 %v5424_v32  ;;  %1821 = vmatpush1.bf16.msra.mxu1 %v5430_v33 }
 0x92c   :  { %1781 = vmatprep.subr.bf16.mxu0 %v5436_v34  ;;  %1822 = vmatprep.subr.bf16.mxu1 %v5442_v35 }
 0x92f   :  { %1782 = vmatpush1.bf16.msra.mxu0 %v5486_v6  ;;  %1823 = vmatpush1.bf16.msra.mxu1 %v5492_v55 }
 0x930   :  { %1783 = vmatprep.subr.bf16.mxu0 %v5498_v56  ;;  %1824 = vmatprep.subr.bf16.mxu1 %v5504_v36 }
 0x933   :  { %1784 = vmatpush1.bf16.msra.mxu0 %v5510_v57  ;;  %1825 = vmatpush1.bf16.msra.mxu1 %v5516_v39 }
 0x934   :  { %1785 = vmatprep.subr.bf16.mxu0 %v5522_v58  ;;  %1826 = vmatprep.subr.bf16.mxu1 %v5528_v40 }
 0x937   :  { %1786 = vmatpush1.bf16.msra.mxu0 %v5534_v59  ;;  %1827 = vmatpush1.bf16.msra.mxu1 %v5540_v41 }
 0x938   :  { %1904 = vmatprep.subr.bf16.mxu0 %v5310_v27  ;;  %1945 = vmatprep.subr.bf16.mxu1 %v5316_v29 }
 0x9da   :  { %v1672_v3 = vpop.f32.mrf.mxu0  ;;  %v1713_v60 = vpop.f32.mrf.mxu1 }
 0x9db   :  { %v1724_v61 = vrot.slane %v1672_v3, 6  ;;  %v1726_v1 = vrot.slane %v1713_v60, 6 }
 0x9dc   :  { %v1674_v44 = vpop.f32.mrf.mxu0  ;;  %v1715_v62 = vpop.f32.mrf.mxu1 }
 0x9dd   :  { %v1732_v45 = vadd.f32 %v1724_v61, %v1633_v43  ;;  %v1725_v47 = vrot.slane %v1674_v44, 6  ;;  %v1734_v25 = vadd.f32 %v1726_v1, %v1635_v2  ;;  %v1727_v26 = vrot.slane %v1715_v62, 6 }
 0x9de   :  { %v1676_v50 = vpop.f32.mrf.mxu0  ;;  %v1717_v51 = vpop.f32.mrf.mxu1  ;;  %v1756_v61 = vrot.slane %v5622_v9, 6 }
 0x9df   :  { %v4129_v11 = vmul.f32 -1.442695, %v1732_v45  ;;  %v1733_v8 = vadd.f32 %v1725_v47, %v1634_v48  ;;  %v4131_v4 = vmul.f32 -1.442695, %v1734_v25  ;;  %v1735_v46 = vadd.f32 %v1727_v26, %v1636_v5  ;;  %v1764_v26 = vld [vmem:[#allocation2 + $0x88] sm:$0x30] }
 0x9e0   :  { %v1677_v52 = vpop.f32.mrf.mxu0  ;;  %v1718_v49 = vpop.f32.mrf.mxu1 }
 0x9e1   :  { %4508 = vpow2.f32 %v4129_v11  ;;  %v4130_v63 = vmul.f32 -1.442695, %v1733_v8  ;;  %v1763_v49 = vld [vmem:[#allocation2 + $0x8] sm:$0x30] }
 0x9e3   :  { %4510 = vpow2.f32 %v4130_v63 }
 0x9e4   :  { %4512 = vpow2.f32 %v4131_v4 }
 0x9ee   :  { %v4509_v19 = vpop.eup %4508 }
 0x9ef   :  { %v1745_v7 = vadd.f32 1.0, %v4509_v19 }
 0x9f0   :  { %v4511_v10 = vpop.eup %4510 }
 0x9f1   :  { %4514 = vrcp.f32 %v1745_v7  ;;  %v1746_v12 = vadd.f32 1.0, %v4511_v10  ;;  %v4513_v53 = vpop.eup %4512 }
 0x9f2   :  { %4516 = vtanh.f32 %v1735_v46  ;;  %v1747_v43 = vadd.f32 1.0, %v4513_v53 }
 0x9f3   :  { %4518 = vrcp.f32 %v1746_v12 }
 0x9f4   :  { %4520 = vrcp.f32 %v1747_v43 }
 0x9fe   :  { %v4515_v54 = vpop.eup %4514 }
 0x9ff   :  { %v4517_v3 = vpop.eup %4516 }
 0xa00   :  { %v4519_v60 = vpop.eup %4518  ;;  %v1759_v62 = vmul.f32 %v4517_v3, %v4515_v54 }
 0xa01   :  { %v1758_v44 = vmul.f32 %v4519_v60, %v1756_v61  ;;  %v4521_v47 = vpop.eup %4520  ;;  %v1766_v61 = vld [vmem:[#allocation2 + $0x40] sm:$0x30] }
 0xa03   :  { %v5660_v45 = vadd.f32 %v1759_v62, %v1758_v44 }
 0xa05   :  { %4522 = vtanh.f32 %v5660_v45 }
 0xa12   :  { %v4523_v48 = vpop.eup %4522 }
 0xa13   :  { %v1762_v50 = vmul.f32 %v4523_v48, %v4521_v47 }
 0xa15   :  { %v1767_v51 = vpack.c.bf16 %v1762_v50, %v1762_v50 }
 0xa17   :  { %v1769_v11 = vrot.slane %v1767_v51, 1 }
 0xa19   :  { %1804 = vmatmul.mubr.bf16.vlgmr.msra.gmra.mxu0 %v1769_v11  ;;  %1845 = vmatmul.mubr.bf16.vlgmr.msra.gmra.mxu1 %v1769_v11  ;;  %v1889_v11 = vrot.slane %v5660_v45, 6 }
 0xa1a   :  { %1905 = vmatpush1.bf16.msra.mxu0 %v5326_v13  ;;  %1946 = vmatpush1.bf16.msra.mxu1 %v5332_v14 }
 0xa1b   :  { %1906 = vmatprep.subr.bf16.mxu0 %v5338_v15  ;;  %1947 = vmatprep.subr.bf16.mxu1 %v5344_v16 }
 0xa1c   :  { %1936 = vmatprep.mubr.bf16.mxu0 %v4775_v38  ;;  %1977 = vmatprep.mubr.bf16.mxu1 %v4775_v38 }
 0xa1e   :  { %1907 = vmatpush1.bf16.msra.mxu0 %v5352_v0  ;;  %1948 = vmatpush1.bf16.msra.mxu1 %v5358_v17 }
 0xa1f   :  { %1908 = vmatprep.subr.bf16.mxu0 %v5364_v18  ;;  %1949 = vmatprep.subr.bf16.mxu1 %v5370_v20 }
 0xa22   :  { %1909 = vmatpush1.bf16.msra.mxu0 %v5376_v21  ;;  %1950 = vmatpush1.bf16.msra.mxu1 %v5382_v22 }
 0xa23   :  { %1910 = vmatprep.subr.bf16.mxu0 %v5388_v23  ;;  %1951 = vmatprep.subr.bf16.mxu1 %v5394_v24 }
 0xa26   :  { %1911 = vmatpush1.bf16.msra.mxu0 %v5400_v42  ;;  %1952 = vmatpush1.bf16.msra.mxu1 %v5406_v37 }
 0xa27   :  { %1912 = vmatprep.subr.bf16.mxu0 %v5412_v30  ;;  %1953 = vmatprep.subr.bf16.mxu1 %v5418_v31 }
 0xa2a   :  { %1913 = vmatpush1.bf16.msra.mxu0 %v5424_v32  ;;  %1954 = vmatpush1.bf16.msra.mxu1 %v5430_v33 }
 0xa2b   :  { %1914 = vmatprep.subr.bf16.mxu0 %v5436_v34  ;;  %1955 = vmatprep.subr.bf16.mxu1 %v5442_v35 }
 0xa2e   :  { %1915 = vmatpush1.bf16.msra.mxu0 %v5486_v6  ;;  %1956 = vmatpush1.bf16.msra.mxu1 %v5492_v55 }
 0xa2f   :  { %1916 = vmatprep.subr.bf16.mxu0 %v5498_v56  ;;  %1957 = vmatprep.subr.bf16.mxu1 %v5504_v36 }
 0xa32   :  { %1917 = vmatpush1.bf16.msra.mxu0 %v5510_v57  ;;  %1958 = vmatpush1.bf16.msra.mxu1 %v5516_v39 }
 0xa33   :  { %1918 = vmatprep.subr.bf16.mxu0 %v5522_v58  ;;  %1959 = vmatprep.subr.bf16.mxu1 %v5528_v40 }
 0xa36   :  { %1919 = vmatpush1.bf16.msra.mxu0 %v5534_v59  ;;  %1960 = vmatpush1.bf16.msra.mxu1 %v5540_v41 }
 0xa37   :  { %2037 = vmatprep.subr.bf16.mxu0 %v5310_v27  ;;  %2078 = vmatprep.subr.bf16.mxu1 %v5316_v29  ;;  %v1765_v29 = vld [vmem:[#allocation2 + $0x28] sm:$0x30] }
 0xad9   :  { %v1805_v9 = vpop.f32.mrf.mxu0  ;;  %v1846_v8 = vpop.f32.mrf.mxu1 }
 0xada   :  { %v1857_v52 = vrot.slane %v1805_v9, 4  ;;  %v1859_v27 = vrot.slane %v1846_v8, 4 }
 0xadb   :  { %v1807_v63 = vpop.f32.mrf.mxu0  ;;  %v1848_v1 = vpop.f32.mrf.mxu1 }
 0xadc   :  { %v1865_v2 = vadd.f32 %v1857_v52, %v1763_v49  ;;  %v1858_v25 = vrot.slane %v1807_v63, 4  ;;  %v1867_v53 = vadd.f32 %v1859_v27, %v1765_v29  ;;  %v1860_v54 = vrot.slane %v1848_v1, 4 }
 0xadd   :  { %v1809_v4 = vpop.f32.mrf.mxu0  ;;  %v1850_v5 = vpop.f32.mrf.mxu1 }
 0xade   :  { %v4132_v19 = vmul.f32 -1.442695, %v1865_v2  ;;  %v1866_v46 = vadd.f32 %v1858_v25, %v1764_v26  ;;  %v4134_v3 = vmul.f32 -1.442695, %v1867_v53  ;;  %v1868_v43 = vadd.f32 %v1860_v54, %v1766_v61 }
 0xadf   :  { %v1810_v7 = vpop.f32.mrf.mxu0  ;;  %v1851_v10 = vpop.f32.mrf.mxu1 }
 0xae0   :  { %4524 = vpow2.f32 %v4132_v19  ;;  %v4133_v12 = vmul.f32 -1.442695, %v1866_v46  ;;  %v1899_v46 = vld [vmem:[#allocation2 + $0x40] sm:$0xc0] }
 0xae2   :  { %4526 = vpow2.f32 %v4133_v12 }
 0xae3   :  { %4528 = vpow2.f32 %v4134_v3 }
 0xaed   :  { %v4525_v60 = vpop.eup %4524 }
 0xaee   :  { %v1878_v44 = vadd.f32 1.0, %v4525_v60 }
 0xaef   :  { %v4527_v62 = vpop.eup %4526 }
 0xaf0   :  { %4530 = vrcp.f32 %v1878_v44  ;;  %v1879_v47 = vadd.f32 1.0, %v4527_v62  ;;  %v4529_v48 = vpop.eup %4528 }
 0xaf1   :  { %4532 = vtanh.f32 %v1868_v43  ;;  %v1880_v8 = vadd.f32 1.0, %v4529_v48 }
 0xaf2   :  { %4534 = vrcp.f32 %v1879_v47 }
 0xaf3   :  { %4536 = vrcp.f32 %v1880_v8  ;;  %v5752_v8 = vld [vmem:[%s6642_s4 + $0xe0] ss:$16 sps:$4 sm:$0xff]  }
 0xafd   :  { %v4531_v50 = vpop.eup %4530 }
 0xafe   :  { %v4533_v51 = vpop.eup %4532 }
 0xaff   :  { %v4535_v9 = vpop.eup %4534  ;;  %v1892_v49 = vmul.f32 %v4533_v51, %v4531_v50 }
 0xb00   :  { %v1891_v52 = vmul.f32 %v4535_v9, %v1889_v11  ;;  %v4537_v1 = vpop.eup %4536 }
 0xb02   :  { %v5698_v63 = vadd.f32 %v1892_v49, %v1891_v52  ;;  %v5758_v52 = vld [vmem:[%s6642_s4 + $0xe8] ss:$16 sps:$4 sm:$0xff]   ;;  %v5764_v49 = vld [vmem:[%s6642_s4 + $0xc4] ss:$16 sps:$4 sm:$0xff]  }
 0xb04   :  { %4538 = vtanh.f32 %v5698_v63  ;;  %v2022_v61 = vrot.slane %v5698_v63, 6  ;;  %v5770_v63 = vld [vmem:[%s6642_s4 + $0xcc] ss:$16 sps:$4 sm:$0xff]  }
 0xb11   :  { %v4539_v2 = vpop.eup %4538 }
 0xb12   :  { %v1895_v25 = vmul.f32 %v4539_v2, %v4537_v1  ;;  %v5778_v1 = vld [vmem:[%s6642_s4 + $0xc0] ss:$16 sps:$4 sm:$0xff]   ;;  %v5784_v2 = vld [vmem:[%s6642_s4 + $0xc8] ss:$16 sps:$4 sm:$0xff]  }
 0xb14   :  { %v1900_v26 = vpack.c.bf16 %v1895_v25, %v1895_v25  ;;  %v5790_v25 = vld [vmem:[%s6642_s4 + $0xa4] ss:$16 sps:$4 sm:$0xff]  }
 0xb16   :  { %v1902_v4 = vrot.slane %v1900_v26, 2  ;;  %v5796_v26 = vld [vmem:[%s6642_s4 + $0xac] ss:$16 sps:$4 sm:$0xff]  }
 0xb18   :  { %1937 = vmatmul.mubr.bf16.vlgmr.msra.gmra.mxu0 %v1902_v4  ;;  %1978 = vmatmul.mubr.bf16.vlgmr.msra.gmra.mxu1 %v1902_v4  ;;  %v5802_v4 = vld [vmem:[%s6642_s4 + $0xa0] ss:$16 sps:$4 sm:$0xff]  }
 0xb19   :  { %2038 = vmatpush1.bf16.msra.mxu0 %v5326_v13  ;;  %2079 = vmatpush1.bf16.msra.mxu1 %v5332_v14  ;;  %v5736_v13 = vld [vmem:[%s6642_s4 + $0xe4] ss:$16 sps:$4 sm:$0xff]   ;;  %v5742_v14 = vld [vmem:[%s6642_s4 + $0xec] ss:$16 sps:$4 sm:$0xff]  }
 0xb1a   :  { %2039 = vmatprep.subr.bf16.mxu0 %v5338_v15  ;;  %2080 = vmatprep.subr.bf16.mxu1 %v5344_v16 }
 0xb1b   :  { %2069 = vmatprep.mubr.bf16.mxu0 %v4775_v38  ;;  %2110 = vmatprep.mubr.bf16.mxu1 %v4775_v38 }
 0xb1d   :  { %2040 = vmatpush1.bf16.msra.mxu0 %v5352_v0  ;;  %2081 = vmatpush1.bf16.msra.mxu1 %v5358_v17  ;;  %v1896_v17 = vld [vmem:[#allocation2 + $0x8] sm:$0xc0] }
 0xb1e   :  { %2041 = vmatprep.subr.bf16.mxu0 %v5364_v18  ;;  %2082 = vmatprep.subr.bf16.mxu1 %v5370_v20 }
 0xb21   :  { %2042 = vmatpush1.bf16.msra.mxu0 %v5376_v21  ;;  %2083 = vmatpush1.bf16.msra.mxu1 %v5382_v22 }
 0xb22   :  { %2043 = vmatprep.subr.bf16.mxu0 %v5388_v23  ;;  %2084 = vmatprep.subr.bf16.mxu1 %v5394_v24  ;;  %v1897_v23 = vld [vmem:[#allocation2 + $0x88] sm:$0xc0] }
 0xb25   :  { %2044 = vmatpush1.bf16.msra.mxu0 %v5400_v42  ;;  %2085 = vmatpush1.bf16.msra.mxu1 %v5406_v37 }
 0xb26   :  { %2045 = vmatprep.subr.bf16.mxu0 %v5412_v30  ;;  %2086 = vmatprep.subr.bf16.mxu1 %v5418_v31 }
 0xb29   :  { %2046 = vmatpush1.bf16.msra.mxu0 %v5424_v32  ;;  %2087 = vmatpush1.bf16.msra.mxu1 %v5430_v33 }
 0xb2a   :  { %2047 = vmatprep.subr.bf16.mxu0 %v5436_v34  ;;  %2088 = vmatprep.subr.bf16.mxu1 %v5442_v35  ;;  %v1898_v35 = vld [vmem:[#allocation2 + $0x28] sm:$0xc0] }
 0xb2d   :  { %2048 = vmatpush1.bf16.msra.mxu0 %v5486_v6  ;;  %2089 = vmatpush1.bf16.msra.mxu1 %v5492_v55 }
 0xb2e   :  { %2049 = vmatprep.subr.bf16.mxu0 %v5498_v56  ;;  %2090 = vmatprep.subr.bf16.mxu1 %v5504_v36 }
 0xb31   :  { %2050 = vmatpush1.bf16.msra.mxu0 %v5510_v57  ;;  %2091 = vmatpush1.bf16.msra.mxu1 %v5516_v39 }
 0xb32   :  { %2051 = vmatprep.subr.bf16.mxu0 %v5522_v58  ;;  %2092 = vmatprep.subr.bf16.mxu1 %v5528_v40 }
 0xb35   :  { %2052 = vmatpush1.bf16.msra.mxu0 %v5534_v59  ;;  %2093 = vmatpush1.bf16.msra.mxu1 %v5540_v41 }
 0xb36   :  { %2155 = vmatprep.subr.bf16.mxu0 %v5736_v13  ;;  %2196 = vmatprep.subr.bf16.mxu1 %v5742_v14 }
 0xbd8   :  { %v1938_v15 = vpop.f32.mrf.mxu0  ;;  %v1979_v16 = vpop.f32.mrf.mxu1 }
 0xbd9   :  { %v1990_v0 = vrot.slane %v1938_v15, 2  ;;  %v1992_v34 = vrot.slane %v1979_v16, 2  ;;  %v5808_v15 = vld [vmem:[%s6642_s4 + $0xa8] ss:$16 sps:$4 sm:$0xff]   ;;  %v5814_v16 = vld [vmem:[%s6642_s4 + $0x84] ss:$16 sps:$4 sm:$0xff]  }
 0xbda   :  { %v1940_v18 = vpop.f32.mrf.mxu0  ;;  %v1981_v20 = vpop.f32.mrf.mxu1 }
 0xbdb   :  { %v1998_v21 = vadd.f32 %v1990_v0, %v1896_v17  ;;  %v1991_v22 = vrot.slane %v1940_v18, 2  ;;  %v2000_v45 = vadd.f32 %v1992_v34, %v1898_v35  ;;  %v1993_v5 = vrot.slane %v1981_v20, 2  ;;  %v5820_v0 = vld [vmem:[%s6642_s4 + $0x8c] ss:$16 sps:$4 sm:$0xff]   ;;  %v5826_v17 = vld [vmem:[%s6642_s4 + $0x80] ss:$16 sps:$4 sm:$0xff]  }
 0xbdc   :  { %v1942_v24 = vpop.f32.mrf.mxu0  ;;  %v1983_v42 = vpop.f32.mrf.mxu1  ;;  %v5832_v18 = vld [vmem:[%s6642_s4 + $0x88] ss:$16 sps:$4 sm:$0xff]   ;;  %v5838_v20 = vld [vmem:[%s6642_s4 + $0x64] ss:$16 sps:$4 sm:$0xff]  }
 0xbdd   :  { %v4135_v37 = vmul.f32 -1.442695, %v1998_v21  ;;  %v1999_v30 = vadd.f32 %v1991_v22, %v1897_v23  ;;  %v4137_v19 = vmul.f32 -1.442695, %v2000_v45  ;;  %v2001_v10 = vadd.f32 %v1993_v5, %v1899_v46  ;;  %v5844_v21 = vld [vmem:[%s6642_s4 + $0x6c] ss:$16 sps:$4 sm:$0xff]  }
 0xbde   :  { %v1943_v31 = vpop.f32.mrf.mxu0  ;;  %v1984_v32 = vpop.f32.mrf.mxu1  ;;  %v5850_v22 = vld [vmem:[%s6642_s4 + $0x60] ss:$16 sps:$4 sm:$0xff]   ;;  %v5856_v23 = vld [vmem:[%s6642_s4 + $0x68] ss:$16 sps:$4 sm:$0xff]   ;;  %v5862_v24 = vld [vmem:[%s6642_s4 + $0x44] ss:$16 sps:$4 sm:$0xff]  }
 0xbdf   :  { %4540 = vpow2.f32 %v4135_v37  ;;  %v4136_v33 = vmul.f32 -1.442695, %v1999_v30  ;;  %v5868_v42 = vld [vmem:[%s6642_s4 + $0x4c] ss:$16 sps:$4 sm:$0xff]   ;;  %v2030_v37 = vld [vmem:[#allocation2 + $0x10] sm:$0x3] }
 0xbe0   :  { %v2032_v45 = vld [vmem:[#allocation2 + $0x60] sm:$0x3] }
 0xbe1   :  { %4542 = vpow2.f32 %v4136_v33 }
 0xbe2   :  { %4544 = vpow2.f32 %v4137_v19 }
 0xbec   :  { %v4541_v7 = vpop.eup %4540 }
 0xbed   :  { %v2011_v12 = vadd.f32 1.0, %v4541_v7 }
 0xbee   :  { %v4543_v27 = vpop.eup %4542 }
 0xbef   :  { %4546 = vrcp.f32 %v2011_v12  ;;  %v2012_v29 = vadd.f32 1.0, %v4543_v27  ;;  %v4545_v53 = vpop.eup %4544 }
 0xbf0   :  { %4548 = vtanh.f32 %v2001_v10  ;;  %v2013_v43 = vadd.f32 1.0, %v4545_v53 }
 0xbf1   :  { %4550 = vrcp.f32 %v2012_v29 }
 0xbf2   :  { %4552 = vrcp.f32 %v2013_v43 }
 0xbfc   :  { %v4547_v54 = vpop.eup %4546 }
 0xbfd   :  { %v4549_v3 = vpop.eup %4548 }
 0xbfe   :  { %v4551_v60 = vpop.eup %4550  ;;  %v2025_v62 = vmul.f32 %v4549_v3, %v4547_v54 }
 0xbff   :  { %v2024_v44 = vmul.f32 %v4551_v60, %v2022_v61  ;;  %v4553_v48 = vpop.eup %4552 }
 0xc01   :  { %v5746_v47 = vadd.f32 %v2025_v62, %v2024_v44 }
 0xc03   :  { %4554 = vtanh.f32 %v5746_v47  ;;  %v2143_v53 = vrot.slane %v5746_v47, 6  ;;  %v5912_v47 = vld [vmem:[%s6642_s4 + $0x40] ss:$16 sps:$4 sm:$0xff]  }
 0xc10   :  { %v4555_v50 = vpop.eup %4554 }
 0xc11   :  { %v2028_v51 = vmul.f32 %v4555_v50, %v4553_v48 }
 0xc13   :  { %v2033_v11 = vpack.c.bf16 %v2028_v51, %v2028_v51  ;;  %v5918_v51 = vld [vmem:[%s6642_s4 + $0x48] ss:$16 sps:$4 sm:$0xff]  }
 0xc15   :  { %v2035_v9 = vrot.slane %v2033_v11, 3  ;;  %v5924_v11 = vld [vmem:[%s6642_s4 + $0x24] ss:$16 sps:$4 sm:$0xff]  }
 0xc17   :  { %2070 = vmatmul.mubr.bf16.vlgmr.msra.gmra.mxu0 %v2035_v9  ;;  %2111 = vmatmul.mubr.bf16.vlgmr.msra.gmra.mxu1 %v2035_v9  ;;  %v5930_v9 = vld [vmem:[%s6642_s4 + $0x2c] ss:$16 sps:$4 sm:$0xff]  }
 0xc18   :  { %2156 = vmatpush1.bf16.msra.mxu0 %v5752_v8  ;;  %2197 = vmatpush1.bf16.msra.mxu1 %v5758_v52 }
 0xc19   :  { %2157 = vmatprep.subr.bf16.mxu0 %v5764_v49  ;;  %2198 = vmatprep.subr.bf16.mxu1 %v5770_v63 }
 0xc1a   :  { %2187 = vmatprep.mubr.bf16.mxu0 %v4775_v38  ;;  %2228 = vmatprep.mubr.bf16.mxu1 %v4775_v38 }
 0xc1c   :  { %2158 = vmatpush1.bf16.msra.mxu0 %v5778_v1  ;;  %2199 = vmatpush1.bf16.msra.mxu1 %v5784_v2 }
 0xc1d   :  { %2159 = vmatprep.subr.bf16.mxu0 %v5790_v25  ;;  %2200 = vmatprep.subr.bf16.mxu1 %v5796_v26 }
 0xc20   :  { %2160 = vmatpush1.bf16.msra.mxu0 %v5802_v4  ;;  %2201 = vmatpush1.bf16.msra.mxu1 %v5808_v15 }
 0xc21   :  { %2161 = vmatprep.subr.bf16.mxu0 %v5814_v16  ;;  %2202 = vmatprep.subr.bf16.mxu1 %v5820_v0 }
 0xc24   :  { %2162 = vmatpush1.bf16.msra.mxu0 %v5826_v17  ;;  %2203 = vmatpush1.bf16.msra.mxu1 %v5832_v18 }
 0xc25   :  { %2163 = vmatprep.subr.bf16.mxu0 %v5838_v20  ;;  %2204 = vmatprep.subr.bf16.mxu1 %v5844_v21 }
 0xc28   :  { %2164 = vmatpush1.bf16.msra.mxu0 %v5850_v22  ;;  %2205 = vmatpush1.bf16.msra.mxu1 %v5856_v23 }
 0xc29   :  { %2165 = vmatprep.subr.bf16.mxu0 %v5862_v24  ;;  %2206 = vmatprep.subr.bf16.mxu1 %v5868_v42 }
 0xc2c   :  { %2166 = vmatpush1.bf16.msra.mxu0 %v5486_v6  ;;  %2207 = vmatpush1.bf16.msra.mxu1 %v5492_v55  ;;  %v2029_v6 = vld [vmem:[#allocation2 + $0x58] sm:$0x3] }
 0xc2d   :  { %2167 = vmatprep.subr.bf16.mxu0 %v5498_v56  ;;  %2208 = vmatprep.subr.bf16.mxu1 %v5504_v36 }
 0xc30   :  { %2168 = vmatpush1.bf16.msra.mxu0 %v5510_v57  ;;  %2209 = vmatpush1.bf16.msra.mxu1 %v5516_v39 }
 0xc31   :  { %2169 = vmatprep.subr.bf16.mxu0 %v5522_v58  ;;  %2210 = vmatprep.subr.bf16.mxu1 %v5528_v40 }
 0xc34   :  { %2170 = vmatpush1.bf16.msra.mxu0 %v5534_v59  ;;  %2211 = vmatpush1.bf16.msra.mxu1 %v5540_v41  ;;  %v2031_v41 = vld [vmem:[#allocation2 + $0x98] sm:$0x3] }
 0xc35   :  { %2288 = vmatprep.subr.bf16.mxu0 %v5736_v13  ;;  %2329 = vmatprep.subr.bf16.mxu1 %v5742_v14 }
 0xcd7   :  { %v2071_v55 = vpop.f32.mrf.mxu0  ;;  %v2112_v56 = vpop.f32.mrf.mxu1 }
 0xcd8   :  { %v2119_v36 = vadd.f32 %v2071_v55, %v2029_v6  ;;  %v2121_v34 = vadd.f32 %v2112_v56, %v2031_v41  ;;  %v5936_v6 = vld [vmem:[%s6642_s4 + $0x20] ss:$16 sps:$4 sm:$0xff]   ;;  %v5942_v55 = vld [vmem:[%s6642_s4 + $0x28] ss:$16 sps:$4 sm:$0xff]   ;;  %v5948_v56 = vld [vmem:[%s6642_s4 + $0x4] ss:$16 sps:$4 sm:$0xff]  }
 0xcd9   :  { %v2073_v57 = vpop.f32.mrf.mxu0  ;;  %v2114_v30 = vpop.f32.mrf.mxu1  ;;  %v2151_v41 = vld [vmem:[#allocation2 + $0x10] sm:$0xc] }
 0xcda   :  { %v4138_v39 = vmul.f32 -1.442695, %v2119_v36  ;;  %v2120_v31 = vadd.f32 %v2073_v57, %v2030_v37  ;;  %v4140_v35 = vmul.f32 -1.442695, %v2121_v34  ;;  %v2122_v19 = vadd.f32 %v2114_v30, %v2032_v45  ;;  %v5954_v36 = vld [vmem:[%s6642_s4 + $0xc] ss:$16 sps:$4 sm:$0xff]  }
 0xcdb   :  { %v2075_v58 = vpop.f32.mrf.mxu0  ;;  %v2116_v32 = vpop.f32.mrf.mxu1  ;;  %v5960_v37 = vld [vmem:[%s6642_s4] ss:$16 sps:$4 sm:$0xff]   ;;  %v5966_v57 = vld [vmem:[%s6642_s4 + $0x8] ss:$16 sps:$4 sm:$0xff]  }
 0xcdc   :  { %4556 = vpow2.f32 %v4138_v39  ;;  %v4139_v40 = vmul.f32 -1.442695, %v2120_v31  ;;  %v2150_v58 = vld [vmem:[#allocation2 + $0x58] sm:$0xc] }
 0xcdd   :  { %v2076_v59 = vpop.f32.mrf.mxu0  ;;  %v2117_v33 = vpop.f32.mrf.mxu1 }
 0xcde   :  { %4558 = vpow2.f32 %v4139_v40 }
 0xcdf   :  { %4560 = vpow2.f32 %v4140_v35 }
 0xce9   :  { %v4557_v5 = vpop.eup %4556 }
 0xcea   :  { %v2132_v46 = vadd.f32 1.0, %v4557_v5 }
 0xceb   :  { %v4559_v7 = vpop.eup %4558 }
 0xcec   :  { %4562 = vrcp.f32 %v2132_v46  ;;  %v2133_v10 = vadd.f32 1.0, %v4559_v7  ;;  %v4561_v12 = vpop.eup %4560 }
 0xced   :  { %4564 = vtanh.f32 %v2122_v19  ;;  %v2134_v3 = vadd.f32 1.0, %v4561_v12  ;;  %v2152_v12 = vld [vmem:[#allocation2 + $0x98] sm:$0xc] }
 0xcee   :  { %4566 = vrcp.f32 %v2133_v10 }
 0xcef   :  { %4568 = vrcp.f32 %v2134_v3 }
 0xcf9   :  { %v4563_v27 = vpop.eup %4562 }
 0xcfa   :  { %v4565_v29 = vpop.eup %4564 }
 0xcfb   :  { %v4567_v54 = vpop.eup %4566  ;;  %v2146_v60 = vmul.f32 %v4565_v29, %v4563_v27 }
 0xcfc   :  { %v2145_v61 = vmul.f32 %v4567_v54, %v2143_v53  ;;  %v4569_v44 = vpop.eup %4568  ;;  %v2153_v54 = vld [vmem:[#allocation2 + $0x60] sm:$0xc] }
 0xcfe   :  { %v5884_v43 = vadd.f32 %v2146_v60, %v2145_v61 }
 0xd00   :  { %4570 = vtanh.f32 %v5884_v43 }
 0xd0d   :  { %v4571_v62 = vpop.eup %4570 }
 0xd0e   :  { %v2149_v48 = vmul.f32 %v4571_v62, %v4569_v44 }
 0xd10   :  { %v2154_v50 = vpack.c.bf16 %v2149_v48, %v2149_v48 }
 0xd12   :  { %2188 = vmatmul.mubr.bf16.vlgmr.msra.gmra.mxu0 %v2154_v50  ;;  %2229 = vmatmul.mubr.bf16.vlgmr.msra.gmra.mxu1 %v2154_v50 }
 0xd13   :  { %2289 = vmatpush1.bf16.msra.mxu0 %v5752_v8  ;;  %2330 = vmatpush1.bf16.msra.mxu1 %v5758_v52 }
 0xd14   :  { %2290 = vmatprep.subr.bf16.mxu0 %v5764_v49  ;;  %2331 = vmatprep.subr.bf16.mxu1 %v5770_v63 }
 0xd15   :  { %2320 = vmatprep.mubr.bf16.mxu0 %v4775_v38  ;;  %2361 = vmatprep.mubr.bf16.mxu1 %v4775_v38 }
 0xd17   :  { %2291 = vmatpush1.bf16.msra.mxu0 %v5778_v1  ;;  %2332 = vmatpush1.bf16.msra.mxu1 %v5784_v2 }
 0xd18   :  { %2292 = vmatprep.subr.bf16.mxu0 %v5790_v25  ;;  %2333 = vmatprep.subr.bf16.mxu1 %v5796_v26 }
 0xd1b   :  { %2293 = vmatpush1.bf16.msra.mxu0 %v5802_v4  ;;  %2334 = vmatpush1.bf16.msra.mxu1 %v5808_v15 }
 0xd1c   :  { %2294 = vmatprep.subr.bf16.mxu0 %v5814_v16  ;;  %2335 = vmatprep.subr.bf16.mxu1 %v5820_v0 }
 0xd1f   :  { %2295 = vmatpush1.bf16.msra.mxu0 %v5826_v17  ;;  %2336 = vmatpush1.bf16.msra.mxu1 %v5832_v18 }
 0xd20   :  { %2296 = vmatprep.subr.bf16.mxu0 %v5838_v20  ;;  %2337 = vmatprep.subr.bf16.mxu1 %v5844_v21 }
 0xd23   :  { %2297 = vmatpush1.bf16.msra.mxu0 %v5850_v22  ;;  %2338 = vmatpush1.bf16.msra.mxu1 %v5856_v23 }
 0xd24   :  { %2298 = vmatprep.subr.bf16.mxu0 %v5862_v24  ;;  %2339 = vmatprep.subr.bf16.mxu1 %v5868_v42 }
 0xd27   :  { %2299 = vmatpush1.bf16.msra.mxu0 %v5912_v47  ;;  %2340 = vmatpush1.bf16.msra.mxu1 %v5918_v51 }
 0xd28   :  { %2300 = vmatprep.subr.bf16.mxu0 %v5924_v11  ;;  %2341 = vmatprep.subr.bf16.mxu1 %v5930_v9 }
 0xd2b   :  { %2301 = vmatpush1.bf16.msra.mxu0 %v5936_v6  ;;  %2342 = vmatpush1.bf16.msra.mxu1 %v5942_v55 }
 0xd2c   :  { %2302 = vmatprep.subr.bf16.mxu0 %v5948_v56  ;;  %2343 = vmatprep.subr.bf16.mxu1 %v5954_v36 }
 0xd2f   :  { %2303 = vmatpush1.bf16.msra.mxu0 %v5960_v37  ;;  %2344 = vmatpush1.bf16.msra.mxu1 %v5966_v57 }
 0xd30   :  { %2421 = vmatprep.subr.bf16.mxu0 %v5736_v13  ;;  %2462 = vmatprep.subr.bf16.mxu1 %v5742_v14 }
 0xdd2   :  { %v2189_v30 = vpop.f32.mrf.mxu0  ;;  %v2230_v39 = vpop.f32.mrf.mxu1 }
 0xdd3   :  { %v2241_v31 = vrot.slane %v2189_v30, 6  ;;  %v2243_v10 = vrot.slane %v2230_v39, 6 }
 0xdd4   :  { %v2191_v32 = vpop.f32.mrf.mxu0  ;;  %v2232_v40 = vpop.f32.mrf.mxu1 }
 0xdd5   :  { %v2249_v59 = vadd.f32 %v2241_v31, %v2150_v58  ;;  %v2242_v33 = vrot.slane %v2191_v32, 6  ;;  %v2251_v27 = vadd.f32 %v2243_v10, %v2152_v12  ;;  %v2244_v29 = vrot.slane %v2232_v40, 6 }
 0xdd6   :  { %v2193_v34 = vpop.f32.mrf.mxu0  ;;  %v2234_v35 = vpop.f32.mrf.mxu1  ;;  %v2273_v31 = vrot.slane %v5884_v43, 6 }
 0xdd7   :  { %v4141_v45 = vmul.f32 -1.442695, %v2249_v59  ;;  %v2250_v5 = vadd.f32 %v2242_v33, %v2151_v41  ;;  %v4143_v53 = vmul.f32 -1.442695, %v2251_v27  ;;  %v2252_v61 = vadd.f32 %v2244_v29, %v2153_v54  ;;  %v2281_v29 = vld [vmem:[#allocation2 + $0x10] sm:$0x30] }
 0xdd8   :  { %v2194_v19 = vpop.f32.mrf.mxu0  ;;  %v2235_v46 = vpop.f32.mrf.mxu1 }
 0xdd9   :  { %4572 = vpow2.f32 %v4141_v45  ;;  %v4142_v7 = vmul.f32 -1.442695, %v2250_v5  ;;  %v2280_v46 = vld [vmem:[#allocation2 + $0x58] sm:$0x30] }
 0xddb   :  { %4574 = vpow2.f32 %v4142_v7 }
 0xddc   :  { %4576 = vpow2.f32 %v4143_v53 }
 0xde6   :  { %v4573_v3 = vpop.eup %4572 }
 0xde7   :  { %v2262_v60 = vadd.f32 1.0, %v4573_v3 }
 0xde8   :  { %v4575_v44 = vpop.eup %4574 }
 0xde9   :  { %4578 = vrcp.f32 %v2262_v60  ;;  %v2263_v62 = vadd.f32 1.0, %v4575_v44  ;;  %v4577_v48 = vpop.eup %4576 }
 0xdea   :  { %4580 = vtanh.f32 %v2252_v61  ;;  %v2264_v58 = vadd.f32 1.0, %v4577_v48 }
 0xdeb   :  { %4582 = vrcp.f32 %v2263_v62 }
 0xdec   :  { %4584 = vrcp.f32 %v2264_v58  ;;  %v2283_v58 = vld [vmem:[#allocation2 + $0x60] sm:$0x30] }
 0xdf6   :  { %v4579_v50 = vpop.eup %4578 }
 0xdf7   :  { %v4581_v30 = vpop.eup %4580 }
 0xdf8   :  { %v4583_v39 = vpop.eup %4582  ;;  %v2276_v40 = vmul.f32 %v4581_v30, %v4579_v50  ;;  %v2282_v50 = vld [vmem:[#allocation2 + $0x98] sm:$0x30] }
 0xdf9   :  { %v2275_v32 = vmul.f32 %v4583_v39, %v2273_v31  ;;  %v4585_v33 = vpop.eup %4584 }
 0xdfb   :  { %v5972_v59 = vadd.f32 %v2276_v40, %v2275_v32 }
 0xdfd   :  { %4586 = vtanh.f32 %v5972_v59 }
 0xe0a   :  { %v4587_v41 = vpop.eup %4586 }
 0xe0b   :  { %v2279_v34 = vmul.f32 %v4587_v41, %v4585_v33 }
 0xe0d   :  { %v2284_v35 = vpack.c.bf16 %v2279_v34, %v2279_v34 }
 0xe0f   :  { %v2286_v45 = vrot.slane %v2284_v35, 1 }
 0xe11   :  { %2321 = vmatmul.mubr.bf16.vlgmr.msra.gmra.mxu0 %v2286_v45  ;;  %2362 = vmatmul.mubr.bf16.vlgmr.msra.gmra.mxu1 %v2286_v45 }
 0xe12   :  { %2422 = vmatpush1.bf16.msra.mxu0 %v5752_v8  ;;  %2463 = vmatpush1.bf16.msra.mxu1 %v5758_v52 }
 0xe13   :  { %2423 = vmatprep.subr.bf16.mxu0 %v5764_v49  ;;  %2464 = vmatprep.subr.bf16.mxu1 %v5770_v63 }
 0xe14   :  { %2453 = vmatprep.mubr.bf16.mxu0 %v4775_v38  ;;  %2494 = vmatprep.mubr.bf16.mxu1 %v4775_v38 }
 0xe16   :  { %2424 = vmatpush1.bf16.msra.mxu0 %v5778_v1  ;;  %2465 = vmatpush1.bf16.msra.mxu1 %v5784_v2 }
 0xe17   :  { %2425 = vmatprep.subr.bf16.mxu0 %v5790_v25  ;;  %2466 = vmatprep.subr.bf16.mxu1 %v5796_v26 }
 0xe1a   :  { %2426 = vmatpush1.bf16.msra.mxu0 %v5802_v4  ;;  %2467 = vmatpush1.bf16.msra.mxu1 %v5808_v15 }
 0xe1b   :  { %2427 = vmatprep.subr.bf16.mxu0 %v5814_v16  ;;  %2468 = vmatprep.subr.bf16.mxu1 %v5820_v0 }
 0xe1e   :  { %2428 = vmatpush1.bf16.msra.mxu0 %v5826_v17  ;;  %2469 = vmatpush1.bf16.msra.mxu1 %v5832_v18 }
 0xe1f   :  { %2429 = vmatprep.subr.bf16.mxu0 %v5838_v20  ;;  %2470 = vmatprep.subr.bf16.mxu1 %v5844_v21 }
 0xe22   :  { %2430 = vmatpush1.bf16.msra.mxu0 %v5850_v22  ;;  %2471 = vmatpush1.bf16.msra.mxu1 %v5856_v23 }
 0xe23   :  { %2431 = vmatprep.subr.bf16.mxu0 %v5862_v24  ;;  %2472 = vmatprep.subr.bf16.mxu1 %v5868_v42 }
 0xe26   :  { %2432 = vmatpush1.bf16.msra.mxu0 %v5912_v47  ;;  %2473 = vmatpush1.bf16.msra.mxu1 %v5918_v51 }
 0xe27   :  { %2433 = vmatprep.subr.bf16.mxu0 %v5924_v11  ;;  %2474 = vmatprep.subr.bf16.mxu1 %v5930_v9 }
 0xe2a   :  { %2434 = vmatpush1.bf16.msra.mxu0 %v5936_v6  ;;  %2475 = vmatpush1.bf16.msra.mxu1 %v5942_v55 }
 0xe2b   :  { %2435 = vmatprep.subr.bf16.mxu0 %v5948_v56  ;;  %2476 = vmatprep.subr.bf16.mxu1 %v5954_v36 }
 0xe2e   :  { %2436 = vmatpush1.bf16.msra.mxu0 %v5960_v37  ;;  %2477 = vmatpush1.bf16.msra.mxu1 %v5966_v57 }
 0xe2f   :  { %2554 = vmatprep.subr.bf16.mxu0 %v5736_v13  ;;  %2595 = vmatprep.subr.bf16.mxu1 %v5742_v14 }
 0xed1   :  { %v2322_v43 = vpop.f32.mrf.mxu0  ;;  %v2363_v5 = vpop.f32.mrf.mxu1 }
 0xed2   :  { %v2374_v19 = vrot.slane %v2322_v43, 4  ;;  %v2376_v48 = vrot.slane %v2363_v5, 4 }
 0xed3   :  { %v2324_v7 = vpop.f32.mrf.mxu0  ;;  %v2365_v10 = vpop.f32.mrf.mxu1 }
 0xed4   :  { %v2382_v12 = vadd.f32 %v2374_v19, %v2280_v46  ;;  %v2375_v27 = vrot.slane %v2324_v7, 4  ;;  %v2384_v30 = vadd.f32 %v2376_v48, %v2282_v50  ;;  %v2377_v31 = vrot.slane %v2365_v10, 4 }
 0xed5   :  { %v2326_v53 = vpop.f32.mrf.mxu0  ;;  %v2367_v54 = vpop.f32.mrf.mxu1  ;;  %v2406_v19 = vrot.slane %v5972_v59, 6 }
 0xed6   :  { %v4144_v3 = vmul.f32 -1.442695, %v2382_v12  ;;  %v2383_v61 = vadd.f32 %v2375_v27, %v2281_v29  ;;  %v4146_v39 = vmul.f32 -1.442695, %v2384_v30  ;;  %v2385_v40 = vadd.f32 %v2377_v31, %v2283_v58  ;;  %v2414_v31 = vld [vmem:[#allocation2 + $0x10] sm:$0xc0] }
 0xed7   :  { %v2327_v60 = vpop.f32.mrf.mxu0  ;;  %v2368_v44 = vpop.f32.mrf.mxu1 }
 0xed8   :  { %4588 = vpow2.f32 %v4144_v3  ;;  %v4145_v62 = vmul.f32 -1.442695, %v2383_v61  ;;  %v2413_v44 = vld [vmem:[#allocation2 + $0x58] sm:$0xc0] }
 0xeda   :  { %4590 = vpow2.f32 %v4145_v62 }
 0xedb   :  { %4592 = vpow2.f32 %v4146_v39 }
 0xee5   :  { %v4589_v32 = vpop.eup %4588 }
 0xee6   :  { %v2395_v33 = vadd.f32 1.0, %v4589_v32 }
 0xee7   :  { %v4591_v41 = vpop.eup %4590 }
 0xee8   :  { %4594 = vrcp.f32 %v2395_v33  ;;  %v2396_v34 = vadd.f32 1.0, %v4591_v41  ;;  %v4593_v35 = vpop.eup %4592 }
 0xee9   :  { %4596 = vtanh.f32 %v2385_v40  ;;  %v2397_v46 = vadd.f32 1.0, %v4593_v35 }
 0xeea   :  { %4598 = vrcp.f32 %v2396_v34 }
 0xeeb   :  { %4600 = vrcp.f32 %v2397_v46  ;;  %v2416_v46 = vld [vmem:[#allocation2 + $0x60] sm:$0xc0] }
 0xef5   :  { %v4595_v45 = vpop.eup %4594 }
 0xef6   :  { %v4597_v43 = vpop.eup %4596 }
 0xef7   :  { %v4599_v5 = vpop.eup %4598  ;;  %v2409_v10 = vmul.f32 %v4597_v43, %v4595_v45  ;;  %v2415_v45 = vld [vmem:[#allocation2 + $0x98] sm:$0xc0] }
 0xef8   :  { %v2408_v7 = vmul.f32 %v4599_v5, %v2406_v19  ;;  %v4601_v27 = vpop.eup %4600 }
 0xefa   :  { %v6010_v12 = vadd.f32 %v2409_v10, %v2408_v7 }
 0xefc   :  { %4602 = vtanh.f32 %v6010_v12 }
 0xf09   :  { %v4603_v29 = vpop.eup %4602 }
 0xf0a   :  { %v2412_v53 = vmul.f32 %v4603_v29, %v4601_v27 }
 0xf0c   :  { %v2417_v54 = vpack.c.bf16 %v2412_v53, %v2412_v53 }
 0xf0e   :  { %v2419_v3 = vrot.slane %v2417_v54, 2 }
 0xf10   :  { %2454 = vmatmul.mubr.bf16.vlgmr.msra.gmra.mxu0 %v2419_v3  ;;  %2495 = vmatmul.mubr.bf16.vlgmr.msra.gmra.mxu1 %v2419_v3 }
 0xf11   :  { %2555 = vmatpush1.bf16.msra.mxu0 %v5752_v8  ;;  %2596 = vmatpush1.bf16.msra.mxu1 %v5758_v52 }
 0xf12   :  { %2556 = vmatprep.subr.bf16.mxu0 %v5764_v49  ;;  %2597 = vmatprep.subr.bf16.mxu1 %v5770_v63 }
 0xf13   :  { %2586 = vmatprep.mubr.bf16.mxu0 %v4775_v38  ;;  %2627 = vmatprep.mubr.bf16.mxu1 %v4775_v38 }
 0xf15   :  { %2557 = vmatpush1.bf16.msra.mxu0 %v5778_v1  ;;  %2598 = vmatpush1.bf16.msra.mxu1 %v5784_v2 }
 0xf16   :  { %2558 = vmatprep.subr.bf16.mxu0 %v5790_v25  ;;  %2599 = vmatprep.subr.bf16.mxu1 %v5796_v26 }
 0xf19   :  { %2559 = vmatpush1.bf16.msra.mxu0 %v5802_v4  ;;  %2600 = vmatpush1.bf16.msra.mxu1 %v5808_v15 }
 0xf1a   :  { %2560 = vmatprep.subr.bf16.mxu0 %v5814_v16  ;;  %2601 = vmatprep.subr.bf16.mxu1 %v5820_v0 }
 0xf1d   :  { %2561 = vmatpush1.bf16.msra.mxu0 %v5826_v17  ;;  %2602 = vmatpush1.bf16.msra.mxu1 %v5832_v18 }
 0xf1e   :  { %2562 = vmatprep.subr.bf16.mxu0 %v5838_v20  ;;  %2603 = vmatprep.subr.bf16.mxu1 %v5844_v21 }
 0xf21   :  { %2563 = vmatpush1.bf16.msra.mxu0 %v5850_v22  ;;  %2604 = vmatpush1.bf16.msra.mxu1 %v5856_v23 }
 0xf22   :  { %2564 = vmatprep.subr.bf16.mxu0 %v5862_v24  ;;  %2605 = vmatprep.subr.bf16.mxu1 %v5868_v42 }
 0xf25   :  { %2565 = vmatpush1.bf16.msra.mxu0 %v5912_v47  ;;  %2606 = vmatpush1.bf16.msra.mxu1 %v5918_v51 }
 0xf26   :  { %2566 = vmatprep.subr.bf16.mxu0 %v5924_v11  ;;  %2607 = vmatprep.subr.bf16.mxu1 %v5930_v9 }
 0xf29   :  { %2567 = vmatpush1.bf16.msra.mxu0 %v5936_v6  ;;  %2608 = vmatpush1.bf16.msra.mxu1 %v5942_v55 }
 0xf2a   :  { %2568 = vmatprep.subr.bf16.mxu0 %v5948_v56  ;;  %2609 = vmatprep.subr.bf16.mxu1 %v5954_v36 }
 0xf2d   :  { %2569 = vmatpush1.bf16.msra.mxu0 %v5960_v37  ;;  %2610 = vmatpush1.bf16.msra.mxu1 %v5966_v57 }
 0xf2e   :  { %2672 = vmatprep.subr.bf16.mxu0 %v5736_v13  ;;  %2713 = vmatprep.subr.bf16.mxu1 %v5742_v14 }
 0xfd0   :  { %v2455_v59 = vpop.f32.mrf.mxu0  ;;  %v2496_v61 = vpop.f32.mrf.mxu1 }
 0xfd1   :  { %v2507_v60 = vrot.slane %v2455_v59, 2  ;;  %v2509_v35 = vrot.slane %v2496_v61, 2 }
 0xfd2   :  { %v2457_v62 = vpop.f32.mrf.mxu0  ;;  %v2498_v48 = vpop.f32.mrf.mxu1 }
 0xfd3   :  { %v2515_v50 = vadd.f32 %v2507_v60, %v2413_v44  ;;  %v2508_v30 = vrot.slane %v2457_v62, 2  ;;  %v2517_v43 = vadd.f32 %v2509_v35, %v2415_v45  ;;  %v2510_v19 = vrot.slane %v2498_v48, 2 }
 0xfd4   :  { %v2459_v39 = vpop.f32.mrf.mxu0  ;;  %v2500_v58 = vpop.f32.mrf.mxu1  ;;  %v2539_v60 = vrot.slane %v6010_v12, 6  ;;  %v2546_v12 = vld [vmem:[#allocation2 + $0x20] sm:$0x3] }
 0xfd5   :  { %v4147_v32 = vmul.f32 -1.442695, %v2515_v50  ;;  %v2516_v40 = vadd.f32 %v2508_v30, %v2414_v31  ;;  %v4149_v5 = vmul.f32 -1.442695, %v2517_v43  ;;  %v2518_v10 = vadd.f32 %v2510_v19, %v2416_v46 }
 0xfd6   :  { %v2460_v33 = vpop.f32.mrf.mxu0  ;;  %v2501_v41 = vpop.f32.mrf.mxu1 }
 0xfd7   :  { %4604 = vpow2.f32 %v4147_v32  ;;  %v4148_v34 = vmul.f32 -1.442695, %v2516_v40 }
 0xfd9   :  { %4606 = vpow2.f32 %v4148_v34  ;;  %v2547_v34 = vld [vmem:[#allocation2 + $0x48] sm:$0x3] }
 0xfda   :  { %4608 = vpow2.f32 %v4149_v5 }
 0xfe4   :  { %v4605_v7 = vpop.eup %4604 }
 0xfe5   :  { %v2528_v27 = vadd.f32 1.0, %v4605_v7 }
 0xfe6   :  { %v4607_v29 = vpop.eup %4606 }
 0xfe7   :  { %4610 = vrcp.f32 %v2528_v27  ;;  %v2529_v53 = vadd.f32 1.0, %v4607_v29  ;;  %v4609_v54 = vpop.eup %4608  ;;  %v2548_v29 = vld [vmem:[#allocation2 + $0x70] sm:$0x3] }
 0xfe8   :  { %4612 = vtanh.f32 %v2518_v10  ;;  %v2530_v44 = vadd.f32 1.0, %v4609_v54 }
 0xfe9   :  { %4614 = vrcp.f32 %v2529_v53 }
 0xfea   :  { %4616 = vrcp.f32 %v2530_v44 }
 0xff4   :  { %v4611_v3 = vpop.eup %4610 }
 0xff5   :  { %v4613_v59 = vpop.eup %4612 }
 0xff6   :  { %v4615_v61 = vpop.eup %4614  ;;  %v2542_v48 = vmul.f32 %v4613_v59, %v4611_v3  ;;  %v2549_v3 = vld [vmem:[#allocation2 + $0x90] sm:$0x3] }
 0xff7   :  { %v2541_v62 = vmul.f32 %v4615_v61, %v2539_v60  ;;  %v4617_v30 = vpop.eup %4616 }
 0xff9   :  { %v6048_v50 = vadd.f32 %v2542_v48, %v2541_v62 }
 0xffb   :  { %4618 = vtanh.f32 %v6048_v50 }
0x1008   :  { %v4619_v31 = vpop.eup %4618 }
0x1009   :  { %v2545_v39 = vmul.f32 %v4619_v31, %v4617_v30 }
0x100b   :  { %v2550_v58 = vpack.c.bf16 %v2545_v39, %v2545_v39  ;;  %v2660_v39 = vrot.slane %v6048_v50, 6 }
0x100d   :  { %v2552_v32 = vrot.slane %v2550_v58, 3 }
0x100f   :  { %2587 = vmatmul.mubr.bf16.vlgmr.msra.gmra.mxu0 %v2552_v32  ;;  %2628 = vmatmul.mubr.bf16.vlgmr.msra.gmra.mxu1 %v2552_v32 }
0x1010   :  { %2673 = vmatpush1.bf16.msra.mxu0 %v5752_v8  ;;  %2714 = vmatpush1.bf16.msra.mxu1 %v5758_v52 }
0x1011   :  { %2674 = vmatprep.subr.bf16.mxu0 %v5764_v49  ;;  %2715 = vmatprep.subr.bf16.mxu1 %v5770_v63 }
0x1012   :  { %2704 = vmatprep.mubr.bf16.mxu0 %v4775_v38  ;;  %2745 = vmatprep.mubr.bf16.mxu1 %v4775_v38 }
0x1014   :  { %2675 = vmatpush1.bf16.msra.mxu0 %v5778_v1  ;;  %2716 = vmatpush1.bf16.msra.mxu1 %v5784_v2 }
0x1015   :  { %2676 = vmatprep.subr.bf16.mxu0 %v5790_v25  ;;  %2717 = vmatprep.subr.bf16.mxu1 %v5796_v26 }
0x1018   :  { %2677 = vmatpush1.bf16.msra.mxu0 %v5802_v4  ;;  %2718 = vmatpush1.bf16.msra.mxu1 %v5808_v15 }
0x1019   :  { %2678 = vmatprep.subr.bf16.mxu0 %v5814_v16  ;;  %2719 = vmatprep.subr.bf16.mxu1 %v5820_v0 }
0x101c   :  { %2679 = vmatpush1.bf16.msra.mxu0 %v5826_v17  ;;  %2720 = vmatpush1.bf16.msra.mxu1 %v5832_v18 }
0x101d   :  { %2680 = vmatprep.subr.bf16.mxu0 %v5838_v20  ;;  %2721 = vmatprep.subr.bf16.mxu1 %v5844_v21 }
0x1020   :  { %2681 = vmatpush1.bf16.msra.mxu0 %v5850_v22  ;;  %2722 = vmatpush1.bf16.msra.mxu1 %v5856_v23 }
0x1021   :  { %2682 = vmatprep.subr.bf16.mxu0 %v5862_v24  ;;  %2723 = vmatprep.subr.bf16.mxu1 %v5868_v42 }
0x1024   :  { %2683 = vmatpush1.bf16.msra.mxu0 %v5912_v47  ;;  %2724 = vmatpush1.bf16.msra.mxu1 %v5918_v51 }
0x1025   :  { %2684 = vmatprep.subr.bf16.mxu0 %v5924_v11  ;;  %2725 = vmatprep.subr.bf16.mxu1 %v5930_v9 }
0x1028   :  { %2685 = vmatpush1.bf16.msra.mxu0 %v5936_v6  ;;  %2726 = vmatpush1.bf16.msra.mxu1 %v5942_v55 }
0x1029   :  { %2686 = vmatprep.subr.bf16.mxu0 %v5948_v56  ;;  %2727 = vmatprep.subr.bf16.mxu1 %v5954_v36 }
0x102c   :  { %2687 = vmatpush1.bf16.msra.mxu0 %v5960_v37  ;;  %2728 = vmatpush1.bf16.msra.mxu1 %v5966_v57 }
0x102d   :  { %2805 = vmatprep.subr.bf16.mxu0 %v5736_v13  ;;  %2846 = vmatprep.subr.bf16.mxu1 %v5742_v14 }
0x10cf   :  { %v2588_v40 = vpop.f32.mrf.mxu0  ;;  %v2629_v33 = vpop.f32.mrf.mxu1 }
0x10d0   :  { %v2636_v41 = vadd.f32 %v2588_v40, %v2546_v12  ;;  %v2638_v53 = vadd.f32 %v2629_v33, %v2548_v29  ;;  %v2668_v29 = vld [vmem:[#allocation2 + $0x48] sm:$0xc] }
0x10d1   :  { %v2590_v35 = vpop.f32.mrf.mxu0  ;;  %v2631_v45 = vpop.f32.mrf.mxu1 }
0x10d2   :  { %v4150_v43 = vmul.f32 -1.442695, %v2636_v41  ;;  %v2637_v19 = vadd.f32 %v2590_v35, %v2547_v34  ;;  %v4152_v54 = vmul.f32 -1.442695, %v2638_v53  ;;  %v2639_v60 = vadd.f32 %v2631_v45, %v2549_v3 }
0x10d3   :  { %v2592_v5 = vpop.f32.mrf.mxu0  ;;  %v2633_v46 = vpop.f32.mrf.mxu1 }
0x10d4   :  { %4620 = vpow2.f32 %v4150_v43  ;;  %v4151_v7 = vmul.f32 -1.442695, %v2637_v19  ;;  %v2667_v5 = vld [vmem:[#allocation2 + $0x20] sm:$0xc] }
0x10d5   :  { %v2593_v10 = vpop.f32.mrf.mxu0  ;;  %v2634_v27 = vpop.f32.mrf.mxu1 }
0x10d6   :  { %4622 = vpow2.f32 %v4151_v7 }
0x10d7   :  { %4624 = vpow2.f32 %v4152_v54 }
0x10e1   :  { %v4621_v59 = vpop.eup %4620 }
0x10e2   :  { %v2649_v61 = vadd.f32 1.0, %v4621_v59 }
0x10e3   :  { %v4623_v44 = vpop.eup %4622 }
0x10e4   :  { %4626 = vrcp.f32 %v2649_v61  ;;  %v2650_v62 = vadd.f32 1.0, %v4623_v44  ;;  %v4625_v48 = vpop.eup %4624 }
0x10e5   :  { %4628 = vtanh.f32 %v2639_v60  ;;  %v2651_v32 = vadd.f32 1.0, %v4625_v48 }
0x10e6   :  { %4630 = vrcp.f32 %v2650_v62 }
0x10e7   :  { %4632 = vrcp.f32 %v2651_v32 }
0x10f1   :  { %v4627_v30 = vpop.eup %4626 }
0x10f2   :  { %v4629_v31 = vpop.eup %4628 }
0x10f3   :  { %v4631_v58 = vpop.eup %4630  ;;  %v2663_v40 = vmul.f32 %v4629_v31, %v4627_v30  ;;  %v2670_v31 = vld [vmem:[#allocation2 + $0x90] sm:$0xc] }
0x10f4   :  { %v2662_v12 = vmul.f32 %v4631_v58, %v2660_v39  ;;  %v4633_v41 = vpop.eup %4632 }
0x10f6   :  { %v6086_v33 = vadd.f32 %v2663_v40, %v2662_v12 }
0x10f8   :  { %4634 = vtanh.f32 %v6086_v33 }
0x1105   :  { %v4635_v34 = vpop.eup %4634 }
0x1106   :  { %v2666_v35 = vmul.f32 %v4635_v34, %v4633_v41 }
0x1108   :  { %v2671_v45 = vpack.c.bf16 %v2666_v35, %v2666_v35 }
0x110a   :  { %2705 = vmatmul.mubr.bf16.vlgmr.msra.gmra.mxu0 %v2671_v45  ;;  %2746 = vmatmul.mubr.bf16.vlgmr.msra.gmra.mxu1 %v2671_v45  ;;  %v2790_v45 = vrot.slane %v6086_v33, 6 }
0x110b   :  { %2806 = vmatpush1.bf16.msra.mxu0 %v5752_v8  ;;  %2847 = vmatpush1.bf16.msra.mxu1 %v5758_v52 }
0x110c   :  { %2807 = vmatprep.subr.bf16.mxu0 %v5764_v49  ;;  %2848 = vmatprep.subr.bf16.mxu1 %v5770_v63 }
0x110d   :  { %2837 = vmatprep.mubr.bf16.mxu0 %v4775_v38  ;;  %2878 = vmatprep.mubr.bf16.mxu1 %v4775_v38 }
0x110f   :  { %2808 = vmatpush1.bf16.msra.mxu0 %v5778_v1  ;;  %2849 = vmatpush1.bf16.msra.mxu1 %v5784_v2 }
0x1110   :  { %2809 = vmatprep.subr.bf16.mxu0 %v5790_v25  ;;  %2850 = vmatprep.subr.bf16.mxu1 %v5796_v26 }
0x1113   :  { %2810 = vmatpush1.bf16.msra.mxu0 %v5802_v4  ;;  %2851 = vmatpush1.bf16.msra.mxu1 %v5808_v15 }
0x1114   :  { %2811 = vmatprep.subr.bf16.mxu0 %v5814_v16  ;;  %2852 = vmatprep.subr.bf16.mxu1 %v5820_v0 }
0x1117   :  { %2812 = vmatpush1.bf16.msra.mxu0 %v5826_v17  ;;  %2853 = vmatpush1.bf16.msra.mxu1 %v5832_v18 }
0x1118   :  { %2813 = vmatprep.subr.bf16.mxu0 %v5838_v20  ;;  %2854 = vmatprep.subr.bf16.mxu1 %v5844_v21 }
0x111b   :  { %2814 = vmatpush1.bf16.msra.mxu0 %v5850_v22  ;;  %2855 = vmatpush1.bf16.msra.mxu1 %v5856_v23 }
0x111c   :  { %2815 = vmatprep.subr.bf16.mxu0 %v5862_v24  ;;  %2856 = vmatprep.subr.bf16.mxu1 %v5868_v42 }
0x111f   :  { %2816 = vmatpush1.bf16.msra.mxu0 %v5912_v47  ;;  %2857 = vmatpush1.bf16.msra.mxu1 %v5918_v51 }
0x1120   :  { %2817 = vmatprep.subr.bf16.mxu0 %v5924_v11  ;;  %2858 = vmatprep.subr.bf16.mxu1 %v5930_v9 }
0x1123   :  { %2818 = vmatpush1.bf16.msra.mxu0 %v5936_v6  ;;  %2859 = vmatpush1.bf16.msra.mxu1 %v5942_v55 }
0x1124   :  { %2819 = vmatprep.subr.bf16.mxu0 %v5948_v56  ;;  %2860 = vmatprep.subr.bf16.mxu1 %v5954_v36 }
0x1127   :  { %2820 = vmatpush1.bf16.msra.mxu0 %v5960_v37  ;;  %2861 = vmatpush1.bf16.msra.mxu1 %v5966_v57 }
0x1128   :  { %2938 = vmatprep.subr.bf16.mxu0 %v5736_v13  ;;  %2979 = vmatprep.subr.bf16.mxu1 %v5742_v14  ;;  %v2669_v14 = vld [vmem:[#allocation2 + $0x70] sm:$0xc] }
0x11ca   :  { %v2706_v50 = vpop.f32.mrf.mxu0  ;;  %v2747_v43 = vpop.f32.mrf.mxu1 }
0x11cb   :  { %v2758_v19 = vrot.slane %v2706_v50, 6  ;;  %v2760_v13 = vrot.slane %v2747_v43, 6 }
0x11cc   :  { %v2708_v46 = vpop.f32.mrf.mxu0  ;;  %v2749_v7 = vpop.f32.mrf.mxu1 }
0x11cd   :  { %v2766_v10 = vadd.f32 %v2758_v19, %v2667_v5  ;;  %v2759_v27 = vrot.slane %v2708_v46, 6  ;;  %v2768_v62 = vadd.f32 %v2760_v13, %v2669_v14  ;;  %v2761_v48 = vrot.slane %v2749_v7, 6 }
0x11ce   :  { %v2710_v53 = vpop.f32.mrf.mxu0  ;;  %v2751_v54 = vpop.f32.mrf.mxu1 }
0x11cf   :  { %v4153_v3 = vmul.f32 -1.442695, %v2766_v10  ;;  %v2767_v59 = vadd.f32 %v2759_v27, %v2668_v29  ;;  %v4155_v30 = vmul.f32 -1.442695, %v2768_v62  ;;  %v2769_v58 = vadd.f32 %v2761_v48, %v2670_v31  ;;  %v2797_v54 = vld [vmem:[#allocation2 + $0x20] sm:$0x30] }
0x11d0   :  { %v2711_v60 = vpop.f32.mrf.mxu0  ;;  %v2752_v61 = vpop.f32.mrf.mxu1 }
0x11d1   :  { %4636 = vpow2.f32 %v4153_v3  ;;  %v4154_v44 = vmul.f32 -1.442695, %v2767_v59 }
0x11d3   :  { %4638 = vpow2.f32 %v4154_v44  ;;  %v2798_v44 = vld [vmem:[#allocation2 + $0x48] sm:$0x30] }
0x11d4   :  { %4640 = vpow2.f32 %v4155_v30 }
0x11de   :  { %v4637_v39 = vpop.eup %4636 }
0x11df   :  { %v2779_v32 = vadd.f32 1.0, %v4637_v39 }
0x11e0   :  { %v4639_v12 = vpop.eup %4638 }
0x11e1   :  { %4642 = vrcp.f32 %v2779_v32  ;;  %v2780_v40 = vadd.f32 1.0, %v4639_v12  ;;  %v4641_v41 = vpop.eup %4640  ;;  %v2799_v32 = vld [vmem:[#allocation2 + $0x70] sm:$0x30] }
0x11e2   :  { %4644 = vtanh.f32 %v2769_v58  ;;  %v2781_v43 = vadd.f32 1.0, %v4641_v41 }
0x11e3   :  { %4646 = vrcp.f32 %v2780_v40 }
0x11e4   :  { %4648 = vrcp.f32 %v2781_v43 }
0x11ee   :  { %v4643_v34 = vpop.eup %4642 }
0x11ef   :  { %v4645_v35 = vpop.eup %4644 }
0x11f0   :  { %v4647_v50 = vpop.eup %4646  ;;  %v2793_v5 = vmul.f32 %v4645_v35, %v4643_v34  ;;  %v2800_v34 = vld [vmem:[#allocation2 + $0x90] sm:$0x30] }
0x11f1   :  { %v2792_v19 = vmul.f32 %v4647_v50, %v2790_v45  ;;  %v4649_v7 = vpop.eup %4648 }
0x11f3   :  { %v6124_v46 = vadd.f32 %v2793_v5, %v2792_v19 }
0x11f5   :  { %4650 = vtanh.f32 %v6124_v46 }
0x1202   :  { %v4651_v10 = vpop.eup %4650 }
0x1203   :  { %v2796_v27 = vmul.f32 %v4651_v10, %v4649_v7 }
0x1205   :  { %v2801_v29 = vpack.c.bf16 %v2796_v27, %v2796_v27  ;;  %v2923_v27 = vrot.slane %v6124_v46, 6  ;;  %v3064_v46 = vld [vmem:[%s6643_s5 + $0x150] sm:$0xff] }
0x1207   :  { %v2803_v53 = vrot.slane %v2801_v29, 1 }
0x1209   :  { %2838 = vmatmul.mubr.bf16.vlgmr.msra.gmra.mxu0 %v2803_v53  ;;  %2879 = vmatmul.mubr.bf16.vlgmr.msra.gmra.mxu1 %v2803_v53 }
0x120a   :  { %2939 = vmatpush1.bf16.msra.mxu0 %v5752_v8  ;;  %2980 = vmatpush1.bf16.msra.mxu1 %v5758_v52  ;;  %v6164_v8 = vld [vmem:[%s6640_s2] sm:$0x3]  ;;  %v3261_v52 = vlaneseq  ;;  %s4781_s2 = smov [#allocation3]  }
0x120b   :  { %2940 = vmatprep.subr.bf16.mxu0 %v5764_v49  ;;  %2981 = vmatprep.subr.bf16.mxu1 %v5770_v63  ;;  %v4302_v49 = vtrunc.f32 %v6164_v8  ;;  %v4776_v63 = vmov 1966171168   ;;  %s4048_s18 = sshll.u32 %s4781_s2, 4  ;;  %s4049_s18 = int_to_ptr.vmem [resolvable:$true] %s4048_s18 }
0x120c   :  { %2970 = vmatprep.mubr.bf16.mxu0 %v4775_v38  ;;  %3011 = vmatprep.mubr.bf16.mxu1 %v4775_v38  ;;  %p4757_p1 = scmp.lt.s32.totalorder %s4049_s18, %s4049_s18 }
0x120e   :  { %2941 = vmatpush1.bf16.msra.mxu0 %v5778_v1  ;;  %2982 = vmatpush1.bf16.msra.mxu1 %v5784_v2  ;;  %v3259_v1 = vunpack.c.l.s4 %v4776_v63  ;;  %v6168_v2 = vshrl.u32 %v3261_v52, 7 }
0x120f   :  { %2942 = vmatprep.subr.bf16.mxu0 %v5790_v25  ;;  %2983 = vmatprep.subr.bf16.mxu1 %v5796_v26  ;;  %v4303_v25 = vcvt.f32.s32 %v4302_v49 }
0x1210   :  { %v3260_v26 = vunpack.c.0.s8 %v3259_v1 }
0x1212   :  { %2943 = vmatpush1.bf16.msra.mxu0 %v5802_v4  ;;  %2984 = vmatpush1.bf16.msra.mxu1 %v5808_v15  ;;  %v3263_v4 = vsub.s32 %v3260_v26, %v6168_v2 }
0x1213   :  { %2944 = vmatprep.subr.bf16.mxu0 %v5814_v16  ;;  %2985 = vmatprep.subr.bf16.mxu1 %v5820_v0  ;;  %v6172_v16 = vsub.s32 0, %v6168_v2 }
0x1214   :  { %v3264_v15 = vrot.slane %v4303_v25, %v3263_v4 }
0x1216   :  { %2945 = vmatpush1.bf16.msra.mxu0 %v5826_v17  ;;  %2986 = vmatpush1.bf16.msra.mxu1 %v5832_v18  ;;  %v3265_v0 = vcombine.high %v3264_v15, %v3264_v15  ;;  %v3272_v17 = vrot.slane %v3264_v15, %v3263_v4 }
0x1217   :  { %2946 = vmatprep.subr.bf16.mxu0 %v5838_v20  ;;  %2987 = vmatprep.subr.bf16.mxu1 %v5844_v21 }
0x1218   :  { %v3286_v18 = vrot.slane %v3272_v17, %v6172_v16  ;;  %v3348_v20 = vmul.u32 2, %v3272_v17  ;;  %v3279_v21 = vrot.slane %v3265_v0, %v3263_v4 }
0x121a   :  { %2947 = vmatpush1.bf16.msra.mxu0 %v5850_v22  ;;  %2988 = vmatpush1.bf16.msra.mxu1 %v5856_v23  ;;  %v3353_v22 = vrot.slane %v3348_v20, %v6172_v16  ;;  %v3290_v23 = vrot.slane %v3279_v21, %v6172_v16  ;;  %v3066_v20 = vld [vmem:[%s6639_s1] sm:$0xff] }
0x121b   :  { %2948 = vmatprep.subr.bf16.mxu0 %v5862_v24  ;;  %2989 = vmatprep.subr.bf16.mxu1 %v5868_v42  ;;  %v3349_v24 = vmul.u32 2, %v3279_v21  ;;  %v3400_v42 = vmul.u32 3, %v3272_v17 }
0x121c   :  { %3292 = vperm.xlu0 %4312, %v3286_v18   ;;  %3359 = vperm.xlu1 %4313, %v3353_v22   ;;  %v3063_v18 = vld [vmem:[%s6643_s5 + $0x148] sm:$0xff] }
0x121d   :  { %v3067_v22 = vld [vmem:[%s6639_s1 + $0x8] sm:$0xff] }
0x121e   :  { %2949 = vmatpush1.bf16.msra.mxu0 %v5912_v47  ;;  %2990 = vmatpush1.bf16.msra.mxu1 %v5918_v51  ;;  %v3357_v47 = vrot.slane %v3349_v24, %v6172_v16  ;;  %v3401_v51 = vmul.u32 3, %v3279_v21  ;;  %v3068_v24 = vld [vmem:[%s6639_s1 + $0x10] sm:$0xf] }
0x121f   :  { %2950 = vmatprep.subr.bf16.mxu0 %v5924_v11  ;;  %2991 = vmatprep.subr.bf16.mxu1 %v5930_v9  ;;  %v3405_v11 = vrot.slane %v3400_v42, %v6172_v16  ;;  %v3452_v9 = vmul.u32 4, %v3272_v17  ;;  %v3065_v17 = vld [vmem:[%s6643_s5 + $0x158] sm:$0xf]  ;;  %v4168_v42 = vld [vmem:[%s6639_s1 + $0x28] sm:$0xf] }
0x1220   :  { %3295 = vperm.xlu0 %4312, %v3290_v23   ;;  %3362 = vperm.xlu1 %4313, %v3357_v47   ;;  %v4167_v23 = vld [vmem:[%s6639_s1 + $0x20] sm:$0xff]  ;;  %v4778_v47 = vmov 1  }
0x1222   :  { %2951 = vmatpush1.bf16.msra.mxu0 %v5936_v6  ;;  %2992 = vmatpush1.bf16.msra.mxu1 %v5942_v55  ;;  %v3409_v6 = vrot.slane %v3401_v51, %v6172_v16  ;;  %v3453_v55 = vmul.u32 4, %v3279_v21  ;;  %v4166_v21 = vld [vmem:[%s6639_s1 + $0x18] sm:$0xff] }
0x1223   :  { %2952 = vmatprep.subr.bf16.mxu0 %v5948_v56  ;;  %2993 = vmatprep.subr.bf16.mxu1 %v5954_v36  ;;  %v3457_v56 = vrot.slane %v3452_v9, %v6172_v16 }
0x1224   :  { %3411 = vperm.xlu0 %4312, %v3405_v11   ;;  %3414 = vperm.xlu1 %4313, %v3409_v6   ;;  %v3461_v36 = vrot.slane %v3453_v55, %v6172_v16 }
0x1226   :  { %2953 = vmatpush1.bf16.msra.mxu0 %v5960_v37  ;;  %2994 = vmatpush1.bf16.msra.mxu1 %v5966_v57 }
0x1227   :  { %4240 = vmatprep.subr.mxu0 %v4774_v28  ;;  %4255 = vmatprep.subr.mxu1 %v4774_v28 }
0x1228   :  { %3463 = vperm.xlu0 %4312, %v3457_v56   ;;  %3466 = vperm.xlu1 %4313, %v3461_v36   ;;  %v6251_v36 = vand.u32 127, %v3261_v52 }
0x122c   :  { %4314 = vset.pattern.permute.xlu1 %v4778_v47 }
0x1297   :  { %v6238_v51 = vpop.permute.xlu0 %3292  ;;  %v6240_v11 = vpop.permute.xlu1 %3359 }
0x1298   :  { %vm3346_vm5 = vcmp.ge.s32.totalorder %v6251_v36, %v6238_v51  ;;  %vm3364_vm6 = vcmp.lt.s32.totalorder %v6251_v36, %v6240_v11 }
0x1299   :  { %vm6264_vm11 = vmand %vm3346_vm5, %vm3364_vm6  ;;  %vm3398_vm6 = vcmp.ge.s32.totalorder %v6251_v36, %v6240_v11 }
0x129b   :  { %v6242_v9 = vpop.permute.xlu0 %3295  ;;  %v6244_v6 = vpop.permute.xlu1 %3362 }
0x129c   :  { %vm3347_vm9 = vcmp.ge.s32.totalorder %v6251_v36, %v6242_v9  ;;  %vm3365_vm10 = vcmp.lt.s32.totalorder %v6251_v36, %v6244_v6  ;;  %vm3298_vm5 = vcmp.lt.s32.totalorder %v6251_v36, %v6242_v9 }
0x129d   :  { %vm6279_vm15 = vmand %vm3347_vm9, %vm3365_vm10  ;;  %vm3399_vm9 = vcmp.ge.s32.totalorder %v6251_v36, %v6244_v6 }
0x129f   :  { %v6246_v55 = vpop.permute.xlu0 %3411  ;;  %v6248_v56 = vpop.permute.xlu1 %3414 }
0x12a0   :  { %vm3450_vm7 = vcmp.ge.s32.totalorder %v6251_v36, %v6246_v55  ;;  %vm3451_vm12 = vcmp.ge.s32.totalorder %v6251_v36, %v6248_v56  ;;  %vm3417_vm10 = vcmp.lt.s32.totalorder %v6251_v36, %v6248_v56 }
0x12c9   :  { %v2839_v37 = vpop.f32.mrf.mxu0  ;;  %v2880_v57 = vpop.f32.mrf.mxu1 }
0x12ca   :  { %v2891_v33 = vrot.slane %v2839_v37, 4  ;;  %v2893_v58 = vrot.slane %v2880_v57, 4 }
0x12cb   :  { %v2841_v3 = vpop.f32.mrf.mxu0  ;;  %v2882_v59 = vpop.f32.mrf.mxu1 }
0x12cc   :  { %v2899_v60 = vadd.f32 %v2891_v33, %v2797_v54  ;;  %v2892_v61 = vrot.slane %v2841_v3, 4  ;;  %v2901_v12 = vadd.f32 %v2893_v58, %v2799_v32  ;;  %v2894_v40 = vrot.slane %v2882_v59, 4  ;;  %v3464_v33 = vpop.permute.xlu0 %3463  ;;  %v2930_v3 = vld [vmem:[#allocation2 + $0x20] sm:$0xc0] }
0x12cd   :  { %v2843_v13 = vpop.f32.mrf.mxu0  ;;  %v2884_v14 = vpop.f32.mrf.mxu1  ;;  %vm3468_vm8 = vcmp.lt.s32.totalorder %v6251_v36, %v3464_v33 }
0x12ce   :  { %v4156_v62 = vmul.f32 -1.442695, %v2899_v60  ;;  %v2900_v48 = vadd.f32 %v2892_v61, %v2798_v44  ;;  %v4158_v41 = vmul.f32 -1.442695, %v2901_v12  ;;  %v2902_v45 = vadd.f32 %v2894_v40, %v2800_v34  ;;  %v3467_v61 = vpop.permute.xlu1 %3466  ;;  %v2931_v14 = vld [vmem:[#allocation2 + $0x48] sm:$0xc0]  ;;  %vm6271_vm14 = vmand %vm3450_vm7, %vm3468_vm8 }
0x12cf   :  { %v2844_v30 = vpop.f32.mrf.mxu0  ;;  %v2885_v31 = vpop.f32.mrf.mxu1  ;;  %vm3469_vm13 = vcmp.lt.s32.totalorder %v6251_v36, %v3467_v61  ;;  %vm3416_vm7 = vcmp.lt.s32.totalorder %v6251_v36, %v6246_v55 }
0x12d0   :  { %4652 = vpow2.f32 %v4156_v62  ;;  %v4157_v39 = vmul.f32 -1.442695, %v2900_v48  ;;  %vm6289_vm0 = vmand %vm3451_vm12, %vm3469_vm13  ;;  %vm3535_vm12 = vcmask 130112   ;;  %vm3542_vm13 = vcmask 195712  }
0x12d1   :  { %vm6368_vm8 = vmand %vm3398_vm6, %vm3416_vm7 }
0x12d2   :  { %4654 = vpow2.f32 %v4157_v39 }
0x12d3   :  { %4656 = vpow2.f32 %v4158_v41 }
0x12dd   :  { %v4653_v35 = vpop.eup %4652 }
0x12de   :  { %v2912_v50 = vadd.f32 1.0, %v4653_v35 }
0x12df   :  { %v4655_v43 = vpop.eup %4654 }
0x12e0   :  { %4658 = vrcp.f32 %v2912_v50  ;;  %v2913_v19 = vadd.f32 1.0, %v4655_v43  ;;  %v4657_v5 = vpop.eup %4656 }
0x12e1   :  { %4660 = vtanh.f32 %v2902_v45  ;;  %v2914_v53 = vadd.f32 1.0, %v4657_v5 }
0x12e2   :  { %4662 = vrcp.f32 %v2913_v19 }
0x12e3   :  { %4664 = vrcp.f32 %v2914_v53  ;;  %v2932_v53 = vld [vmem:[#allocation2 + $0x70] sm:$0xc0] }
0x12ed   :  { %v4659_v7 = vpop.eup %4658 }
0x12ee   :  { %v4661_v10 = vpop.eup %4660 }
0x12ef   :  { %v4663_v29 = vpop.eup %4662  ;;  %v2926_v63 = vmul.f32 %v4661_v10, %v4659_v7 }
0x12f0   :  { %v2925_v49 = vmul.f32 %v4663_v29, %v2923_v27  ;;  %v4665_v25 = vpop.eup %4664 }
0x12f2   :  { %v6183_v1 = vadd.f32 %v2926_v63, %v2925_v49 }
0x12f4   :  { %4666 = vtanh.f32 %v6183_v1 }
0x1301   :  { %v4667_v26 = vpop.eup %4666 }
0x1302   :  { %v2929_v4 = vmul.f32 %v4667_v26, %v4665_v25 }
0x1304   :  { %v2934_v15 = vpack.c.bf16 %v2929_v4, %v2929_v4 }
0x1306   :  { %v2936_v0 = vrot.slane %v2934_v15, 2 }
0x1308   :  { %2971 = vmatmul.mubr.bf16.vlgmr.msra.gmra.mxu0 %v2936_v0  ;;  %3012 = vmatmul.mubr.bf16.vlgmr.msra.gmra.mxu1 %v2936_v0 }
0x1309   :  { %4241 = vmatpush3.msk.msra.mxu0 %vm3079_vm2, %v3065_v17  ;;  %4256 = vmatpush3.msk.msra.mxu1 %vm3079_vm2, %v3065_v17  ;;  %vm3297_vm2 = vcmp.lt.s32.totalorder %v6251_v36, %v6238_v51 }
0x130a   :  { %4242 = vmatprep.subr.mxu0 %v4774_v28  ;;  %4257 = vmatprep.subr.mxu1 %v4774_v28 }
0x130b   :  { %4243 = vmatpush3.msra.mxu0 %v3064_v46  ;;  %4258 = vmatpush3.msra.mxu1 %v3064_v46 }
0x130c   :  { %4244 = vmatprep.subr.mxu0 %v4774_v28  ;;  %4259 = vmatprep.subr.mxu1 %v4774_v28 }
0x130d   :  { %4245 = vmatpush3.msra.mxu0 %v3063_v18  ;;  %4246 = vmatprep.mubr.msk.f32.mxu0 %vm4777_vm3, %v4774_v28 }
0x130e   :  { %4260 = vmatpush3.msra.mxu1 %v3063_v18  ;;  %4261 = vmatprep.mubr.msk.f32.mxu1 %vm4777_vm3, %v4774_v28 }
0x130f   :  { %4270 = vmatprep.subr.mxu0 %v4774_v28 }
0x1310   :  { %4247 = vmatmul.mubr.msk.f32.vlgmr.msra.gmra.mxu0 %vm3069_vm4, %v3066_v20  ;;  %4262 = vmatmul.mubr.msk.f32.vlgmr.msra.gmra.mxu1 %vm3069_vm4, %v4166_v21 }
0x1311   :  { %4249 = vmatprep.mubr.msk.f32.mxu0 %vm4777_vm3, %v4774_v28  ;;  %4264 = vmatprep.mubr.msk.f32.mxu1 %vm4777_vm3, %v4774_v28 }
0x1314   :  { %4250 = vmatmul.mubr.msk.f32.gmra.mxu0 %vm3069_vm4, %v3067_v22  ;;  %4265 = vmatmul.mubr.msk.f32.gmra.mxu1 %vm3069_vm4, %v4167_v23  ;;  %v2933_v23 = vld [vmem:[#allocation2 + $0x90] sm:$0xc0] }
0x1315   :  { %4252 = vmatprep.mubr.msk.f32.mxu0 %vm4777_vm3, %v4774_v28  ;;  %4267 = vmatprep.mubr.msk.f32.mxu1 %vm4777_vm3, %v4774_v28 }
0x1318   :  { %4253 = vmatmul.mubr.msk.f32.gmra.mxu0 %vm3069_vm4, %v3068_v24  ;;  %4268 = vmatmul.mubr.msk.f32.gmra.mxu1 %vm3069_vm4, %v4168_v42 }
0x1319   :  { %4280 = vmatprep.mubr.msk.f32.mxu0 %vm4777_vm3, %v4774_v28 }
0x13c8   :  { %v2972_v37 = vpop.f32.mrf.mxu0  ;;  %v3013_v57 = vpop.f32.mrf.mxu1 }
0x13c9   :  { %v3024_v54 = vrot.slane %v2972_v37, 2  ;;  %v3026_v35 = vrot.slane %v3013_v57, 2 }
0x13ca   :  { %v2974_v59 = vpop.f32.mrf.mxu0  ;;  %v3015_v60 = vpop.f32.mrf.mxu1 }
0x13cb   :  { %v3032_v44 = vadd.f32 %v3024_v54, %v2930_v3  ;;  %v3025_v13 = vrot.slane %v2974_v59, 2  ;;  %v3034_v25 = vadd.f32 %v3026_v35, %v2932_v53  ;;  %v3027_v26 = vrot.slane %v3015_v60, 2 }
0x13cc   :  { %v2976_v62 = vpop.f32.mrf.mxu0  ;;  %v3017_v52 = vpop.f32.mrf.mxu1 }
0x13cd   :  { %v4159_v48 = vmul.f32 -1.442695, %v3032_v44  ;;  %v3033_v30 = vadd.f32 %v3025_v13, %v2931_v14  ;;  %v4161_v22 = vmul.f32 -1.442695, %v3034_v25  ;;  %v3035_v24 = vadd.f32 %v3027_v26, %v2933_v23 }
0x13ce   :  { %v2977_v31 = vpop.f32.mrf.mxu0  ;;  %v3018_v39 = vpop.f32.mrf.mxu1 }
0x13cf   :  { %4668 = vpow2.f32 %v4159_v48  ;;  %v4160_v32 = vmul.f32 -1.442695, %v3033_v30 }
0x13d0   :  { %v6275_v40 = vpop.f32.mrf.mxu0  ;;  %v6277_v41 = vpop.f32.mrf.mxu1 }
0x13d1   :  { %4670 = vpow2.f32 %v4160_v32  ;;  %v3472_v45 = vsel %vm6271_vm14, %v6275_v40, 0.0  ;;  %v3368_v50 = vsel %vm6264_vm11, %v6275_v40, 0.0  ;;  %v3475_v27 = vsel %vm6289_vm0, %v6277_v41, 0.0 }
0x13d2   :  { %v4248_v19 = vpop.f32.mrf.mxu0  ;;  %v4263_v5 = vpop.f32.mrf.mxu1  ;;  %v3478_v7 = vsel %vm3069_vm4, %v3472_v45, 0.0  ;;  %v3374_v10 = vsel %vm3069_vm4, %v3368_v50, 0.0  ;;  %v3371_v29 = vsel %vm6279_vm15, %v6277_v41, 0.0  ;;  %v3487_v0 = vsel %vm3069_vm4, %v3475_v27, 0.0 }
0x13d3   :  { %3479 = vadd.xlane.f32.xlu1 %v3478_v7  ;;  %3375 = vadd.xlane.f32.xlu0 %v3374_v10  ;;  %v3383_v17 = vsel %vm3069_vm4, %v3371_v29, 0.0  ;;  %4672 = vpow2.f32 %v4161_v22  ;;  %v3301_v39 = vsel %vm3297_vm2, %v6275_v40, 0.0  ;;  %v3056_v45 = vrot.slane %v6183_v1, 6 }
0x13d4   :  { %v6301_v49 = vpop.f32.mrf.mxu0  ;;  %v6303_v63 = vpop.f32.mrf.mxu1  ;;  %4674 = vtanh.f32 %v3035_v24  ;;  %v3307_v32 = vsel %vm3069_vm4, %v3301_v39, 0.0  ;;  %v3304_v27 = vsel %vm3298_vm5, %v6277_v41, 0.0  ;;  %v3420_v24 = vsel %vm6368_vm8, %v6275_v40, 0.0 }
0x13d5   :  { %v3372_v46 = vsel %vm6279_vm15, %v6303_v63, 0.0  ;;  %v3369_v18 = vsel %vm6264_vm11, %v6301_v49, 0.0  ;;  %v3473_v33 = vsel %vm6271_vm14, %v6301_v49, 0.0  ;;  %v3476_v14 = vsel %vm6289_vm0, %v6303_v63, 0.0 }
0x13d6   :  { %v4251_v4 = vpop.f32.mrf.mxu0  ;;  %v4266_v15 = vpop.f32.mrf.mxu1  ;;  %v3386_v42 = vsel %vm3069_vm4, %v3372_v46, 0.0  ;;  %v3377_v47 = vsel %vm3069_vm4, %v3369_v18, 0.0  ;;  %v3481_v61 = vsel %vm3069_vm4, %v3473_v33, 0.0  ;;  %v3490_v52 = vsel %vm3069_vm4, %v3476_v14, 0.0 }
0x13d7   :  { %3488 = vadd.xlane.f32.xlu1 %v3487_v0  ;;  %3384 = vadd.xlane.f32.xlu0 %v3383_v17  ;;  %v3302_v34 = vsel %vm3297_vm2, %v6301_v49, 0.0  ;;  %v3317_v53 = vsel %vm3069_vm4, %v3304_v27, 0.0  ;;  %v3305_v1 = vsel %vm3298_vm5, %v6303_v63, 0.0  ;;  %v3421_v11 = vsel %vm6368_vm8, %v6301_v49, 0.0 }
0x13d8   :  { %v6313_v20 = vpop.f32.mrf.mxu0  ;;  %v6315_v21 = vpop.f32.mrf.mxu1  ;;  %v3310_v7 = vsel %vm3069_vm4, %v3302_v34, 0.0  ;;  %v3320_v26 = vsel %vm3069_vm4, %v3305_v1, 0.0  ;;  %v3429_v55 = vsel %vm3069_vm4, %v3421_v11, 0.0 }
0x13d9   :  { %v3370_v54 = vsel %vm6264_vm11, %v6313_v20, 0.0  ;;  %v3474_v62 = vsel %vm6271_vm14, %v6313_v20, 0.0  ;;  %v3373_v30 = vsel %vm6279_vm15, %v6315_v21, 0.0  ;;  %vm6385_vm11 = vmand %vm3399_vm9, %vm3417_vm10  ;;  %v3303_v46 = vsel %vm3297_vm2, %v6313_v20, 0.0 }
0x13da   :  { %v4254_v37 = vpop.f32.mrf.mxu0  ;;  %v4269_v57 = vpop.f32.mrf.mxu1  ;;  %v3380_v44 = vsel %vm3313_vm1, %v3370_v54, 0.0  ;;  %v3484_v48 = vsel %vm3313_vm1, %v3474_v62, 0.0  ;;  %v3389_v31 = vsel %vm3313_vm1, %v3373_v30, 0.0  ;;  %v3423_v6 = vsel %vm6385_vm11, %v6277_v41, 0.0 }
0x13db   :  { %3387 = vadd.xlane.f32.xlu0 %v3386_v42  ;;  %3378 = vadd.xlane.f32.xlu1 %v3377_v47  ;;  %v3435_v56 = vsel %vm3069_vm4, %v3423_v6, 0.0  ;;  %v3424_v43 = vsel %vm6385_vm11, %v6303_v63, 0.0  ;;  %v3314_v41 = vsel %vm3313_vm1, %v3303_v46, 0.0  ;;  %v3306_v18 = vsel %vm3298_vm5, %v6315_v21, 0.0 }
0x13dc   :  { %v4669_v3 = vpop.eup %4668  ;;  %v3438_v17 = vsel %vm3069_vm4, %v3424_v43, 0.0  ;;  %v3323_v22 = vsel %vm3313_vm1, %v3306_v18, 0.0  ;;  %v3422_v63 = vsel %vm6368_vm8, %v6313_v20, 0.0  ;;  %v3425_v51 = vsel %vm6385_vm11, %v6315_v21, 0.0  ;;  %v3736_v18 = vld [vmem:[%s6643_s5 + $0x180] sm:$0xff] }
0x13dd   :  { %v3045_v59 = vadd.f32 1.0, %v4669_v3  ;;  %v3432_v23 = vsel %vm3313_vm1, %v3422_v63, 0.0  ;;  %v3441_v9 = vsel %vm3313_vm1, %v3425_v51, 0.0  ;;  %v3426_v42 = vsel %vm3069_vm4, %v3420_v24, 0.0  ;;  %4271 = vmatpush3.msra.mxu0 %v3736_v18  ;;  %v3734_v63 = vld [vmem:[%s6643_s5 + $0x170] sm:$0xff]  ;;  %v3732_v51 = vld [vmem:[%s6643_s5 + $0x160] sm:$0xff] }
0x13de   :  { %v4671_v60 = vpop.eup %4670  ;;  %4272 = vmatprep.subr.mxu0 %v4774_v28  ;;  %vm3558_vm14 = vcmask 1041409   ;;  %vm3613_vm15 = vcmask 1043459   ;;  %vm3955_vm2 = vcmask 523264   ;;  %vm4029_vm5 = vcmask 9216  }
0x13df   :  { %4676 = vrcp.f32 %v3045_v59  ;;  %v3046_v13 = vadd.f32 1.0, %v4671_v60  ;;  %3482 = vadd.xlane.f32.xlu0 %v3481_v61  ;;  %3381 = vadd.xlane.f32.xlu1 %v3380_v44  ;;  %v3336_v61 = vsub.s32 1, %v6168_v2 }
0x13e0   :  { %v4673_v58 = vpop.eup %4672 }
0x13e1   :  { %4678 = vrcp.f32 %v3046_v13  ;;  %v4675_v12 = vpop.eup %4674  ;;  %v3047_v5 = vadd.f32 1.0, %v4673_v58 }
0x13e3   :  { %3491 = vadd.xlane.f32.xlu0 %v3490_v52  ;;  %3485 = vadd.xlane.f32.xlu1 %v3484_v48  ;;  %4680 = vrcp.f32 %v3047_v5 }
0x13e7   :  { %3390 = vadd.xlane.f32.xlu0 %v3389_v31 }
0x13eb   :  { %3308 = vadd.xlane.f32.xlu0 %v3307_v32 }
0x13ec   :  { %v4677_v35 = vpop.eup %4676 }
0x13ed   :  { %v3059_v50 = vmul.f32 %v4677_v35, %v4675_v12 }
0x13ee   :  { %v4679_v19 = vpop.eup %4678 }
0x13ef   :  { %v3058_v10 = vmul.f32 %v4679_v19, %v3056_v45  ;;  %3311 = vadd.xlane.f32.xlu0 %v3310_v7 }
0x13f1   :  { %v3060_v29 = vadd.f32 %v3059_v50, %v3058_v10 }
0x13f3   :  { %4682 = vtanh.f32 %v3060_v29  ;;  %3318 = vadd.xlane.f32.xlu0 %v3317_v53 }
0x13f4   :  { %3328 = vperm.xlu1 %4314, %v6164_v8   ;;  %v3477_v8 = vsel %vm6289_vm0, %v6315_v21, 0.0  ;;  %vm3616_vm0 = vcmask 1041408  }
0x13f5   :  { %v3493_v49 = vsel %vm3313_vm1, %v3477_v8, 0.0  ;;  %vm3742_vm1 = vcmask 326656  }
0x13f7   :  { %3321 = vadd.xlane.f32.xlu0 %v3320_v26 }
0x13f8   :  { %4315 = vset.pattern.permute.xlu1 %v4775_v38  ;;  %v4681_v38 = vpop.eup %4680 }
0x13fb   :  { %3430 = vadd.xlane.f32.xlu0 %v3429_v55 }
0x13ff   :  { %3494 = vadd.xlane.f32.xlu0 %v3493_v49 }
0x1400   :  { %v4683_v15 = vpop.eup %4682 }
0x1401   :  { %v6393_v0 = vmul.f32 %v4683_v15, %v4681_v38 }
0x1403   :  { %3436 = vadd.xlane.f32.xlu0 %v3435_v56 }
0x1407   :  { %3439 = vadd.xlane.f32.xlu0 %v3438_v17 }
0x140b   :  { %3315 = vadd.xlane.f32.xlu0 %v3314_v41 }
0x140f   :  { %3324 = vadd.xlane.f32.xlu0 %v3323_v22  ;;  %v3735_v22 = vld [vmem:[%s6643_s5 + $0x178] sm:$0xff] }
0x1410   :  { %4273 = vmatpush3.msra.mxu0 %v3735_v22 }
0x1411   :  { %4274 = vmatprep.subr.mxu0 %v4774_v28 }
0x1412   :  { %4275 = vmatpush3.msra.mxu0 %v3734_v63 }
0x1413   :  { %3433 = vadd.xlane.f32.xlu0 %v3432_v23  ;;  %v3733_v23 = vld [vmem:[%s6643_s5 + $0x168] sm:$0xff]  ;;  %4276 = vmatprep.subr.mxu0 %v4774_v28 }
0x1414   :  { %4277 = vmatpush3.msra.mxu0 %v3733_v23 }
0x1415   :  { %4278 = vmatprep.subr.mxu0 %v4774_v28 }
0x1416   :  { %4279 = vmatpush3.msra.mxu0 %v3732_v51 }
0x1417   :  { %3442 = vadd.xlane.f32.xlu0 %v3441_v9  ;;  %4283 = vmatprep.subr.mxu0 %v4774_v28 }
0x1418   :  { %3427 = vadd.xlane.f32.xlu1 %v3426_v42 }
0x145c   :  { %v3480_v47 = vpop.xlane.xlu1 %3479  ;;  %v3376_v37 = vpop.xlane.xlu0 %3375 }
0x1460   :  { %v3489_v20 = vpop.xlane.xlu1 %3488  ;;  %v3385_v57 = vpop.xlane.xlu0 %3384 }
0x1464   :  { %v3388_v33 = vpop.xlane.xlu0 %3387  ;;  %v3379_v54 = vpop.xlane.xlu1 %3378 }
0x1468   :  { %v3483_v3 = vpop.xlane.xlu0 %3482  ;;  %v3382_v59 = vpop.xlane.xlu1 %3381 }
0x146c   :  { %v3492_v60 = vpop.xlane.xlu0 %3491  ;;  %v3486_v21 = vpop.xlane.xlu1 %3485 }
0x1470   :  { %v3391_v44 = vpop.xlane.xlu0 %3390  ;;  %v3329_v40 = vpop.permute.xlu1 %3328 }
0x1471   :  { %v3333_v13 = vrot.slane %v3329_v40, %v6172_v16  ;;  %v3337_v14 = vrot.slane %v3329_v40, %v3336_v61 }
0x1473   :  { %v3393_v62 = vmul.f32 %v3379_v54, %v3333_v13  ;;  %v3392_v52 = vmul.f32 %v3376_v37, %v3333_v13  ;;  %v3396_v30 = vmul.f32 %v3388_v33, %v3337_v14  ;;  %v3395_v31 = vmul.f32 %v3385_v57, %v3337_v14 }
0x1474   :  { %v3309_v48 = vpop.xlane.xlu0 %3308  ;;  %v3497_v58 = vmul.f32 %v3483_v3, %v3333_v13  ;;  %v3496_v32 = vmul.f32 %v3480_v47, %v3333_v13  ;;  %v3500_v34 = vmul.f32 %v3492_v60, %v3337_v14  ;;  %v3499_v35 = vmul.f32 %v3489_v20, %v3337_v14 }
0x1475   :  { %3628 = vperm.xlu1 %4315, %v3393_v62   ;;  %3625 = vperm.xlu0 %4312, %v3392_v52   ;;  %v3397_v16 = vmul.f32 %v3391_v44, %v3337_v14  ;;  %v3394_v50 = vmul.f32 %v3382_v59, %v3333_v13  ;;  %v3498_v5 = vmul.f32 %v3486_v21, %v3333_v13  ;;  %v3530_v57 = vadd.s32 4294967288, %v6251_v36 }
0x1476   :  { %v3340_v27 = vmul.f32 %v3333_v13, %v3309_v48  ;;  %v3537_v33 = vadd.s32 4294967280, %v6251_v36  ;;  %v3528_v60 = vsub.s32 %v6251_v36, %v6168_v2 }
0x1477   :  { %v6447_v59 = vsub.s32 %v3530_v57, %v6168_v2 }
0x1478   :  { %v3312_v39 = vpop.xlane.xlu0 %3311  ;;  %v6452_v21 = vsub.s32 %v3537_v33, %v6168_v2 }
0x1479   :  { %3637 = vperm.xlu1 %4315, %v3396_v30   ;;  %3634 = vperm.xlu0 %4312, %v3395_v31   ;;  %v3341_v53 = vmul.f32 %v3333_v13, %v3312_v39 }
0x147c   :  { %v3319_v12 = vpop.xlane.xlu0 %3318 }
0x147d   :  { %3682 = vperm.xlu1 %4315, %v3497_v58   ;;  %3679 = vperm.xlu0 %4312, %v3496_v32   ;;  %v3343_v1 = vmul.f32 %v3337_v14, %v3319_v12 }
0x1480   :  { %v3322_v45 = vpop.xlane.xlu0 %3321 }
0x1481   :  { %3691 = vperm.xlu1 %4315, %v3500_v34   ;;  %3688 = vperm.xlu0 %4312, %v3499_v35   ;;  %v3344_v26 = vmul.f32 %v3337_v14, %v3322_v45 }
0x1484   :  { %v3431_v19 = vpop.xlane.xlu0 %3430 }
0x1485   :  { %3640 = vperm.xlu1 %4315, %v3397_v16   ;;  %3631 = vperm.xlu0 %4312, %v3394_v50   ;;  %v3445_v55 = vmul.f32 %v3431_v19, %v3333_v13 }
0x1488   :  { %v3495_v7 = vpop.xlane.xlu0 %3494 }
0x1489   :  { %v3501_v10 = vmul.f32 %v3495_v7, %v3337_v14  ;;  %3685 = vperm.xlu0 %4312, %v3498_v5  }
0x148b   :  { %3694 = vperm.xlu1 %4315, %v3501_v10  }
0x148c   :  { %v3437_v29 = vpop.xlane.xlu0 %3436 }
0x148d   :  { %3509 = vperm.xlu0 %4312, %v3340_v27   ;;  %v3447_v17 = vmul.f32 %v3437_v29, %v3337_v14 }
0x148f   :  { %3512 = vperm.xlu1 %4315, %v3341_v53  }
0x1490   :  { %v3440_v25 = vpop.xlane.xlu0 %3439 }
0x1491   :  { %3518 = vperm.xlu0 %4312, %v3343_v1   ;;  %v3448_v4 = vmul.f32 %v3440_v25, %v3337_v14 }
0x1493   :  { %3521 = vperm.xlu1 %4315, %v3344_v26  }
0x1494   :  { %v3316_v11 = vpop.xlane.xlu0 %3315 }
0x1495   :  { %v3342_v46 = vmul.f32 %v3333_v13, %v3316_v11 }
0x1497   :  { %3571 = vperm.xlu1 %4315, %v3445_v55  }
0x1498   :  { %v3325_v8 = vpop.xlane.xlu0 %3324 }
0x1499   :  { %v3345_v38 = vmul.f32 %v3337_v14, %v3325_v8 }
0x149b   :  { %3580 = vperm.xlu1 %4315, %v3448_v4  }
0x149c   :  { %v3434_v49 = vpop.xlane.xlu0 %3433 }
0x149d   :  { %v3446_v41 = vmul.f32 %v3434_v49, %v3333_v13 }
0x149f   :  { %3524 = vperm.xlu1 %4315, %v3345_v38  }
0x14a0   :  { %v3443_v6 = vpop.xlane.xlu0 %3442 }
0x14a1   :  { %v3449_v15 = vmul.f32 %v3443_v6, %v3337_v14  ;;  %v3428_v56 = vpop.xlane.xlu1 %3427 }
0x14a2   :  { %v3444_v43 = vmul.f32 %v3428_v56, %v3333_v13 }
0x14a3   :  { %3583 = vperm.xlu1 %4315, %v3449_v15  }
0x14a4   :  { %3568 = vperm.xlu0 %4312, %v3444_v43  }
0x14a8   :  { %3577 = vperm.xlu0 %4312, %v3447_v17  }
0x14ac   :  { %3515 = vperm.xlu0 %4312, %v3342_v46  }
0x14b0   :  { %3574 = vperm.xlu0 %4312, %v3446_v41  }
0x14f0   :  { %v3629_v24 = vpop.permute.xlu1 %3628  ;;  %v3626_v9 = vpop.permute.xlu0 %3625 }
0x14f1   :  { %v3649_v40 = vrot.slane %v3629_v24, %v6447_v59  ;;  %v3645_v13 = vrot.slane %v3626_v9, %v3528_v60 }
0x14f3   :  { %v3650_v32 = vsel %vm3535_vm12, %v3649_v40, %v3645_v13  ;;  %v3860_v13 = vld [vmem:[%s6643_s5 + $0xf8] sm:$0xff] }
0x14f4   :  { %v3638_v42 = vpop.permute.xlu1 %3637  ;;  %v3635_v47 = vpop.permute.xlu0 %3634  ;;  %4196 = vmatprep.subr.mxu1 %v3860_v13 }
0x14f5   :  { %v3663_v14 = vrot.slane %v3638_v42, %v6447_v59  ;;  %v3659_v62 = vrot.slane %v3635_v47, %v3528_v60 }
0x14f7   :  { %v3664_v12 = vsel %vm3535_vm12, %v3663_v14, %v3659_v62  ;;  %v3859_v14 = vld [vmem:[%s6643_s5 + $0xf0] sm:$0xff] }
0x14f8   :  { %v3683_v37 = vpop.permute.xlu1 %3682  ;;  %v3680_v20 = vpop.permute.xlu0 %3679  ;;  %v3843_v62 = vld [vmem:[%s6643_s5 + $0x70] sm:$0xff] }
0x14f9   :  { %v3703_v30 = vrot.slane %v3683_v37, %v6447_v59  ;;  %v3699_v36 = vrot.slane %v3680_v20, %v3528_v60 }
0x14fb   :  { %v3704_v50 = vsel %vm3535_vm12, %v3703_v30, %v3699_v36  ;;  %v3857_v30 = vld [vmem:[%s6643_s5 + $0xe0] sm:$0xff] }
0x14fc   :  { %v3692_v54 = vpop.permute.xlu1 %3691  ;;  %v3689_v3 = vpop.permute.xlu0 %3688  ;;  %v3841_v36 = vld [vmem:[%s6643_s5 + $0x60] sm:$0xff] }
0x14fd   :  { %v3717_v2 = vrot.slane %v3692_v54, %v6447_v59  ;;  %v3713_v31 = vrot.slane %v3689_v3, %v3528_v60 }
0x14ff   :  { %v3718_v19 = vsel %vm3535_vm12, %v3717_v2, %v3713_v31  ;;  %v3856_v2 = vld [vmem:[%s6643_s5 + $0xd8] sm:$0xff] }
0x1500   :  { %v3641_v61 = vpop.permute.xlu1 %3640  ;;  %v3632_v44 = vpop.permute.xlu0 %3631  ;;  %v3840_v31 = vld [vmem:[%s6643_s5 + $0x58] sm:$0xff] }
0x1501   :  { %v3668_v52 = vrot.slane %v3641_v61, %v6452_v21  ;;  %v3654_v48 = vrot.slane %v3632_v44, %v6452_v21 }
0x1503   :  { %v3669_v35 = vsel %vm3542_vm13, %v3668_v52, %v3664_v12  ;;  %v3655_v45 = vsel %vm3542_vm13, %v3654_v48, %v3650_v32  ;;  %v3858_v52 = vld [vmem:[%s6643_s5 + $0xe8] sm:$0xff] }
0x1504   :  { %v3686_v39 = vpop.permute.xlu0 %3685  ;;  %v3670_v29 = vsel %vm3558_vm14, %v3669_v35, %v3655_v45  ;;  %v3842_v48 = vld [vmem:[%s6643_s5 + $0x68] sm:$0xff]  ;;  %v3837_v35 = vld [vmem:[%s6643_s5 + $0x40] sm:$0xff]  ;;  %v3852_v45 = vld [vmem:[%s6643_s5 + $0xb8] sm:$0xff] }
0x1505   :  { %v3708_v58 = vrot.slane %v3686_v39, %v6452_v21  ;;  %v3855_v39 = vld [vmem:[%s6643_s5 + $0xd0] sm:$0xff]  ;;  %v3854_v32 = vld [vmem:[%s6643_s5 + $0xc8] sm:$0xff] }
0x1506   :  { %v3695_v34 = vpop.permute.xlu1 %3694  ;;  %v3838_v12 = vld [vmem:[%s6643_s5 + $0x48] sm:$0xff] }
0x1507   :  { %v3722_v16 = vrot.slane %v3695_v34, %v6452_v21  ;;  %v3709_v7 = vsel %vm3542_vm13, %v3708_v58, %v3704_v50  ;;  %v3839_v58 = vld [vmem:[%s6643_s5 + $0x50] sm:$0xff]  ;;  %v3853_v34 = vld [vmem:[%s6643_s5 + $0xc0] sm:$0xff] }
0x1508   :  { %v3510_v5 = vpop.permute.xlu0 %3509  ;;  %v3851_v50 = vld [vmem:[%s6643_s5 + $0xb0] sm:$0xff] }
0x1509   :  { %v3723_v10 = vsel %vm3542_vm13, %v3722_v16, %v3718_v19  ;;  %v3529_v1 = vrot.slane %v3510_v5, %v3528_v60  ;;  %v3836_v16 = vld [vmem:[%s6643_s5 + $0x38] sm:$0xff]  ;;  %v3835_v19 = vld [vmem:[%s6643_s5 + $0x30] sm:$0xff]  ;;  %v3850_v5 = vld [vmem:[%s6643_s5 + $0xa8] sm:$0xff] }
0x150a   :  { %v3513_v27 = vpop.permute.xlu1 %3512  ;;  %v3724_v53 = vsel %vm3613_vm15, %v3723_v10, %v3709_v7  ;;  %v3834_v7 = vld [vmem:[%s6643_s5 + $0x28] sm:$0xff]  ;;  %v3849_v10 = vld [vmem:[%s6643_s5 + $0xa0] sm:$0xff] }
0x150b   :  { %v3534_v25 = vrot.slane %v3513_v27, %v6447_v59  ;;  %v3726_v26 = vsel %vm3616_vm0, %v3670_v29, %v3724_v53  ;;  %v3833_v27 = vld [vmem:[%s6643_s5 + $0x20] sm:$0xff]  ;;  %v3848_v29 = vld [vmem:[%s6643_s5 + $0x98] sm:$0xff] }
0x150c   :  { %3728 = vrot.lane.b32.xlu0 %v3726_v26, %s4779_s17  ;;  %v3519_v11 = vpop.permute.xlu0 %3518  ;;  %v3832_v53 = vld [vmem:[%s6643_s5 + $0x18] sm:$0xff]  ;;  %v4173_v26 = vld [vmem:[%s6643_s5 + $0x188] ss:$0 sm:$0xff] }
0x150d   :  { %v3536_v55 = vsel %vm3535_vm12, %v3534_v25, %v3529_v1  ;;  %v3547_v4 = vrot.slane %v3519_v11, %v3528_v60  ;;  %v3847_v1 = vld [vmem:[%s6643_s5 + $0x90] sm:$0xff]  ;;  %v3846_v11 = vld [vmem:[%s6643_s5 + $0x88] sm:$0xff] }
0x150e   :  { %v3522_v8 = vpop.permute.xlu1 %3521  ;;  %v3831_v25 = vld [vmem:[%s6643_s5 + $0x10] sm:$0xff] }
0x150f   :  { %v3551_v49 = vrot.slane %v3522_v8, %v6447_v59 }
0x1511   :  { %v3552_v38 = vsel %vm3535_vm12, %v3551_v49, %v3547_v4  ;;  %v3845_v4 = vld [vmem:[%s6643_s5 + $0x80] sm:$0xff] }
0x1512   :  { %v3572_v6 = vpop.permute.xlu1 %3571 }
0x1513   :  { %v3592_v41 = vrot.slane %v3572_v6, %v6447_v59  ;;  %v3869_v6 = vld [vmem:[%s6643_s5 + $0x138] sm:$0xff] }
0x1516   :  { %v3581_v15 = vpop.permute.xlu1 %3580 }
0x1517   :  { %v3606_v51 = vrot.slane %v3581_v15, %v6447_v59  ;;  %v3868_v15 = vld [vmem:[%s6643_s5 + $0x130] sm:$0xff] }
0x151a   :  { %v3525_v56 = vpop.permute.xlu1 %3524 }
0x151b   :  { %v3556_v43 = vrot.slane %v3525_v56, %v6452_v21 }
0x151d   :  { %v3557_v17 = vsel %vm3542_vm13, %v3556_v43, %v3552_v38  ;;  %v3829_v38 = vld [vmem:[%s6643_s5] sm:$0xff] }
0x151e   :  { %v3584_v22 = vpop.permute.xlu1 %3583 }
0x151f   :  { %v3569_v46 = vpop.permute.xlu0 %3568  ;;  %v3611_v9 = vrot.slane %v3584_v22, %v6452_v21 }
0x1520   :  { %v3588_v18 = vrot.slane %v3569_v46, %v3528_v60 }
0x1522   :  { %v3593_v63 = vsel %vm3535_vm12, %v3592_v41, %v3588_v18  ;;  %v3866_v41 = vld [vmem:[%s6643_s5 + $0x120] sm:$0xff] }
0x1523   :  { %v3578_v23 = vpop.permute.xlu0 %3577 }
0x1524   :  { %v3602_v24 = vrot.slane %v3578_v23, %v3528_v60 }
0x1526   :  { %v3607_v42 = vsel %vm3535_vm12, %v3606_v51, %v3602_v24  ;;  %v3877_v24 = vrot.slane %v6393_v0, 6  ;;  %v3862_v0 = vld [vmem:[%s6643_s5 + $0x100] sm:$0xff] }
0x1527   :  { %v3612_v47 = vsel %vm3542_vm13, %v3611_v9, %v3607_v42  ;;  %v3516_v37 = vpop.permute.xlu0 %3515  ;;  %v3865_v9 = vld [vmem:[%s6643_s5 + $0x118] sm:$0xff]  ;;  %v3864_v42 = vld [vmem:[%s6643_s5 + $0x110] sm:$0xff] }
0x1528   :  { %v3541_v20 = vrot.slane %v3516_v37, %v6452_v21 }
0x152a   :  { %v3543_v57 = vsel %vm3542_vm13, %v3541_v20, %v3536_v55  ;;  %v3830_v55 = vld [vmem:[%s6643_s5 + $0x8] sm:$0xff]  ;;  %v4175_v20 = vld [vmem:[%s6643_s5 + $0x140] ss:$0 sm:$0xff] }
0x152b   :  { %v3575_v33 = vpop.permute.xlu0 %3574  ;;  %v3559_v54 = vsel %vm3558_vm14, %v3557_v17, %v3543_v57  ;;  %v3867_v17 = vld [vmem:[%s6643_s5 + $0x128] sm:$0xff] }
0x152c   :  { %v3597_v3 = vrot.slane %v3575_v33, %v6452_v21  ;;  %v3844_v21 = vld [vmem:[%s6643_s5 + $0x78] sm:$0xff] }
0x152d   :  { %4197 = vmatpush3.msra.mxu1 %v3844_v21 }
0x152e   :  { %v3598_v61 = vsel %vm3542_vm13, %v3597_v3, %v3593_v63  ;;  %4198 = vmatprep.subr.mxu1 %v3859_v14  ;;  %v4176_v3 = vld [vmem:[%s6643_s5 + $0x141] ss:$0 sm:$0xff] }
0x152f   :  { %v3614_v59 = vsel %vm3613_vm15, %v3612_v47, %v3598_v61  ;;  %4199 = vmatpush3.msra.mxu1 %v3843_v62  ;;  %v3863_v47 = vld [vmem:[%s6643_s5 + $0x108] sm:$0xff]  ;;  %s4752_s5 = scalar_lea.vmem %s4049_s18, 32 }
0x1530   :  { %v3617_v60 = vsel %vm3616_vm0, %v3559_v54, %v3614_v59  ;;  %4200 = vmatprep.subr.mxu1 %v3858_v52  ;;  %p4753_p0 = scmp.ne.s32.totalorder %s4049_s18, %s4752_s5  ;;  %p4758_p2 = scmp.lt.s32.totalorder %s4752_s5, %s4752_s5 }
0x1531   :  { %4201 = vmatpush3.msra.mxu1 %v3842_v48 }
0x1532   :  { %4202 = vmatprep.subr.mxu1 %v3857_v30  ;;  %p4759_p3 = por %p4758_p2, %p4757_p1 }
0x1533   :  { %4203 = vmatpush3.msra.mxu1 %v3841_v36 }
0x1534   :  { %4204 = vmatprep.subr.mxu1 %v3856_v2  ;;  %p4760_p4 = pnand %p4759_p3, %p4753_p0 }
0x1535   :  { %4205 = vmatpush3.msra.mxu1 %v3840_v31 }
0x1536   :  { %4206 = vmatprep.subr.mxu1 %v3855_v39 }
0x1537   :  { %4207 = vmatpush3.msra.mxu1 %v3839_v58 }
0x1538   :  { %4208 = vmatprep.subr.mxu1 %v3854_v32 }
0x1539   :  { %4209 = vmatpush3.msra.mxu1 %v3838_v12 }
0x153a   :  { %4210 = vmatprep.subr.mxu1 %v3853_v34 }
0x153b   :  { %4211 = vmatpush3.msra.mxu1 %v3837_v35 }
0x153c   :  { %4212 = vmatprep.subr.mxu1 %v3852_v45 }
0x153d   :  { %4213 = vmatpush3.msra.mxu1 %v3836_v16 }
0x153e   :  { %4214 = vmatprep.subr.mxu1 %v3851_v50 }
0x153f   :  { %4215 = vmatpush3.msra.mxu1 %v3835_v19 }
0x1540   :  { %4216 = vmatprep.subr.mxu1 %v3850_v5 }
0x1541   :  { %4217 = vmatpush3.msra.mxu1 %v3834_v7 }
0x1542   :  { %4218 = vmatprep.subr.mxu1 %v3849_v10 }
0x1543   :  { %4219 = vmatpush3.msra.mxu1 %v3833_v27 }
0x1544   :  { %4220 = vmatprep.subr.mxu1 %v3848_v29 }
0x1545   :  { %4221 = vmatpush3.msra.mxu1 %v3832_v53 }
0x1546   :  { %4222 = vmatprep.subr.mxu1 %v3847_v1 }
0x1547   :  { %4223 = vmatpush3.msra.mxu1 %v3831_v25 }
0x1548   :  { %4224 = vmatprep.subr.mxu1 %v3846_v11 }
0x1549   :  { %4225 = vmatpush3.msra.mxu1 %v3830_v55 }
0x154a   :  { %4226 = vmatprep.subr.mxu1 %v3845_v4 }
0x154b   :  { %4227 = vmatpush3.msra.mxu1 %v3829_v38 }
0x157e   :  { %v3729_v44 = vpop.permute.xlu0 %3728 }
0x157f   :  { %v3731_v40 = vsel %vm3069_vm4, %v3617_v60, %v3729_v44  ;;  %vm3827_vm4 = vcmask 818176  }
0x1580   :  { %4281 = vmatmul.mubr.msk.f32.vlgmr.msra.gmra.mxu0 %vm3742_vm1, %v3731_v40 }
0x1581   :  { %4299 = vmatprep.mubr.msk.f32.mxu0 %vm4777_vm3, %v4774_v28  ;;  %4284 = vmatpush3.msra.mxu0 %v3869_v6  ;;  %vm3822_vm3 = vcmask 408576  }
0x1582   :  { %4285 = vmatprep.subr.mxu0 %v4774_v28 }
0x1583   :  { %4286 = vmatpush3.msra.mxu0 %v3868_v15 }
0x1584   :  { %4287 = vmatprep.subr.mxu0 %v4774_v28 }
0x1585   :  { %4288 = vmatpush3.msra.mxu0 %v3867_v17 }
0x1586   :  { %4289 = vmatprep.subr.mxu0 %v4774_v28 }
0x1587   :  { %4290 = vmatpush3.msra.mxu0 %v3866_v41 }
0x1588   :  { %4291 = vmatprep.subr.mxu0 %v4774_v28 }
0x1589   :  { %4292 = vmatpush3.msra.mxu0 %v3865_v9 }
0x158a   :  { %4293 = vmatprep.subr.mxu0 %v4774_v28 }
0x158b   :  { %4294 = vmatpush3.msra.mxu0 %v3864_v42 }
0x158c   :  { %4295 = vmatprep.subr.mxu0 %v4774_v28 }
0x158d   :  { %4296 = vmatpush3.msra.mxu0 %v3863_v47 }
0x158e   :  { %4297 = vmatprep.subr.mxu0 %v4774_v28 }
0x158f   :  { %4298 = vmatpush3.msra.mxu0 %v3862_v0 }
0x1640   :  { %v3812_v8 = vpop.f32.mrf.mxu0 }
0x1641   :  { %v3813_v49 = vadd.f32 %v4173_v26, %v3812_v8 }
0x1642   :  { %v4282_v56 = vpop.f32.mrf.mxu0 }
0x1643   :  { %v3816_v43 = vmax.f32 %v3813_v49, 0.0 }
0x1645   :  { %v3818_v46 = vrot.slane %v3816_v43, 2 }
0x1647   :  { %3819 = vrot.lane.b32.xlu1 %v3818_v46, %s4780_s7 }
0x16b9   :  { %v3820_v18 = vpop.permute.xlu1 %3819 }
0x16ba   :  { %v3823_v22 = vsel %vm3822_vm3, %v3816_v43, %v3820_v18 }
0x16bb   :  { %v3825_v63 = vrot.slane %v3823_v22, 2 }
0x16bd   :  { %v3828_v23 = vsel %vm3827_vm4, %v3825_v63, 0.0 }
0x16be   :  { %v3878_v51 = vrot.slane %v3828_v23, 6 }
0x16c0   :  { %3945 = vmatprep.mubr.f32.mxu1 %v3878_v51 }
0x16c1   :  { %3946 = vmatmul.mubr.f32.vlgmr.msra.gmra.mxu1 %v3877_v24 }
0x1781   :  { %v4228_v37 = vpop.f32.mrf.mxu1 }
0x1783   :  { %v4229_v57 = vpop.f32.mrf.mxu1 }
0x1784   :  { %v4230_v33 = vadd.f32 %v4229_v57, %v4228_v37 }
0x1786   :  { %v3948_v54 = vadd.f32 %v4230_v33, %v4175_v20 }
0x1788   :  { %4300 = vmatmul.mubr.msk.f32.vlgmr.msra.gmra.mxu0 %vm3955_vm2, %v3948_v54 }
0x1848   :  { %v4025_v61 = vpop.f32.mrf.mxu0 }
0x1849   :  { %v4026_v59 = vadd.f32 %v4176_v3, %v4025_v61 }
0x184a   :  { %v4301_v60 = vpop.f32.mrf.mxu0 }
0x184b   :  { %v4030_v28 = vsel %vm4029_vm5, %v4026_v59, -inf }
0x184c   :  { %4031 = vmax.xlane.f32.xlu0 %v4030_v28 }
0x18d5   :  { %v4032_v44 = vpop.xlane.xlu0 %4031 }
0x18d6   :  { %v4033_v40 = vsub.f32 %v4026_v59, %v4032_v44 }
0x18d8   :  { %v4034_v13 = vmul.f32 1.442695, %v4033_v40 }
0x18da   :  { %4684 = vpow2.f32 %v4034_v13 }
0x18e7   :  { %v4685_v21 = vpop.eup %4684 }
0x18e8   :  { %v4036_v14 = vsel %vm4029_vm5, %v4685_v21, 0.0 }
0x18e9   :  { %4037 = vadd.xlane.f32.xlu1 %v4036_v14 }
0x1972   :  { %v4038_v62 = vpop.xlane.xlu1 %4037 }
0x1973   :  { %4686 = vrcp.f32 %v4038_v62 }
0x1980   :  { %v4687_v52 = vpop.eup %4686 }
0x1981   :  { %v4040_v48 = vmul.f32 %v4687_v52, %v4685_v21 }
0x1983   :  { %4041 = vst.msk [vmem:[#allocation3] sm:$0x3] %vm4029_vm5, %v4040_v48 }
0x1984   :  { %4763 = shalt.err (!%p4760_p4)
}
0x1985   :  { %4051 = dma.vmem_to_hbm [thread:$0]  %s4049_s18, 32, %s6644_s6, [#allocation4]  }
0x1986   :  { %4772 = dma.done.wait [#allocation4], 32  }
0x1987   :  { %4773 = vsyncadd [#allocation4], 4294967264 }
0x1988   :  { %4055 = vsyncpa [#allocation4], 1 }

</bundles_post_ra>
